<compile_context>
chip_gen: v7x
topology: tpu7x:2x2x1
jax: 0.10.0
libtpu: 0.0.40
codegen_flags: <defaults>
</compile_context>

<pallas_src>
import functools

import jax
import jax.numpy as jnp
import numpy as np
from jax import lax
from jax.experimental import pallas as pl
from jax.experimental.pallas import tpu as pltpu


def _even_cols_select(width_in, width_out):
    """0/1 matrix S with S[w, j] = 1 iff w == 2*j (stride-2 column pick via MXU)."""
    r = lax.broadcasted_iota(jnp.int32, (width_in, width_out), 0)
    c = lax.broadcasted_iota(jnp.int32, (width_in, width_out), 1)
    return (r == 2 * c).astype(jnp.float32)


def _conv_stack_kernel(x_ref, w1_ref, b1_ref, w2_ref, b2_ref, o_ref,
                       y1_ref, p1_ref, y2_ref, *,
                       cin, c1, c2, Hc1, Wc1, Hp1, Wp1, Hc2, Wc2, Hp2, Wp2):
    """Fused conv1->ReLU->pool1->conv2->ReLU->pool2 for one batch element.

    x_ref : (H*cin, W)       rows ordered (image_row, channel); W on lanes
    w1_ref: (3, c1, 3*cin)   per-kw weight; contraction merges (kh, cin)
    b1_ref: (c1, 1)
    w2_ref: (3, c2, 3*c1)
    b2_ref: (c2, 1)
    o_ref : (Hp2, c2, Wp2)   pooled conv2 output, (row, channel, col)
    y1_ref: (Hc1*c1, Wc1)    conv1 ReLU output  (VMEM scratch)
    p1_ref: (Hp1*c1, Wp1)    pool1 output       (VMEM scratch)
    y2_ref: (Hc2*c2, Wc2)    conv2 ReLU output  (VMEM scratch)
    """
    KH = 3

    # ---------------- conv1 + bias + ReLU ----------------
    w1 = w1_ref[...]                                   # (3, c1, 3*cin)
    b1 = b1_ref[...]                                   # (c1, 1)

    def conv1_row(h, carry):
        slab = x_ref[pl.ds(pl.multiple_of(h * cin, cin), KH * cin), :]   # (3*cin, W)
        acc = jnp.dot(w1[0], slab[:, 0:Wc1], preferred_element_type=jnp.float32)
        acc = acc + jnp.dot(w1[1], slab[:, 1:Wc1 + 1],
                            preferred_element_type=jnp.float32)
        acc = acc + jnp.dot(w1[2], slab[:, 2:Wc1 + 2],
                            preferred_element_type=jnp.float32)
        y1_ref[pl.ds(pl.multiple_of(h * c1, c1), c1), :] = jnp.maximum(acc + b1, 0.0)
        return carry

    lax.fori_loop(0, Hc1, conv1_row, 0)

    # ---------------- maxpool 3x3 stride 2 (pool1) ----------------
    sel1 = _even_cols_select(Wc1 - 2, Wp1)             # (Wc1-2, Wp1)

    def pool1_row(i, carry):
        r0 = y1_ref[pl.ds(pl.multiple_of((2 * i) * c1, c1), c1), :]
        r1 = y1_ref[pl.ds(pl.multiple_of((2 * i + 1) * c1, c1), c1), :]
        r2 = y1_ref[pl.ds(pl.multiple_of((2 * i + 2) * c1, c1), c1), :]
        m = jnp.maximum(jnp.maximum(r0, r1), r2)                          # (c1, Wc1)
        n = jnp.maximum(jnp.maximum(m[:, 0:Wc1 - 2], m[:, 1:Wc1 - 1]),
                        m[:, 2:Wc1])                                      # (c1, Wc1-2)
        p1_ref[pl.ds(pl.multiple_of(i * c1, c1), c1), :] = jnp.dot(
            n, sel1, preferred_element_type=jnp.float32)                  # (c1, Wp1)
        return carry

    lax.fori_loop(0, Hp1, pool1_row, 0)

    # ---------------- conv2 + bias + ReLU ----------------
    w2 = w2_ref[...]                                   # (3, c2, 3*c1)
    b2 = b2_ref[...]                                   # (c2, 1)

    def conv2_row(h, carry):
        slab = p1_ref[pl.ds(pl.multiple_of(h * c1, c1), KH * c1), :]      # (3*c1, Wp1)
        acc = jnp.dot(w2[0], slab[:, 0:Wc2], preferred_element_type=jnp.float32)
        acc = acc + jnp.dot(w2[1], slab[:, 1:Wc2 + 1],
                            preferred_element_type=jnp.float32)
        acc = acc + jnp.dot(w2[2], slab[:, 2:Wc2 + 2],
                            preferred_element_type=jnp.float32)
        y2_ref[pl.ds(pl.multiple_of(h * c2, c2), c2), :] = jnp.maximum(acc + b2, 0.0)
        return carry

    lax.fori_loop(0, Hc2, conv2_row, 0)

    # ---------------- maxpool 3x3 stride 2 (pool2) ----------------
    sel2 = _even_cols_select(Wc2 - 2, Wp2)             # (Wc2-2, Wp2)

    def pool2_row(i, carry):
        r0 = y2_ref[pl.ds(pl.multiple_of((2 * i) * c2, c2), c2), :]
        r1 = y2_ref[pl.ds(pl.multiple_of((2 * i + 1) * c2, c2), c2), :]
        r2 = y2_ref[pl.ds(pl.multiple_of((2 * i + 2) * c2, c2), c2), :]
        m = jnp.maximum(jnp.maximum(r0, r1), r2)                          # (c2, Wc2)
        n = jnp.maximum(jnp.maximum(m[:, 0:Wc2 - 2], m[:, 1:Wc2 - 1]),
                        m[:, 2:Wc2])                                      # (c2, Wc2-2)
        o_ref[i] = jnp.dot(n, sel2, preferred_element_type=jnp.float32)   # (c2, Wp2)
        return carry

    lax.fori_loop(0, Hp2, pool2_row, 0)


def conv_stack(x_flat, w1p, b1, w2p, b2, *, cin, c1, c2, H, W):
    """x_flat: (B, H*cin, W) f32.  Returns pooled conv2 output (B, Hp2, c2, Wp2)."""
    B = x_flat.shape[0]
    Hc1, Wc1 = H - 2, W - 2
    Hp1, Wp1 = (Hc1 - 3) // 2 + 1, (Wc1 - 3) // 2 + 1
    Hc2, Wc2 = Hp1 - 2, Wp1 - 2
    Hp2, Wp2 = (Hc2 - 3) // 2 + 1, (Wc2 - 3) // 2 + 1

    kernel = functools.partial(
        _conv_stack_kernel, cin=cin, c1=c1, c2=c2,
        Hc1=Hc1, Wc1=Wc1, Hp1=Hp1, Wp1=Wp1, Hc2=Hc2, Wc2=Wc2, Hp2=Hp2, Wp2=Wp2)

    return pl.pallas_call(
        kernel,
        out_shape=jax.ShapeDtypeStruct((B, Hp2, c2, Wp2), jnp.float32),
        grid=(B,),
        in_specs=[
            pl.BlockSpec((pl.Squeezed(), H * cin, W), lambda b: (b, 0, 0)),
            pl.BlockSpec((3, c1, 3 * cin), lambda b: (0, 0, 0)),
            pl.BlockSpec((c1, 1), lambda b: (0, 0)),
            pl.BlockSpec((3, c2, 3 * c1), lambda b: (0, 0, 0)),
            pl.BlockSpec((c2, 1), lambda b: (0, 0)),
        ],
        out_specs=pl.BlockSpec((pl.Squeezed(), Hp2, c2, Wp2),
                               lambda b: (b, 0, 0, 0)),
        scratch_shapes=[
            pltpu.VMEM((Hc1 * c1, Wc1), jnp.float32),
            pltpu.VMEM((Hp1 * c1, Wp1), jnp.float32),
            pltpu.VMEM((Hc2 * c2, Wc2), jnp.float32),
        ],
        compiler_params=pltpu.CompilerParams(dimension_semantics=("parallel",)),
    )(x_flat, w1p, b1, w2p, b2)


def _mlp_kernel(x_ref, w1_ref, b1_ref, w2_ref, b2_ref, o_ref):
    """fc1 -> ReLU -> fc2 for the whole batch (everything resident in VMEM)."""
    h = jnp.dot(x_ref[...], w1_ref[...], preferred_element_type=jnp.float32)
    h = jnp.maximum(h + b1_ref[...], 0.0)
    o = jnp.dot(h, w2_ref[...], preferred_element_type=jnp.float32) + b2_ref[...]
    o_ref[...] = o.astype(o_ref.dtype)


def mlp_head(flat, fc1_w, fc1_b, fc2_w, fc2_b):
    B = flat.shape[0]
    A = fc2_w.shape[1]
    return pl.pallas_call(
        _mlp_kernel,
        out_shape=jax.ShapeDtypeStruct((B, A), jnp.float32),
    )(flat, fc1_w, fc1_b, fc2_w, fc2_b)


def prepare_params(params, *, hp2=18, wp2=18, c2=32):
    """One-time (outside jit) repack of PyTorch-style params into kernel layout."""
    def pack_conv(w_hwio):
        kh, kw, ci, co = w_hwio.shape
        # per-kw matrices; rows ordered (kh, cin) to match the kernel's row slab
        return jnp.transpose(w_hwio, (1, 3, 0, 2)).reshape(kw, co, kh * ci)

    fc1_w = params["fc1_w"]                      # rows in PyTorch CHW flatten order
    d_out = fc1_w.shape[1]
    # reorder rows (c, i, j) -> (i, c, j) so the conv kernel's (row, channel, col)
    # output flattens directly into fc1's input (no runtime transpose).
    fc1_w_perm = (fc1_w.reshape(c2, hp2, wp2, d_out)
                  .transpose(1, 0, 2, 3).reshape(c2 * hp2 * wp2, d_out))
    return {
        "w1p": pack_conv(params["conv1_w"]),
        "b1": params["conv1_b"].reshape(-1, 1),
        "w2p": pack_conv(params["conv2_w"]),
        "b2": params["conv2_b"].reshape(-1, 1),
        "fc1_w": fc1_w_perm,
        "fc1_b": params["fc1_b"].reshape(1, -1),
        "fc2_w": params["fc2_w"],
        "fc2_b": params["fc2_b"].reshape(1, -1),
    }


def qnetwork_forward(x_nchw, kp):
    """Forward of QNetworkFullyConvolutional. x_nchw: (B, C, H, W) like PyTorch."""
    B, cin, H, W = x_nchw.shape
    # NCHW -> (B, H, C, W) -> (B, H*C, W): W sits on the 128-lane axis.
    x = jnp.transpose(x_nchw, (0, 2, 1, 3)).astype(jnp.float32).reshape(B, H * cin, W)
    c1 = kp["w1p"].shape[1]
    c2 = kp["w2p"].shape[1]
    pooled = conv_stack(x, kp["w1p"], kp["b1"], kp["w2p"], kp["b2"],
                        cin=cin, c1=c1, c2=c2, H=H, W=W)     # (B, 18, 32, 18)
    flat = pooled.reshape(B, -1)        # (i, c, j) order; fc1_w pre-permuted to match
    # nn.Dropout(): identity in eval mode.
    # TODO(synk): training-mode dropout mask (p=0.5) is not applied.
    return mlp_head(flat, kp["fc1_w"], kp["fc1_b"], kp["fc2_w"], kp["fc2_b"])


def reference_forward(x_nchw, params):
    """Pure-JAX reference with identical semantics (for correctness check)."""
    x = jnp.transpose(x_nchw, (0, 2, 3, 1)).astype(jnp.float32)

    def conv_pool(h, w, b):
        y = lax.conv_general_dilated(
            h, w, window_strides=(1, 1), padding="VALID",
            dimension_numbers=("NHWC", "HWIO", "NHWC"),
            precision=lax.Precision.HIGHEST)
        y = jnp.maximum(y + b, 0.0)
        return lax.reduce_window(y, -jnp.inf, lax.max,
                                 (1, 3, 3, 1), (1, 2, 2, 1), "VALID")

    h = conv_pool(x, params["conv1_w"], params["conv1_b"])
    h = conv_pool(h, params["conv2_w"], params["conv2_b"])
    flat = jnp.transpose(h, (0, 3, 1, 2)).reshape(h.shape[0], -1)   # PyTorch NCHW flatten
    h = jnp.maximum(flat @ params["fc1_w"] + params["fc1_b"], 0.0)
    return h @ params["fc2_w"] + params["fc2_b"]


if __name__ == "__main__":
    # The module's fc1 (18*18*32) implies an 84x84 spatial input; B=2, C_in=4.
    B, C_in, H, W = 2, 4, 84, 84
    action_size = 6

    root = jax.random.PRNGKey(0)
    ks = jax.random.split(root, 9)
    params = {
        # conv weights stored HWIO (PyTorch uses OIHW; weights are synthesized here)
        "conv1_w": jax.random.normal(ks[0], (3, 3, C_in, 16), jnp.float32) * 0.1,
        "conv1_b": jax.random.normal(ks[1], (16,), jnp.float32) * 0.1,
        "conv2_w": jax.random.normal(ks[2], (3, 3, 16, 32), jnp.float32) * 0.05,
        "conv2_b": jax.random.normal(ks[3], (32,), jnp.float32) * 0.05,
        # fc weights stored (in, out) = transpose of PyTorch's (out, in);
        # fc1 rows follow PyTorch's NCHW flatten order.
        "fc1_w": jax.random.normal(ks[4], (18 * 18 * 32, 32), jnp.float32) * 0.01,
        "fc1_b": jax.random.normal(ks[5], (32,), jnp.float32) * 0.01,
        "fc2_w": jax.random.normal(ks[6], (32, action_size), jnp.float32) * 0.1,
        "fc2_b": jax.random.normal(ks[7], (action_size,), jnp.float32) * 0.1,
    }
    x = jax.random.normal(ks[8], (B, C_in, H, W), jnp.float32)   # NCHW input

    kp = prepare_params(params)                      # one-time host-side repack
    out = jax.jit(qnetwork_forward)(x, kp)
    out = jax.block_until_ready(out)
    assert out.shape == (B, action_size)

    ref = reference_forward(x, params)
    np.testing.assert_allclose(np.asarray(out), np.asarray(ref), rtol=1e-2, atol=1e-2)

    print("KERNEL_OK")
</pallas_src>

<mosaic_0001>
module attributes {stable_mosaic.version = 11 : i64} {
  func.func @_conv_stack_kernel(%arg0: i32, %arg1: memref<1x336x84xf32, #tpu.memory_space<vmem>>, %arg2: memref<3x16x12xf32, #tpu.memory_space<vmem>>, %arg3: memref<16x1xf32, #tpu.memory_space<vmem>>, %arg4: memref<3x32x48xf32, #tpu.memory_space<vmem>>, %arg5: memref<32x1xf32, #tpu.memory_space<vmem>>, %arg6: memref<1x18x32x18xf32, #tpu.memory_space<vmem>>, %arg7: memref<1312x82xf32, #tpu.memory_space<vmem>>, %arg8: memref<640x40xf32, #tpu.memory_space<vmem>>, %arg9: memref<1216x38xf32, #tpu.memory_space<vmem>>) attributes {dimension_semantics = [#tpu.dimension_semantics<parallel>], iteration_bounds = array<i64: 2>, scalar_prefetch = 0 : i64, scratch_operands = 3 : i64, tpu.core_type = #tpu.core_type<tc>, window_params = [{transform_indices = @transform_0, window_bounds = array<i64: 1, 336, 84>}, {pipeline_mode = #tpu.pipeline_mode<synchronous>, transform_indices = @transform_1, window_bounds = array<i64: 3, 16, 12>}, {pipeline_mode = #tpu.pipeline_mode<synchronous>, transform_indices = @transform_2, window_bounds = array<i64: 16, 1>}, {pipeline_mode = #tpu.pipeline_mode<synchronous>, transform_indices = @transform_3, window_bounds = array<i64: 3, 32, 48>}, {pipeline_mode = #tpu.pipeline_mode<synchronous>, transform_indices = @transform_4, window_bounds = array<i64: 32, 1>}, {transform_indices = @transform_5, window_bounds = array<i64: 1, 18, 32, 18>}]} {
    %c0 = arith.constant 0 : index
    %c0_0 = arith.constant 0 : index
    %c0_1 = arith.constant 0 : index
    %0 = vector.load %arg2[%c0, %c0_0, %c0_1] : memref<3x16x12xf32, #tpu.memory_space<vmem>>, vector<3x16x12xf32>
    %c0_2 = arith.constant 0 : index
    %c0_3 = arith.constant 0 : index
    %1 = vector.load %arg3[%c0_2, %c0_3] : memref<16x1xf32, #tpu.memory_space<vmem>>, vector<16x1xf32>
    %c0_i32 = arith.constant 0 : i32
    %c82_i32 = arith.constant 82 : i32
    %2 = arith.addi %c0_i32, %c82_i32 : i32
    %c1_i32 = arith.constant 1 : i32
    scf.for %arg10 = %c0_i32 to %2 step %c1_i32  : i32 {
      %c4_i32 = arith.constant 4 : i32
      %22 = arith.muli %arg10, %c4_i32 : i32
      %23 = tpu.assume_multiple %22, 4 : i32
      %c0_20 = arith.constant 0 : index
      %24 = arith.index_cast %23 : i32 to index
      %c0_21 = arith.constant 0 : index
      %25 = vector.load %arg1[%c0_20, %24, %c0_21] : memref<1x336x84xf32, #tpu.memory_space<vmem>>, vector<1x12x84xf32>
      %26 = vector.shape_cast %25 : vector<1x12x84xf32> to vector<12x84xf32>
      %27 = vector.extract_strided_slice %0 {offsets = [0, 0, 0], sizes = [1, 16, 12], strides = [1, 1, 1]} : vector<3x16x12xf32> to vector<1x16x12xf32>
      %28 = vector.shape_cast %27 : vector<1x16x12xf32> to vector<16x12xf32>
      %29 = vector.extract_strided_slice %26 {offsets = [0, 0], sizes = [12, 82], strides = [1, 1]} : vector<12x84xf32> to vector<12x82xf32>
      %cst = arith.constant dense<0.000000e+00> : vector<16x82xf32>
      %30 = tpu.matmul %28, %29, %cst {dimension_numbers = #tpu.dot_dimension_numbers<[1], [0], [0], [1], [0, 0, 1, 1], [], []>} : vector<16x12xf32>, vector<12x82xf32>, vector<16x82xf32> -> vector<16x82xf32>
      %31 = vector.extract_strided_slice %0 {offsets = [1, 0, 0], sizes = [1, 16, 12], strides = [1, 1, 1]} : vector<3x16x12xf32> to vector<1x16x12xf32>
      %32 = vector.shape_cast %31 : vector<1x16x12xf32> to vector<16x12xf32>
      %33 = vector.extract_strided_slice %26 {offsets = [0, 1], sizes = [12, 82], strides = [1, 1]} : vector<12x84xf32> to vector<12x82xf32>
      %cst_22 = arith.constant dense<0.000000e+00> : vector<16x82xf32>
      %34 = tpu.matmul %32, %33, %cst_22 {dimension_numbers = #tpu.dot_dimension_numbers<[1], [0], [0], [1], [0, 0, 1, 1], [], []>} : vector<16x12xf32>, vector<12x82xf32>, vector<16x82xf32> -> vector<16x82xf32>
      %35 = arith.addf %30, %34 : vector<16x82xf32>
      %36 = vector.extract_strided_slice %0 {offsets = [2, 0, 0], sizes = [1, 16, 12], strides = [1, 1, 1]} : vector<3x16x12xf32> to vector<1x16x12xf32>
      %37 = vector.shape_cast %36 : vector<1x16x12xf32> to vector<16x12xf32>
      %38 = vector.extract_strided_slice %26 {offsets = [0, 2], sizes = [12, 82], strides = [1, 1]} : vector<12x84xf32> to vector<12x82xf32>
      %cst_23 = arith.constant dense<0.000000e+00> : vector<16x82xf32>
      %39 = tpu.matmul %37, %38, %cst_23 {dimension_numbers = #tpu.dot_dimension_numbers<[1], [0], [0], [1], [0, 0, 1, 1], [], []>} : vector<16x12xf32>, vector<12x82xf32>, vector<16x82xf32> -> vector<16x82xf32>
      %40 = arith.addf %35, %39 : vector<16x82xf32>
      %41 = vector.broadcast %1 : vector<16x1xf32> to vector<16x82xf32>
      %42 = arith.addf %40, %41 : vector<16x82xf32>
      %cst_24 = arith.constant 0.000000e+00 : f32
      %43 = vector.broadcast %cst_24 : f32 to vector<16x82xf32>
      %44 = arith.maximumf %42, %43 : vector<16x82xf32>
      %c16_i32 = arith.constant 16 : i32
      %45 = arith.muli %arg10, %c16_i32 : i32
      %46 = tpu.assume_multiple %45, 16 : i32
      %47 = arith.index_cast %46 : i32 to index
      %c0_25 = arith.constant 0 : index
      %48 = vector.load %arg7[%47, %c0_25] : memref<1312x82xf32, #tpu.memory_space<vmem>>, vector<16x82xf32>
      tpu.vector_store %arg7[%47, %c0_25], %44 {strides = array<i32>} : memref<1312x82xf32, #tpu.memory_space<vmem>>, vector<16x82xf32>,
    }
    %c82_i32_4 = arith.constant 82 : i32
    %3 = tpu.iota {dimensions = array<i32: 0>} : vector<80x40xi32>
    %4 = tpu.iota {dimensions = array<i32: 1>} : vector<80x40xi32>
    %c2_i32 = arith.constant 2 : i32
    %5 = vector.broadcast %c2_i32 : i32 to vector<80x40xi32>
    %6 = arith.muli %5, %4 : vector<80x40xi32>
    %7 = arith.cmpi eq, %3, %6 : vector<80x40xi32>
    %8 = arith.extui %7 : vector<80x40xi1> to vector<80x40xi32>
    %9 = arith.sitofp %8 : vector<80x40xi32> to vector<80x40xf32>
    %c0_i32_5 = arith.constant 0 : i32
    %c40_i32 = arith.constant 40 : i32
    %10 = arith.addi %c0_i32_5, %c40_i32 : i32
    %c1_i32_6 = arith.constant 1 : i32
    scf.for %arg10 = %c0_i32_5 to %10 step %c1_i32_6  : i32 {
      %c2_i32_20 = arith.constant 2 : i32
      %22 = arith.muli %c2_i32_20, %arg10 : i32
      %c16_i32 = arith.constant 16 : i32
      %23 = arith.muli %22, %c16_i32 : i32
      %24 = tpu.assume_multiple %23, 16 : i32
      %25 = arith.index_cast %24 : i32 to index
      %c0_21 = arith.constant 0 : index
      %26 = vector.load %arg7[%25, %c0_21] : memref<1312x82xf32, #tpu.memory_space<vmem>>, vector<16x82xf32>
      %c2_i32_22 = arith.constant 2 : i32
      %27 = arith.muli %c2_i32_22, %arg10 : i32
      %c1_i32_23 = arith.constant 1 : i32
      %28 = arith.addi %27, %c1_i32_23 : i32
      %c16_i32_24 = arith.constant 16 : i32
      %29 = arith.muli %28, %c16_i32_24 : i32
      %30 = tpu.assume_multiple %29, 16 : i32
      %31 = arith.index_cast %30 : i32 to index
      %c0_25 = arith.constant 0 : index
      %32 = vector.load %arg7[%31, %c0_25] : memref<1312x82xf32, #tpu.memory_space<vmem>>, vector<16x82xf32>
      %c2_i32_26 = arith.constant 2 : i32
      %33 = arith.muli %c2_i32_26, %arg10 : i32
      %c2_i32_27 = arith.constant 2 : i32
      %34 = arith.addi %33, %c2_i32_27 : i32
      %c16_i32_28 = arith.constant 16 : i32
      %35 = arith.muli %34, %c16_i32_28 : i32
      %36 = tpu.assume_multiple %35, 16 : i32
      %37 = arith.index_cast %36 : i32 to index
      %c0_29 = arith.constant 0 : index
      %38 = vector.load %arg7[%37, %c0_29] : memref<1312x82xf32, #tpu.memory_space<vmem>>, vector<16x82xf32>
      %39 = arith.maximumf %26, %32 : vector<16x82xf32>
      %40 = arith.maximumf %39, %38 : vector<16x82xf32>
      %41 = vector.extract_strided_slice %40 {offsets = [0, 0], sizes = [16, 80], strides = [1, 1]} : vector<16x82xf32> to vector<16x80xf32>
      %42 = vector.extract_strided_slice %40 {offsets = [0, 1], sizes = [16, 80], strides = [1, 1]} : vector<16x82xf32> to vector<16x80xf32>
      %43 = arith.maximumf %41, %42 : vector<16x80xf32>
      %44 = vector.extract_strided_slice %40 {offsets = [0, 2], sizes = [16, 80], strides = [1, 1]} : vector<16x82xf32> to vector<16x80xf32>
      %45 = arith.maximumf %43, %44 : vector<16x80xf32>
      %cst = arith.constant dense<0.000000e+00> : vector<16x40xf32>
      %46 = tpu.matmul %45, %9, %cst {dimension_numbers = #tpu.dot_dimension_numbers<[1], [0], [0], [1], [0, 0, 1, 1], [], []>} : vector<16x80xf32>, vector<80x40xf32>, vector<16x40xf32> -> vector<16x40xf32>
      %c16_i32_30 = arith.constant 16 : i32
      %47 = arith.muli %arg10, %c16_i32_30 : i32
      %48 = tpu.assume_multiple %47, 16 : i32
      %49 = arith.index_cast %48 : i32 to index
      %c0_31 = arith.constant 0 : index
      %50 = vector.load %arg8[%49, %c0_31] : memref<640x40xf32, #tpu.memory_space<vmem>>, vector<16x40xf32>
      tpu.vector_store %arg8[%49, %c0_31], %46 {strides = array<i32>} : memref<640x40xf32, #tpu.memory_space<vmem>>, vector<16x40xf32>,
    }
    %c40_i32_7 = arith.constant 40 : i32
    %c0_8 = arith.constant 0 : index
    %c0_9 = arith.constant 0 : index
    %c0_10 = arith.constant 0 : index
    %11 = vector.load %arg4[%c0_8, %c0_9, %c0_10] : memref<3x32x48xf32, #tpu.memory_space<vmem>>, vector<3x32x48xf32>
    %c0_11 = arith.constant 0 : index
    %c0_12 = arith.constant 0 : index
    %12 = vector.load %arg5[%c0_11, %c0_12] : memref<32x1xf32, #tpu.memory_space<vmem>>, vector<32x1xf32>
    %c0_i32_13 = arith.constant 0 : i32
    %c38_i32 = arith.constant 38 : i32
    %13 = arith.addi %c0_i32_13, %c38_i32 : i32
    %c1_i32_14 = arith.constant 1 : i32
    scf.for %arg10 = %c0_i32_13 to %13 step %c1_i32_14  : i32 {
      %c16_i32 = arith.constant 16 : i32
      %22 = arith.muli %arg10, %c16_i32 : i32
      %23 = tpu.assume_multiple %22, 16 : i32
      %24 = arith.index_cast %23 : i32 to index
      %c0_20 = arith.constant 0 : index
      %25 = vector.load %arg8[%24, %c0_20] : memref<640x40xf32, #tpu.memory_space<vmem>>, vector<48x40xf32>
      %26 = vector.extract_strided_slice %11 {offsets = [0, 0, 0], sizes = [1, 32, 48], strides = [1, 1, 1]} : vector<3x32x48xf32> to vector<1x32x48xf32>
      %27 = vector.shape_cast %26 : vector<1x32x48xf32> to vector<32x48xf32>
      %28 = vector.extract_strided_slice %25 {offsets = [0, 0], sizes = [48, 38], strides = [1, 1]} : vector<48x40xf32> to vector<48x38xf32>
      %cst = arith.constant dense<0.000000e+00> : vector<32x38xf32>
      %29 = tpu.matmul %27, %28, %cst {dimension_numbers = #tpu.dot_dimension_numbers<[1], [0], [0], [1], [0, 0, 1, 1], [], []>} : vector<32x48xf32>, vector<48x38xf32>, vector<32x38xf32> -> vector<32x38xf32>
      %30 = vector.extract_strided_slice %11 {offsets = [1, 0, 0], sizes = [1, 32, 48], strides = [1, 1, 1]} : vector<3x32x48xf32> to vector<1x32x48xf32>
      %31 = vector.shape_cast %30 : vector<1x32x48xf32> to vector<32x48xf32>
      %32 = vector.extract_strided_slice %25 {offsets = [0, 1], sizes = [48, 38], strides = [1, 1]} : vector<48x40xf32> to vector<48x38xf32>
      %cst_21 = arith.constant dense<0.000000e+00> : vector<32x38xf32>
      %33 = tpu.matmul %31, %32, %cst_21 {dimension_numbers = #tpu.dot_dimension_numbers<[1], [0], [0], [1], [0, 0, 1, 1], [], []>} : vector<32x48xf32>, vector<48x38xf32>, vector<32x38xf32> -> vector<32x38xf32>
      %34 = arith.addf %29, %33 : vector<32x38xf32>
      %35 = vector.extract_strided_slice %11 {offsets = [2, 0, 0], sizes = [1, 32, 48], strides = [1, 1, 1]} : vector<3x32x48xf32> to vector<1x32x48xf32>
      %36 = vector.shape_cast %35 : vector<1x32x48xf32> to vector<32x48xf32>
      %37 = vector.extract_strided_slice %25 {offsets = [0, 2], sizes = [48, 38], strides = [1, 1]} : vector<48x40xf32> to vector<48x38xf32>
      %cst_22 = arith.constant dense<0.000000e+00> : vector<32x38xf32>
      %38 = tpu.matmul %36, %37, %cst_22 {dimension_numbers = #tpu.dot_dimension_numbers<[1], [0], [0], [1], [0, 0, 1, 1], [], []>} : vector<32x48xf32>, vector<48x38xf32>, vector<32x38xf32> -> vector<32x38xf32>
      %39 = arith.addf %34, %38 : vector<32x38xf32>
      %40 = vector.broadcast %12 : vector<32x1xf32> to vector<32x38xf32>
      %41 = arith.addf %39, %40 : vector<32x38xf32>
      %cst_23 = arith.constant 0.000000e+00 : f32
      %42 = vector.broadcast %cst_23 : f32 to vector<32x38xf32>
      %43 = arith.maximumf %41, %42 : vector<32x38xf32>
      %c32_i32 = arith.constant 32 : i32
      %44 = arith.muli %arg10, %c32_i32 : i32
      %45 = tpu.assume_multiple %44, 32 : i32
      %46 = arith.index_cast %45 : i32 to index
      %c0_24 = arith.constant 0 : index
      %47 = vector.load %arg9[%46, %c0_24] : memref<1216x38xf32, #tpu.memory_space<vmem>>, vector<32x38xf32>
      tpu.vector_store %arg9[%46, %c0_24], %43 {strides = array<i32>} : memref<1216x38xf32, #tpu.memory_space<vmem>>, vector<32x38xf32>,
    }
    %c38_i32_15 = arith.constant 38 : i32
    %14 = tpu.iota {dimensions = array<i32: 0>} : vector<36x18xi32>
    %15 = tpu.iota {dimensions = array<i32: 1>} : vector<36x18xi32>
    %c2_i32_16 = arith.constant 2 : i32
    %16 = vector.broadcast %c2_i32_16 : i32 to vector<36x18xi32>
    %17 = arith.muli %16, %15 : vector<36x18xi32>
    %18 = arith.cmpi eq, %14, %17 : vector<36x18xi32>
    %19 = arith.extui %18 : vector<36x18xi1> to vector<36x18xi32>
    %20 = arith.sitofp %19 : vector<36x18xi32> to vector<36x18xf32>
    %c0_i32_17 = arith.constant 0 : i32
    %c18_i32 = arith.constant 18 : i32
    %21 = arith.addi %c0_i32_17, %c18_i32 : i32
    %c1_i32_18 = arith.constant 1 : i32
    scf.for %arg10 = %c0_i32_17 to %21 step %c1_i32_18  : i32 {
      %c2_i32_20 = arith.constant 2 : i32
      %22 = arith.muli %c2_i32_20, %arg10 : i32
      %c32_i32 = arith.constant 32 : i32
      %23 = arith.muli %22, %c32_i32 : i32
      %24 = tpu.assume_multiple %23, 32 : i32
      %25 = arith.index_cast %24 : i32 to index
      %c0_21 = arith.constant 0 : index
      %26 = vector.load %arg9[%25, %c0_21] : memref<1216x38xf32, #tpu.memory_space<vmem>>, vector<32x38xf32>
      %c2_i32_22 = arith.constant 2 : i32
      %27 = arith.muli %c2_i32_22, %arg10 : i32
      %c1_i32_23 = arith.constant 1 : i32
      %28 = arith.addi %27, %c1_i32_23 : i32
      %c32_i32_24 = arith.constant 32 : i32
      %29 = arith.muli %28, %c32_i32_24 : i32
      %30 = tpu.assume_multiple %29, 32 : i32
      %31 = arith.index_cast %30 : i32 to index
      %c0_25 = arith.constant 0 : index
      %32 = vector.load %arg9[%31, %c0_25] : memref<1216x38xf32, #tpu.memory_space<vmem>>, vector<32x38xf32>
      %c2_i32_26 = arith.constant 2 : i32
      %33 = arith.muli %c2_i32_26, %arg10 : i32
      %c2_i32_27 = arith.constant 2 : i32
      %34 = arith.addi %33, %c2_i32_27 : i32
      %c32_i32_28 = arith.constant 32 : i32
      %35 = arith.muli %34, %c32_i32_28 : i32
      %36 = tpu.assume_multiple %35, 32 : i32
      %37 = arith.index_cast %36 : i32 to index
      %c0_29 = arith.constant 0 : index
      %38 = vector.load %arg9[%37, %c0_29] : memref<1216x38xf32, #tpu.memory_space<vmem>>, vector<32x38xf32>
      %39 = arith.maximumf %26, %32 : vector<32x38xf32>
      %40 = arith.maximumf %39, %38 : vector<32x38xf32>
      %41 = vector.extract_strided_slice %40 {offsets = [0, 0], sizes = [32, 36], strides = [1, 1]} : vector<32x38xf32> to vector<32x36xf32>
      %42 = vector.extract_strided_slice %40 {offsets = [0, 1], sizes = [32, 36], strides = [1, 1]} : vector<32x38xf32> to vector<32x36xf32>
      %43 = arith.maximumf %41, %42 : vector<32x36xf32>
      %44 = vector.extract_strided_slice %40 {offsets = [0, 2], sizes = [32, 36], strides = [1, 1]} : vector<32x38xf32> to vector<32x36xf32>
      %45 = arith.maximumf %43, %44 : vector<32x36xf32>
      %cst = arith.constant dense<0.000000e+00> : vector<32x18xf32>
      %46 = tpu.matmul %45, %20, %cst {dimension_numbers = #tpu.dot_dimension_numbers<[1], [0], [0], [1], [0, 0, 1, 1], [], []>} : vector<32x36xf32>, vector<36x18xf32>, vector<32x18xf32> -> vector<32x18xf32>
      %c0_30 = arith.constant 0 : index
      %47 = arith.index_cast %arg10 : i32 to index
      %c0_31 = arith.constant 0 : index
      %c0_32 = arith.constant 0 : index
      %48 = vector.load %arg6[%c0_30, %47, %c0_31, %c0_32] : memref<1x18x32x18xf32, #tpu.memory_space<vmem>>, vector<1x1x32x18xf32>
      %49 = vector.shape_cast %48 : vector<1x1x32x18xf32> to vector<32x18xf32>
      %50 = vector.shape_cast %46 : vector<32x18xf32> to vector<1x1x32x18xf32>
      tpu.vector_store %arg6[%c0_30, %47, %c0_31, %c0_32], %50 {strides = array<i32>} : memref<1x18x32x18xf32, #tpu.memory_space<vmem>>, vector<1x1x32x18xf32>,
    }
    %c18_i32_19 = arith.constant 18 : i32
    return
  }
  func.func @transform_0(%arg0: i32) -> (i32, i32, i32) {
    %c0_i32 = arith.constant 0 : i32
    %c0_i32_0 = arith.constant 0 : i32
    %c0_i32_1 = arith.constant 0 : i32
    return %arg0, %c0_i32, %c0_i32_0 : i32, i32, i32
  }
  func.func @transform_1(%arg0: i32) -> (i32, i32, i32) {
    %c0_i32 = arith.constant 0 : i32
    %c0_i32_0 = arith.constant 0 : i32
    %c0_i32_1 = arith.constant 0 : i32
    %c0_i32_2 = arith.constant 0 : i32
    return %c0_i32, %c0_i32_0, %c0_i32_1 : i32, i32, i32
  }
  func.func @transform_2(%arg0: i32) -> (i32, i32) {
    %c0_i32 = arith.constant 0 : i32
    %c0_i32_0 = arith.constant 0 : i32
    %c0_i32_1 = arith.constant 0 : i32
    return %c0_i32, %c0_i32_0 : i32, i32
  }
  func.func @transform_3(%arg0: i32) -> (i32, i32, i32) {
    %c0_i32 = arith.constant 0 : i32
    %c0_i32_0 = arith.constant 0 : i32
    %c0_i32_1 = arith.constant 0 : i32
    %c0_i32_2 = arith.constant 0 : i32
    return %c0_i32, %c0_i32_0, %c0_i32_1 : i32, i32, i32
  }
  func.func @transform_4(%arg0: i32) -> (i32, i32) {
    %c0_i32 = arith.constant 0 : i32
    %c0_i32_0 = arith.constant 0 : i32
    %c0_i32_1 = arith.constant 0 : i32
    return %c0_i32, %c0_i32_0 : i32, i32
  }
  func.func @transform_5(%arg0: i32) -> (i32, i32, i32, i32) {
    %c0_i32 = arith.constant 0 : i32
    %c0_i32_0 = arith.constant 0 : i32
    %c0_i32_1 = arith.constant 0 : i32
    %c0_i32_2 = arith.constant 0 : i32
    return %arg0, %c0_i32, %c0_i32_0, %c0_i32_1 : i32, i32, i32, i32
  }
}

module attributes {stable_mosaic.version = 11 : i64} {
  func.func @_mlp_kernel(%arg0: memref<2x10368xf32, #tpu.memory_space<vmem>>, %arg1: memref<10368x32xf32, #tpu.memory_space<vmem>>, %arg2: memref<1x32xf32, #tpu.memory_space<vmem>>, %arg3: memref<32x6xf32, #tpu.memory_space<vmem>>, %arg4: memref<1x6xf32, #tpu.memory_space<vmem>>, %arg5: memref<2x6xf32, #tpu.memory_space<vmem>>) attributes {dimension_semantics = [], scalar_prefetch = 0 : i64, scratch_operands = 0 : i64, tpu.core_type = #tpu.core_type<tc>} {
    %c0 = arith.constant 0 : index
    %c0_0 = arith.constant 0 : index
    %0 = vector.load %arg0[%c0, %c0_0] : memref<2x10368xf32, #tpu.memory_space<vmem>>, vector<2x10368xf32>
    %c0_1 = arith.constant 0 : index
    %c0_2 = arith.constant 0 : index
    %1 = vector.load %arg1[%c0_1, %c0_2] : memref<10368x32xf32, #tpu.memory_space<vmem>>, vector<10368x32xf32>
    %cst = arith.constant dense<0.000000e+00> : vector<2x32xf32>
    %2 = tpu.matmul %0, %1, %cst {dimension_numbers = #tpu.dot_dimension_numbers<[1], [0], [0], [1], [0, 0, 1, 1], [], []>} : vector<2x10368xf32>, vector<10368x32xf32>, vector<2x32xf32> -> vector<2x32xf32>
    %c0_3 = arith.constant 0 : index
    %c0_4 = arith.constant 0 : index
    %3 = vector.load %arg2[%c0_3, %c0_4] : memref<1x32xf32, #tpu.memory_space<vmem>>, vector<1x32xf32>
    %4 = vector.broadcast %3 : vector<1x32xf32> to vector<2x32xf32>
    %5 = arith.addf %2, %4 : vector<2x32xf32>
    %cst_5 = arith.constant 0.000000e+00 : f32
    %6 = vector.broadcast %cst_5 : f32 to vector<2x32xf32>
    %7 = arith.maximumf %5, %6 : vector<2x32xf32>
    %c0_6 = arith.constant 0 : index
    %c0_7 = arith.constant 0 : index
    %8 = vector.load %arg3[%c0_6, %c0_7] : memref<32x6xf32, #tpu.memory_space<vmem>>, vector<32x6xf32>
    %cst_8 = arith.constant dense<0.000000e+00> : vector<2x6xf32>
    %9 = tpu.matmul %7, %8, %cst_8 {dimension_numbers = #tpu.dot_dimension_numbers<[1], [0], [0], [1], [0, 0, 1, 1], [], []>} : vector<2x32xf32>, vector<32x6xf32>, vector<2x6xf32> -> vector<2x6xf32>
    %c0_9 = arith.constant 0 : index
    %c0_10 = arith.constant 0 : index
    %10 = vector.load %arg4[%c0_9, %c0_10] : memref<1x6xf32, #tpu.memory_space<vmem>>, vector<1x6xf32>
    %11 = vector.broadcast %10 : vector<1x6xf32> to vector<2x6xf32>
    %12 = arith.addf %9, %11 : vector<2x6xf32>
    %c0_11 = arith.constant 0 : index
    %c0_12 = arith.constant 0 : index
    %13 = vector.load %arg5[%c0_11, %c0_12] : memref<2x6xf32, #tpu.memory_space<vmem>>, vector<2x6xf32>
    tpu.vector_store %arg5[%c0_11, %c0_12], %12 {strides = array<i32>} : memref<2x6xf32, #tpu.memory_space<vmem>>, vector<2x6xf32>,
    return
  }
}

</mosaic_0001>

<bundles_post_ra>
// kernel: qnetwork_forward.2
= control target key start
LH: loop header
LB: loop body
LE: loop exit
PB: predicated region body
PF: predicated region fallthrough
CT: control target
= control target key end

     0   :  { %10 = vsyncpa [#allocation6], 0  ;;  %s2708_s0 = inlined_call_operand.hbm [shape: f32[2,336,84], index: 0, kind: input, shape index: {}]   ;;  %s2709_s1 = inlined_call_operand.hbm [shape: f32[3,16,12], index: 1, kind: input, shape index: {}]   ;;  %s2710_s2 = inlined_call_operand.vmem [shape: f32[16,1], index: 2, kind: input, shape index: {}]   ;;  %s2711_s3 = inlined_call_operand.hbm [shape: f32[3,32,48], index: 3, kind: input, shape index: {}]   ;;  %s2712_s4 = inlined_call_operand.vmem [shape: f32[32,1], index: 4, kind: input, shape index: {}]   ;;  %s2713_s5 = inlined_call_operand.vmem [shape: f32[2,18,32,18], index: 5, kind: output, shape index: {}]  }
   0x1   :  { %12 = vsyncpa [#allocation6 + $0x1], 0 }
   0x2   :  { %13 = vsyncpa [#allocation8], 0  ;;  %s2213_s18 = smov 0   ;;  %s2215_s19 = smov 0  }
   0x3   :  { %s2217_s20 = smov 0   ;;  %s2219_s21 = smov 0  }
   0x4 LB: > { %s2232_s22 = sadd.s32 4294967295, %s2146_s21   ;;  %p39_p0 = scmp.ne.s32.totalorder %s2138_s19, %s2134_s18  ;;  %s2146_s21 = sphi %s2219_s21, %s2737_s21   ;;  %s2142_s20 = sphi %s2217_s20, %s2736_s20   ;;  %s2138_s19 = sphi %s2215_s19, %s2735_s19   ;;  %s2134_s18 = sphi %s2213_s18, %s2734_s18  }
   0x5   : > { %p2714_p1 = scmp.eq.s32.totalorder %s2232_s22, 0  ;;  %p1472_p2 = scmp.ge.s32.totalorder %s2146_s21, 1 }
   0x6   : > { %p160_p3 = scmp.lt.s32.totalorder %s2146_s21, 3  ;;  %s2164_s25 = smov [#allocation7]  }
   0x7   : > { %p2240_p4 = por %p2714_p1, %p39_p0  ;;  %s172_s26 = sshll.u32 %s2164_s25, 4  ;;  %s173_s26 = int_to_ptr.vmem [resolvable:$true] %s172_s26 }
   0x8   : > { %p2244_p5 = pnand %p1472_p2, %p160_p3  ;;  %s2165_s28 = smov [#allocation9]  }
   0x9   : > { %s2717_s23 = scalar_select %p2240_p4, 1, 0 }
   0xa   : > { %s2718_s24 = scalar_select %p2244_p5, 1, 0 }
   0xb   : > { %p1864_p6 = pneg %p2244_p5  ;;  %s188_s29 = sshll.u32 %s2165_s28, 4  ;;  %s2256_s29 = int_to_ptr.vmem [resolvable:$true] %s188_s29 }
   0xc   : > { %s2006_s7 = scalar_lea.hbm %s2709_s1, 768 }
   0xd   : > { %p2252_p7 = pnand %p1864_p6, %p2714_p1  ;;  %p2007_p8 = scmp.ne.s32.totalorder %s2709_s1, %s2006_s7 }
   0xe   : > { %p2013_p12 = scmp.lt.u32.totalorder %s2006_s7, %s2709_s1 }
   0xf   : > { %p2008_p9 = pneg %p2252_p7 }
  0x11   : > { %p2009_p10 = pnand %p2008_p9, %p2007_p8 }
  0x13   : > { %p2010_p11 = pneg %p2009_p10 }
  0x15   : > { %p2015_p13 = pnand %p2013_p12, %p2010_p11 }
  0x17   : > { %2018 = shalt.err (!%p2015_p13)
}
  0x18   : > { %s2019_s12 = scalar_lea.vmem %s173_s26, 768  ;;  %p2027_p6 = scmp.lt.s32.totalorder %s173_s26, %s173_s26 }
  0x19   : > { %p2020_p0 = scmp.ne.s32.totalorder %s173_s26, %s2019_s12  ;;  %p2028_p1 = scmp.lt.s32.totalorder %s2019_s12, %s2019_s12 }
  0x1b   : > { %p2022_p2 = pnand %p2020_p0, %p2008_p9  ;;  %p2029_p4 = por %p2028_p1, %p2027_p6 }
  0x1d   : > { %p2023_p3 = pneg %p2022_p2 }
  0x1f   : > { %p2030_p5 = pnand %p2029_p4, %p2023_p3 }
  0x21   : > { %2033 = shalt.err (!%p2030_p5)
}
  0x22   : > { %s2166_s13 = smov 128   ;;  %s2167_s14 = smov 8  }
  0x23   : > { %1867 = dma.hbm_to_vmem [thread:$0]  (!%p2252_p7), %s2709_s1, 768, %s173_s26, [#allocation8], %s2166_s13, %s2166_s13, %s2167_s14  }
  0x24   : > { %s2034_s25 = scalar_lea.hbm %s2711_s3, 1536 }
  0x25   : > { %p2035_p1 = scmp.ne.s32.totalorder %s2711_s3, %s2034_s25  ;;  %p2041_p8 = scmp.lt.u32.totalorder %s2034_s25, %s2711_s3 }
  0x27   : > { %p2037_p4 = pnand %p2035_p1, %p2008_p9 }
  0x29   : > { %p2038_p5 = pneg %p2037_p4 }
  0x2b   : > { %p2043_p10 = pnand %p2041_p8, %p2038_p5 }
  0x2d   : > { %2046 = shalt.err (!%p2043_p10)
}
  0x2e   : > { %s2047_s26 = scalar_lea.vmem %s2256_s29, 1536  ;;  %p2055_p0 = scmp.lt.s32.totalorder %s2256_s29, %s2256_s29 }
  0x2f   : > { %p2048_p11 = scmp.ne.s32.totalorder %s2256_s29, %s2047_s26  ;;  %p2056_p2 = scmp.lt.s32.totalorder %s2047_s26, %s2047_s26 }
  0x31   : > { %p2050_p12 = pnand %p2048_p11, %p2008_p9  ;;  %p2057_p3 = por %p2056_p2, %p2055_p0 }
  0x33   : > { %p2051_p13 = pneg %p2050_p12 }
  0x35   : > { %p2058_p6 = pnand %p2057_p3, %p2051_p13 }
  0x37   : > { %2061 = shalt.err (!%p2058_p6)
}
  0x38   : > { %1870 = dma.hbm_to_vmem [thread:$0]  (!%p2252_p7), %s2711_s3, 1536, %s2256_s29, [#allocation8], %s2166_s13, %s2166_s13, %s2167_s14  }
  0x39   : > { %s2312_s10 = sadd.s32 1, %s2146_s21   ;;  %s26_s27 = sadd.s32 1, %s2142_s20 }
  0x3a   : > { %s23_s11 = ssub.s32 %s2146_s21, %s2312_s10  ;;  %p33_p9 = scmp.ne.s32.totalorder %s2142_s20, %s2138_s19 }
  0x3b   : > { %p24_p1 = scmp.eq.s32.totalorder %s23_s11, 0  ;;  %p34_p4 = scmp.eq.s32.totalorder %s2146_s21, 0 }
  0x3c   : > { %p1877_p5 = scmp.lt.s32.totalorder %s2146_s21, 2  ;;  %s205_s12 = sand.u32 1, %s2142_s20  }
  0x3d   : > { %s2323_s15 = scalar_select %p24_p1, %s2142_s20, %s26_s27  }
  0x3e   : > { %p35_p8 = por %p34_p4, %p33_p9  ;;  %s1850_s16 = smul.u32 336, %s205_s12 }
  0x3f   : > { %s1851_s17 = smul.u32 5376, %s2146_s21  ;;  %s2337_s21 = scalar_lea.sflag [#allocation6], %s205_s12 }
  0x40   : > { %p2326_p10 = pnand %p1877_p5, %p35_p8  ;;  %s209_s30 = scalar_lea.vmem [#allocation5], %s1850_s16 }
  0x41   : > { %s2333_s28 = scalar_lea.hbm %s2708_s0, %s1851_s17  ;;  %s216_s6 = sshll.u32 %s209_s30, 4  ;;  %s2335_s6 = int_to_ptr.vmem [resolvable:$true] %s216_s6 }
  0x42   : > { %s2062_s7 = scalar_lea.hbm %s2333_s28, 5376  ;;  %p2064_p11 = pneg %p2326_p10 }
  0x43   : > { %p2063_p7 = scmp.ne.s32.totalorder %s2333_s28, %s2062_s7  ;;  %s2067_s9 = scalar_lea.hbm %s2708_s0, 10752 }
  0x44   : > { %p2068_p0 = scmp.lt.u32.totalorder %s2333_s28, %s2708_s0  ;;  %p2069_p2 = scmp.lt.u32.totalorder %s2067_s9, %s2062_s7 }
  0x45   : > { %p2065_p12 = pnand %p2064_p11, %p2063_p7  ;;  %p2071_p6 = scmp.lt.u32.totalorder %s2062_s7, %s2333_s28 }
  0x46   : > { %p2070_p3 = por %p2069_p2, %p2068_p0 }
  0x47   : > { %p2066_p13 = pneg %p2065_p12 }
  0x48   : > { %p2072_p9 = por %p2071_p6, %p2070_p3 }
  0x4a   : > { %p2073_p1 = pnand %p2072_p9, %p2066_p13 }
  0x4c   : > { %2076 = shalt.err (!%p2073_p1)
}
  0x4d   : > { %s2077_s12 = scalar_lea.vmem %s2335_s6, 5376  ;;  %s2168_s16 = smov [#allocation5]  }
  0x4e   : > { %p2078_p4 = scmp.ne.s32.totalorder %s2335_s6, %s2077_s12  ;;  %s2082_s17 = sshll.u32 %s2168_s16, 4  ;;  %s2083_s17 = int_to_ptr.vmem [resolvable:$false] %s2082_s17 }
  0x4f   : > { %s2084_s29 = scalar_lea.vmem %s2083_s17, 10752  ;;  %p2085_p7 = scmp.lt.s32.totalorder %s2335_s6, %s2083_s17 }
  0x50   : > { %p2080_p5 = pnand %p2078_p4, %p2064_p11  ;;  %p2086_p12 = scmp.lt.s32.totalorder %s2084_s29, %s2077_s12 }
  0x52   : > { %p2081_p8 = pneg %p2080_p5  ;;  %p2087_p0 = por %p2086_p12, %p2085_p7 }
  0x54   : > { %p2088_p2 = pnand %p2087_p0, %p2081_p8 }
  0x56   : > { %2091 = shalt.err (!%p2088_p2)
}
  0x57   : > { %1874 = dma.hbm_to_vmem [thread:$0]  (!%p2326_p10), %s2333_s28, 5376, %s2335_s6, %s2337_s21, %s2166_s13, %s2166_s13, %s2167_s14  }
  0x58   : > { %p2721_p11 = scmp.ne.s32.totalorder %s2718_s24, 0 }
  0x59   : > { %s230_s25 = sand.u32 (!%p2721_p11), 1, %s2138_s19   ;;  %p2722_p13 = scmp.ne.s32.totalorder (!%p2721_p11), %s2717_s23, 0 }
  0x5a   : > { %228 = sbr.rel (%p2721_p11) target bundleno = 1535 (0x5ff), region = 40  ;;  %s231_s7 = scalar_lea.sflag (!%p2721_p11), [#allocation6], %s230_s25 }
  0x5b   : > { %s2371_s30 = smul.u32 (!%p2721_p11), 336, %s230_s25 }
  0x5d   : > { %s234_s26 = scalar_lea.vmem (!%p2721_p11), [#allocation5], %s2371_s30 }
  0x61   : > { %2125 = dma.done.wait (%p2722_p13), %s231_s7, 5376  }
  0x62   : > { %2127 = vsyncadd (%p2722_p13), %s231_s7, 4294961920  ;;  %p2723_p3 = scmp.eq.s32.totalorder %s2232_s22, 0 }
  0x64   : > { %2129 = dma.done.wait (%p2723_p3), [#allocation8], 2304   ;;  %p2724_p10 = pmov %p2723_p3 }
  0x65   : > { %p269_p6 = scmp.lt.s32.totalorder %s2232_s22, 1  ;;  %v2389_v0 = vld [vmem:[#allocation7] sm:$0xff]  ;;  %v2391_v1 = vld [vmem:[#allocation7 + $0x8] sm:$0xff]  ;;  %v2393_v2 = vld [vmem:[#allocation7 + $0x10] sm:$0xff]  ;;  %s2411_s21 = smov 0  }
  0x66   : > { %2131 = vsyncadd (%p2724_p10), [#allocation8], 4294964992  ;;  %v2395_v3 = vld [vmem:[#allocation7 + $0x18] sm:$0xff]  ;;  %v2397_v4 = vld [vmem:[#allocation7 + $0x20] sm:$0xff] }
  0x67   : > { %s2739_s22 = smov (!%p269_p6, %s2232_s22), 1  ;;  %v2399_v5 = vld [vmem:[#allocation7 + $0x28] sm:$0xff]  ;;  %v2404_v6 = vld [vmem:[%s2710_s2] sm:$0xff] }
  0x68   : > { %s1853_s24 = smul.u32 576, %s2739_s22  ;;  %v2409_v7 = vld [vmem:[%s2710_s2 + $0x8] sm:$0xff] }
  0x6a   : > { %s2387_s18 = scalar_lea.vmem %s2713_s5, %s1853_s24 }
  0x6b LB: >> { %vm299_vm0 = vcmask 97280   ;;  %vm306_vm1 = vcmask 1043456   ;;  %s1481_s8 = sshll.u32 %s2150_s21, 2  ;;  %vm2169_vm2 = vmmov 1   ;;  %s2170_s27 = smov 127   ;;  %v2171_v13 = vmov 0   ;;  %s2150_s21 = sphi %s2411_s21, %s287_s21  }
  0x6c   : >> { %1641 = vmatprep.mubr.msk.f32.mxu0 %vm299_vm0, %v2389_v0  ;;  %1634 = vmatprep.mubr.msk.f32.mxu1 %vm299_vm0, %v2393_v2  ;;  %s289_s9 = scalar_lea.vmem %s234_s26, %s1481_s8 [#allocation5]  ;;  %vm2424_vm3 = vmpackc.low %vm306_vm1, %vm2169_vm2  ;;  %s2172_s11 = smov 126   ;;  %vm573_vm4 = vcmask 670720  }
  0x6d   : >> { %v290_v8 = vld [vmem:[%s289_s9] sm:$0xff]  ;;  %v291_v9 = vld [vmem:[%s289_s9 + $0x8] sm:$0xf]  ;;  %1972 = vset.pattern.permute.xlu1 %v2171_v13  ;;  %1973 = vset.pattern.permute.xlu0 %v2171_v13  ;;  %s1491_s12 = sshll.u32 %s2150_s21, 4  ;;  %s287_s21 = sadd.s32 1, %s2150_s21  }
  0x6e   : >> { %v1962_v11 = vpack.i.bf16 %v291_v9, %v290_v8  ;;  %v1750_v12 = vpack.c.bf16 %v291_v9, %v290_v8  ;;  %559 = vperm.xlu1 %1972, %v2404_v6   ;;  %s572_s16 = scalar_lea.vmem [#allocation2], %s1491_s12  ;;  %p284_p9 = scmp.ge.s32.totalorder %s287_s21, 82  }
  0x6f   : > { %v576_v34 = vlaneseq (%p284_p9)  ;;  %v2173_v47 = vmov (%p284_p9), 0.0   ;;  %s2510_s17 = smov (%p284_p9), 0  }
  0x70   : >> { %1963 = vrot.lane.b32.xlu0 %v1962_v11, %s2170_s27  ;;  %1752 = vmatprep.subr.msk.bf16.mxu0 %vm2424_vm3, %v1750_v12 }
  0x71   : >> { %1755 = vmatpush3.bf16.msk.msra.mxu0 %vm2424_vm3, %v1750_v12  ;;  %v2454_v35 = vshrl.u32 (%p284_p9), %v576_v34, 7  ;;  %v588_v36 = vand.u32 (%p284_p9), 127, %v576_v34 }
  0x72   : >> { %564 = vperm.xlu1 %1972, %v2409_v7  }
  0x73   : > { %v2457_v37 = vadd.s32 (%p284_p9), 8, %v2454_v35  ;;  %v2460_v38 = vadd.s32 (%p284_p9), 16, %v2454_v35  ;;  %v2463_v39 = vadd.s32 (%p284_p9), 24, %v2454_v35  ;;  %v2466_v40 = vadd.s32 (%p284_p9), 32, %v2454_v35 }
  0x74   : >> { %1968 = vrot.lane.b32.xlu0 %v1962_v11, %s2172_s11  ;;  %1642 = vmatmul.mubr.msk.f32.vlgmr.msra.gmra.mrb[0].mxu0 %vm299_vm0, %v2391_v1  ;;  %v2469_v41 = vadd.s32 (%p284_p9), 40, %v2454_v35  ;;  %v2472_v42 = vadd.s32 (%p284_p9), 48, %v2454_v35  ;;  %v2475_v43 = vadd.s32 (%p284_p9), 56, %v2454_v35  ;;  %v2478_v44 = vadd.s32 (%p284_p9), 64, %v2454_v35 }
  0x75   : >> { %1648 = vmatprep.mubr.msk.f32.mxu0 %vm299_vm0, %v2397_v4  ;;  %v2481_v45 = vadd.s32 (%p284_p9), 72, %v2454_v35  ;;  %v2483_v46 = vmul.u32 (%p284_p9), 2, %v588_v36 }
  0x77   : > { %vm591_vm6 = vcmp.eq.s32.totalorder (%p284_p9), %v2457_v37, %v2483_v46  ;;  %vm592_vm7 = vcmp.eq.s32.totalorder (%p284_p9), %v2460_v38, %v2483_v46  ;;  %vm593_vm8 = vcmp.eq.s32.totalorder (%p284_p9), %v2463_v39, %v2483_v46  ;;  %vm594_vm9 = vcmp.eq.s32.totalorder (%p284_p9), %v2466_v40, %v2483_v46 }
  0x78   : > { %vm595_vm10 = vcmp.eq.s32.totalorder (%p284_p9), %v2469_v41, %v2483_v46  ;;  %vm596_vm11 = vcmp.eq.s32.totalorder (%p284_p9), %v2472_v42, %v2483_v46  ;;  %vm597_vm12 = vcmp.eq.s32.totalorder (%p284_p9), %v2475_v43, %v2483_v46  ;;  %vm598_vm13 = vcmp.eq.s32.totalorder (%p284_p9), %v2478_v44, %v2483_v46 }
  0x79   : > { %vm599_vm14 = vcmp.eq.s32.totalorder (%p284_p9), %v2481_v45, %v2483_v46  ;;  %v2508_v48 = vsel (%p284_p9), %vm594_vm9, 1.0, %v2173_v47 }
  0xe2   : >> { %v1964_v14 = vpop.permute.xlu0 %1963 }
  0xe3   : >> { %v1966_v15 = vunpack.i.h.bf16 %v1964_v14  ;;  %v1965_v16 = vunpack.i.l.bf16 %v1964_v14 }
  0xe5   : >> { %v1744_v17 = vpack.c.bf16 %v1966_v15, %v1965_v16 }
  0xe6   : >> { %v1969_v18 = vpop.permute.xlu0 %1968 }
  0xe7   : >> { %v1971_v19 = vunpack.i.h.bf16 %v1969_v18  ;;  %v1970_v20 = vunpack.i.l.bf16 %v1969_v18  ;;  %1746 = vmatprep.subr.msk.bf16.mxu1 %vm2424_vm3, %v1744_v17 }
  0xe8   : >> { %1749 = vmatpush3.bf16.msk.msra.mxu1 %vm2424_vm3, %v1744_v17 }
  0xe9   : >> { %v1756_v21 = vpack.c.bf16 %v1971_v19, %v1970_v20 }
  0xeb   : >> { %1758 = vmatprep.subr.msk.bf16.mxu0 %vm2424_vm3, %v1756_v21  ;;  %1635 = vmatmul.mubr.msk.f32.vlgmr.msra.gmra.mrb[0].mxu1 %vm299_vm0, %v2395_v3 }
  0xec   : >> { %1761 = vmatpush3.bf16.msk.msra.mxu0 %vm2424_vm3, %v1756_v21 }
  0xed   : >> { %v560_v22 = vpop.permute.xlu1 %559 }
  0xef   : >> { %1649 = vmatmul.mubr.msk.f32.vlgmr.msra.gmra.mrb[0].mxu0 %vm299_vm0, %v2399_v5 }
  0xf1   : >> { %v565_v29 = vpop.permute.xlu1 %564 }
 0x1be   : >> { %v1636_v23 = vpop.f32.mrb[0].mxu1 }
 0x1bf   : >> { %v375_v24 = vpop.f32.mrb[1].mxu1 }
 0x1c2   : >> { %v1650_v25 = vpop.f32.mrb[0].mxu0 }
 0x1c3   : >> { %v1826_v26 = vadd.f32 %v1650_v25, %v1636_v23  ;;  %v546_v27 = vpop.f32.mrb[1].mxu0 }
 0x1c4   : >> { %v1827_v28 = vadd.f32 %v546_v27, %v375_v24  ;;  %286 = sbr.rel (!%p284_p9) target bundleno = 107 (0x6b), region = 128 }
 0x1c5   : >> { %v568_v30 = vadd.f32 %v1826_v26, %v565_v29 }
 0x1c6   : >> { %v567_v31 = vadd.f32 %v1827_v28, %v560_v22 }
 0x1c7   : >> { %v570_v32 = vmax.f32 %v568_v30, 0.0 }
 0x1c8   : >> { %v569_v33 = vmax.f32 %v567_v31, 0.0 }
 0x1c9   : >> { %575 = vst.msk [vmem:[%s572_s16 + $0x8] sm:$0xff] %vm573_vm4, %v570_v32 }
 0x1ca   : >> { %574 = vst.msk [vmem:[%s572_s16] sm:$0xff] %vm573_vm4, %v569_v33 }
 0x1cb LB: >> { %vm2727_vm5 = vcmp.eq.s32.totalorder %v2454_v35, %v2483_v46  ;;  %v2174_v50 = vmov 1.0|1.0   ;;  %vm2533_vm0 = vmpackc.low %vm593_vm8, %vm592_vm7  ;;  %s1502_s29 = sshll.u32 %s2154_s17, 5  ;;  %s2175_s30 = smov 127   ;;  %s2154_s17 = sphi %s2510_s17, %s625_s17  }
 0x1cc   : >> { %vm2521_vm15 = vmpackc.low %vm591_vm6, %vm2727_vm5  ;;  %s627_s25 = scalar_lea.vmem [#allocation2], %s1502_s29  ;;  %s2176_s7 = smov 126   ;;  %vm663_vm5 = vcmask 654336  }
 0x1cd   : >> { %1763 = vmatprep.subr.msk.bf16.mxu0 %vm2521_vm15, %v2174_v50  ;;  %vm2548_vm2 = vmpackc.low %vm595_vm10, %vm594_vm9  ;;  %s1523_s26 = sshll.u32 %s2154_s17, 4  ;;  %s625_s17 = sadd.s32 1, %s2154_s17  }
 0x1ce   : >> { %1765 = vmatpush3.bf16.msk.msra.mxu0 %vm2521_vm15, %v2174_v50  ;;  %vm1774_vm3 = vmpackc.low %vm597_vm12, %vm596_vm11  ;;  %s746_s24 = scalar_lea.vmem [#allocation3], %s1523_s26  ;;  %p622_p1 = scmp.ge.s32.totalorder %s625_s17, 40  }
 0x1cf   : >> { %1767 = vmatprep.subr.msk.bf16.mxu0 %vm2533_vm0, %v2174_v50  ;;  %vm1778_vm4 = vmpackc.low %vm599_vm14, %vm598_vm13  ;;  %v2574_v9 = vld [vmem:[#allocation9] sm:$0xff] (%p622_p1)  ;;  %v2576_v10 = vld [vmem:[#allocation9 + $0x8] sm:$0xff] (%p622_p1)  ;;  %s2618_s9 = smov (%p622_p1), 0  }
 0x1d0   : > { %v2578_v11 = vld [vmem:[#allocation9 + $0x10] sm:$0xff] (%p622_p1)  ;;  %v2580_v12 = vld [vmem:[#allocation9 + $0x18] sm:$0xff] (%p622_p1)  ;;  %v2582_v13 = vld [vmem:[#allocation9 + $0x20] sm:$0xff] (%p622_p1) }
 0x1d1   : >> { %v628_v53 = vld [vmem:[%s627_s25] sm:$0xff]  ;;  %v1505_v54 = vld [vmem:[%s627_s25 + $0x10] sm:$0xff]  ;;  %v629_v57 = vld [vmem:[%s627_s25 + $0x8] sm:$0xff] }
 0x1d2   : >> { %v1509_v55 = vld [vmem:[%s627_s25 + $0x20] sm:$0xff]  ;;  %v641_v56 = vmax.f32 %v628_v53, %v1505_v54  ;;  %v1506_v58 = vld [vmem:[%s627_s25 + $0x18] sm:$0xff]  ;;  %v1510_v59 = vld [vmem:[%s627_s25 + $0x28] sm:$0xff]  ;;  %1769 = vmatpush3.bf16.msk.msra.mxu0 %vm2533_vm0, %v2174_v50 }
 0x1d3   : >> { %v642_v60 = vmax.f32 %v629_v57, %v1506_v58  ;;  %1771 = vmatprep.subr.msk.bf16.mxu0 %vm2548_vm2, %v2174_v50  ;;  %v2584_v14 = vld [vmem:[#allocation9 + $0x28] sm:$0xff] (%p622_p1)  ;;  %v2586_v15 = vld [vmem:[#allocation9 + $0x30] sm:$0xff] (%p622_p1)  ;;  %v2588_v16 = vld [vmem:[#allocation9 + $0x38] sm:$0xff] (%p622_p1) }
 0x1d4   : >> { %v643_v61 = vmax.f32 %v641_v56, %v1509_v55  ;;  %v2590_v17 = vld [vmem:[#allocation9 + $0x40] sm:$0xff] (%p622_p1)  ;;  %v2592_v18 = vld [vmem:[#allocation9 + $0x48] sm:$0xff] (%p622_p1)  ;;  %v2594_v19 = vld [vmem:[#allocation9 + $0x50] sm:$0xff] (%p622_p1) }
 0x1d5   : >> { %v644_v62 = vmax.f32 %v642_v60, %v1510_v59  ;;  %v2596_v20 = vld [vmem:[#allocation9 + $0x58] sm:$0xff] (%p622_p1)  ;;  %v2601_v21 = vld [vmem:[%s2712_s4] sm:$0xff] (%p622_p1)  ;;  %v2611_v23 = vld [vmem:[%s2712_s4 + $0x10] sm:$0xff] (%p622_p1) }
 0x1d6   : >> { %647 = vrot.lane.b32.xlu0 %v643_v61, %s2175_s30  ;;  %655 = vrot.lane.b32.xlu1 %v643_v61, %s2176_s7  ;;  %v2606_v22 = vld [vmem:[%s2712_s4 + $0x8] sm:$0xff] (%p622_p1)  ;;  %v2616_v24 = vld [vmem:[%s2712_s4 + $0x18] sm:$0xff] (%p622_p1) }
 0x1d7   : >> { %1773 = vmatpush3.bf16.msk.msra.mxu0 %vm2548_vm2, %v2174_v50  ;;  %vm747_vm2 = vcmask 326656  }
 0x1d8   : >> { %1775 = vmatprep.subr.msk.bf16.mxu0 %vm1774_vm3, %v2174_v50 }
 0x1da   : >> { %649 = vrot.lane.b32.xlu0 %v644_v62, %s2175_s30  ;;  %657 = vrot.lane.b32.xlu1 %v644_v62, %s2176_s7 }
 0x1db   : >> { %1777 = vmatpush3.bf16.msk.msra.mxu0 %vm1774_vm3, %v2174_v50 }
 0x1dc   : >> { %1779 = vmatprep.subr.msk.bf16.mxu0 %vm1778_vm4, %v2174_v50 }
 0x1df   : >> { %1781 = vmatpush3.bf16.msk.msra.mxu0 %vm1778_vm4, %v2174_v50 }
 0x248   : >> { %v648_v63 = vpop.permute.xlu0 %647  ;;  %v656_v0 = vpop.permute.xlu1 %655 }
 0x249   : >> { %v653_v1 = vmax.f32 %v643_v61, %v648_v63 }
 0x24b   : >> { %v661_v2 = vmax.f32 %v653_v1, %v656_v0 }
 0x24c   : >> { %v650_v3 = vpop.permute.xlu0 %649  ;;  %v658_v4 = vpop.permute.xlu1 %657 }
 0x24d   : >> { %v654_v5 = vmax.f32 %v644_v62, %v650_v3  ;;  %1671 = vmatprep.mubr.msk.f32.mxu0 %vm663_vm5, %v661_v2 }
 0x24f   : >> { %v662_v6 = vmax.f32 %v654_v5, %v658_v4 }
 0x251   : >> { %1672 = vmatmul.mubr.msk.f32.vlgmr.msra.gmra.mrb[0].mxu0 %vm663_vm5, %v662_v6 }
 0x320   : > { %624 = sbr.rel (!%p622_p1) target bundleno = 459 (0x1cb), region = 139 }
 0x324   : >> { %v1673_v7 = vpop.f32.mrb[0].mxu0 }
 0x325   : >> { %749 = vst.msk [vmem:[%s746_s24 + $0x8] sm:$0xff] %vm747_vm2, %v1673_v7  ;;  %v736_v8 = vpop.f32.mrb[1].mxu0 }
 0x326   : >> { %748 = vst.msk [vmem:[%s746_s24] sm:$0xff] %vm747_vm2, %v736_v8 }
 0x327 LB: >> { %s1524_s27 = sshll.u32 %s2158_s9, 4  ;;  %vm804_vm5 = vcmask 392192   ;;  %s2177_s12 = smov 127   ;;  %v2179_v37 = vmov 0   ;;  %vm1148_vm6 = vcmask 310272   ;;  %s2158_s9 = sphi %s2618_s9, %s771_s9  }
 0x328   : >> { %1704 = vmatprep.mubr.msk.f32.mxu0 %vm804_vm5, %v2574_v9  ;;  %1686 = vmatprep.mubr.msk.f32.mxu1 %vm804_vm5, %v2582_v13  ;;  %s773_s11 = scalar_lea.vmem [#allocation3], %s1524_s27  ;;  %s2178_s16 = smov 126  }
 0x329   : >> { %2005 = vset.pattern.permute.xlu1 %v2179_v37  ;;  %2004 = vset.pattern.permute.xlu0 %v2179_v37  ;;  %s1537_s17 = sshll.u32 %s2158_s9, 5  ;;  %s771_s9 = sadd.s32 1, %s2158_s9  }
 0x32a   : >> { %s1147_s29 = scalar_lea.vmem [#allocation4], %s1537_s17  ;;  %p768_p4 = scmp.ge.s32.totalorder %s771_s9, 38  }
 0x32b   : > { %s2660_s25 = smov (%p768_p4), 0  }
 0x32d   : >> { %v778_v25 = vld [vmem:[%s773_s11 + $0x20] sm:$0xff]  ;;  %v779_v26 = vld [vmem:[%s773_s11 + $0x28] sm:$0xff]  ;;  %v776_v30 = vld [vmem:[%s773_s11 + $0x10] sm:$0xff] }
 0x32e   : >> { %v774_v27 = vld [vmem:[%s773_s11] sm:$0xff]  ;;  %v1984_v28 = vpack.i.bf16 %v779_v26, %v778_v25  ;;  %v775_v29 = vld [vmem:[%s773_s11 + $0x8] sm:$0xff]  ;;  %v777_v31 = vld [vmem:[%s773_s11 + $0x18] sm:$0xff]  ;;  %v1802_v36 = vpack.c.bf16 %v779_v26, %v778_v25 }
 0x32f   : >> { %v1974_v32 = vpack.i.bf16 %v775_v29, %v774_v27  ;;  %v1794_v33 = vpack.c.bf16 %v775_v29, %v774_v27  ;;  %v1798_v34 = vpack.c.bf16 %v777_v31, %v776_v30  ;;  %v1979_v35 = vpack.i.bf16 %v777_v31, %v776_v30 }
 0x330   : >> { %1985 = vrot.lane.b32.xlu1 %v1984_v28, %s2177_s12 }
 0x331   : >> { %1975 = vrot.lane.b32.xlu0 %v1974_v32, %s2177_s12  ;;  %1795 = vmatprep.subr.bf16.mxu0 %v1794_v33 }
 0x332   : >> { %1797 = vmatpush3.bf16.msra.mxu0 %v1794_v33 }
 0x333   : >> { %1799 = vmatprep.subr.bf16.mxu0 %v1798_v34 }
 0x334   : >> { %1990 = vrot.lane.b32.xlu1 %v1974_v32, %s2178_s16 }
 0x335   : >> { %1980 = vrot.lane.b32.xlu0 %v1979_v35, %s2177_s12 }
 0x336   : >> { %1801 = vmatpush3.bf16.msra.mxu0 %v1798_v34 }
 0x337   : >> { %1803 = vmatprep.subr.bf16.mxu0 %v1802_v36 }
 0x338   : >> { %2000 = vrot.lane.b32.xlu1 %v1984_v28, %s2178_s16 }
 0x339   : >> { %1995 = vrot.lane.b32.xlu0 %v1979_v35, %s2178_s16 }
 0x33a   : >> { %1805 = vmatpush3.bf16.msra.mxu0 %v1802_v36 }
 0x33c   : >> { %1125 = vperm.xlu1 %2005, %v2606_v22  }
 0x33d   : >> { %1705 = vmatmul.mubr.msk.f32.vlgmr.msra.gmra.mrb[0].mxu0 %vm804_vm5, %v2576_v10  ;;  %1120 = vperm.xlu0 %2004, %v2601_v21  }
 0x33e   : >> { %1707 = vmatprep.mubr.msk.f32.mxu0 %vm804_vm5, %v2578_v11 }
 0x340   : >> { %1130 = vperm.xlu1 %2005, %v2611_v23  }
 0x341   : >> { %1708 = vmatmul.mubr.msk.f32.gmra.mrb[2].mxu0 %vm804_vm5, %v2580_v12  ;;  %1135 = vperm.xlu0 %2004, %v2616_v24  }
 0x342   : >> { %1722 = vmatprep.mubr.msk.f32.mxu0 %vm804_vm5, %v2590_v17 }
 0x3a2   : >> { %v1986_v38 = vpop.permute.xlu1 %1985 }
 0x3a3   : >> { %v1976_v39 = vpop.permute.xlu0 %1975  ;;  %v1988_v42 = vunpack.i.h.bf16 %v1986_v38  ;;  %v1987_v43 = vunpack.i.l.bf16 %v1986_v38 }
 0x3a4   : >> { %v1978_v40 = vunpack.i.h.bf16 %v1976_v39  ;;  %v1977_v41 = vunpack.i.l.bf16 %v1976_v39 }
 0x3a5   : >> { %v1790_v55 = vpack.c.bf16 %v1988_v42, %v1987_v43 }
 0x3a6   : >> { %v1991_v44 = vpop.permute.xlu1 %1990  ;;  %v1782_v45 = vpack.c.bf16 %v1978_v40, %v1977_v41 }
 0x3a7   : >> { %v1993_v46 = vunpack.i.h.bf16 %v1991_v44  ;;  %v1992_v47 = vunpack.i.l.bf16 %v1991_v44  ;;  %v1981_v50 = vpop.permute.xlu0 %1980 }
 0x3a8   : >> { %v1983_v52 = vunpack.i.h.bf16 %v1981_v50  ;;  %v1982_v53 = vunpack.i.l.bf16 %v1981_v50  ;;  %1783 = vmatprep.subr.bf16.mxu1 %v1782_v45 }
 0x3a9   : >> { %v1806_v54 = vpack.c.bf16 %v1993_v46, %v1992_v47  ;;  %1785 = vmatpush3.bf16.msra.mxu1 %v1782_v45 }
 0x3aa   : >> { %v1786_v56 = vpack.c.bf16 %v1983_v52, %v1982_v53  ;;  %v2001_v57 = vpop.permute.xlu1 %2000 }
 0x3ab   : >> { %v1996_v58 = vpop.permute.xlu0 %1995  ;;  %1807 = vmatprep.subr.bf16.mxu0 %v1806_v54  ;;  %v2003_v59 = vunpack.i.h.bf16 %v2001_v57  ;;  %v2002_v60 = vunpack.i.l.bf16 %v2001_v57 }
 0x3ac   : >> { %v1998_v61 = vunpack.i.h.bf16 %v1996_v58  ;;  %v1997_v62 = vunpack.i.l.bf16 %v1996_v58  ;;  %1787 = vmatprep.subr.bf16.mxu1 %v1786_v56  ;;  %1809 = vmatpush3.bf16.msra.mxu0 %v1806_v54 }
 0x3ad   : >> { %1789 = vmatpush3.bf16.msra.mxu1 %v1786_v56  ;;  %v1814_v0 = vpack.c.bf16 %v2003_v59, %v2002_v60 }
 0x3ae   : >> { %v1810_v63 = vpack.c.bf16 %v1998_v61, %v1997_v62  ;;  %1791 = vmatprep.subr.bf16.mxu1 %v1790_v55 }
 0x3b0   : >> { %1811 = vmatprep.subr.bf16.mxu0 %v1810_v63 }
 0x3b1   : >> { %1793 = vmatpush3.bf16.msra.mxu1 %v1790_v55  ;;  %1813 = vmatpush3.bf16.msra.mxu0 %v1810_v63 }
 0x3b2   : >> { %1830 = vmatprep.subr.bf16.mxu1 %v1806_v54  ;;  %1815 = vmatprep.subr.bf16.mxu0 %v1814_v0 }
 0x3b4   : >> { %1687 = vmatmul.mubr.msk.f32.vlgmr.msra.gmra.mrb[0].mxu1 %vm804_vm5, %v2584_v14 }
 0x3b5   : >> { %1833 = vmatpush3.bf16.msra.mxu1 %v1806_v54  ;;  %1817 = vmatpush3.bf16.msra.mxu0 %v1814_v0 }
 0x3b6   : >> { %1831 = vmatprep.subr.bf16.mxu1 %v1810_v63  ;;  %1689 = vmatprep.mubr.msk.f32.mxu1 %vm804_vm5, %v2586_v15 }
 0x3b8   : >> { %1723 = vmatmul.mubr.msk.f32.vlgmr.msra.gmra.mrb[0].mxu0 %vm804_vm5, %v2592_v18  ;;  %1690 = vmatmul.mubr.msk.f32.gmra.mrb[2].mxu1 %vm804_vm5, %v2588_v16 }
 0x3b9   : >> { %1834 = vmatpush3.bf16.msra.mxu1 %v1810_v63  ;;  %1725 = vmatprep.mubr.msk.f32.mxu1 %vm804_vm5, %v2594_v19 }
 0x3ba   : >> { %1832 = vmatprep.subr.bf16.mxu1 %v1814_v0 }
 0x3bb   : >> { %v1126_v5 = vpop.permute.xlu1 %1125 }
 0x3bc   : >> { %v1121_v6 = vpop.permute.xlu0 %1120 }
 0x3bd   : >> { %1835 = vmatpush3.bf16.msra.mxu1 %v1814_v0 }
 0x3bf   : >> { %v1131_v40 = vpop.permute.xlu1 %1130 }
 0x3c0   : >> { %1726 = vmatmul.mubr.msk.f32.vlgmr.msra.gmra.mrb[4].mxu1 %vm804_vm5, %v2596_v20  ;;  %v1136_v38 = vpop.permute.xlu0 %1135 }
 0x414   : >> { %v1709_v1 = vpop.f32.mrb[2].mxu0 }
 0x415   : >> { %v990_v2 = vpop.f32.mrb[3].mxu0 }
 0x487   : >> { %v1688_v3 = vpop.f32.mrb[0].mxu1 }
 0x488   : >> { %v883_v4 = vpop.f32.mrb[1].mxu1 }
 0x48b   : >> { %v1724_v7 = vpop.f32.mrb[0].mxu0  ;;  %v1691_v8 = vpop.f32.mrb[2].mxu1 }
 0x48c   : >> { %v1836_v25 = vadd.f32 %v1724_v7, %v1688_v3  ;;  %v1095_v26 = vpop.f32.mrb[1].mxu0  ;;  %v996_v27 = vadd.f32 %v1709_v1, %v1691_v8  ;;  %v893_v28 = vpop.f32.mrb[3].mxu1 }
 0x48d   : >> { %v1837_v29 = vadd.f32 %v1095_v26, %v883_v4  ;;  %v991_v30 = vadd.f32 %v990_v2, %v893_v28 }
 0x48e   : >> { %v1139_v31 = vadd.f32 %v1836_v25, %v1126_v5 }
 0x48f   : >> { %v1138_v32 = vadd.f32 %v1837_v29, %v1121_v6 }
 0x490   : >> { %v1143_v33 = vmax.f32 %v1139_v31, 0.0 }
 0x491   : >> { %v1142_v34 = vmax.f32 %v1138_v32, 0.0 }
 0x492   : >> { %1150 = vst.msk [vmem:[%s1147_s29 + $0x8] sm:$0xff] %vm1148_vm6, %v1143_v33 }
 0x493   : >> { %1149 = vst.msk [vmem:[%s1147_s29] sm:$0xff] %vm1148_vm6, %v1142_v34  ;;  %v1727_v35 = vpop.f32.mrb[4].mxu1 }
 0x494   : >> { %v1117_v36 = vadd.f32 %v1727_v35, %v996_v27  ;;  %v1105_v37 = vpop.f32.mrb[5].mxu1 }
 0x495   : >> { %v1116_v39 = vadd.f32 %v1105_v37, %v991_v30  ;;  %770 = sbr.rel (!%p768_p4) target bundleno = 807 (0x327), region = 150 }
 0x496   : >> { %v1141_v41 = vadd.f32 %v1136_v38, %v1117_v36 }
 0x497   : >> { %v1140_v42 = vadd.f32 %v1131_v40, %v1116_v39 }
 0x498   : >> { %v1145_v43 = vmax.f32 %v1141_v41, 0.0 }
 0x499   : >> { %v1144_v44 = vmax.f32 %v1140_v42, 0.0 }
 0x49a   : >> { %1152 = vst.msk [vmem:[%s1147_s29 + $0x18] sm:$0xff] %vm1148_vm6, %v1145_v43 }
 0x49b   : >> { %1151 = vst.msk [vmem:[%s1147_s29 + $0x10] sm:$0xff] %vm1148_vm6, %v1144_v44 }
 0x49c LB: >> { %v2180_v45 = vmov 1.0|1.0   ;;  %s1538_s30 = sshll.u32 %s2162_s25, 6  ;;  %s2181_s26 = smov 127   ;;  %vm1224_vm7 = vcmask 293888   ;;  %vm1328_vm8 = vcmask 146432   ;;  %s2162_s25 = sphi %s2660_s25, %s1158_s25  }
 0x49d   : >> { %1819 = vmatprep.subr.msk.bf16.mxu0 %vm2521_vm15, %v2180_v45  ;;  %1844 = vmatprep.subr.msk.bf16.mxu1 %vm2521_vm15, %v2180_v45  ;;  %s1160_s7 = scalar_lea.vmem [#allocation4], %s1538_s30  ;;  %s2182_s24 = smov 126  }
 0x49e   : >> { %1821 = vmatpush3.bf16.msk.msra.mxu0 %vm2521_vm15, %v2180_v45  ;;  %1847 = vmatpush3.bf16.msk.msra.mxu1 %vm2521_vm15, %v2180_v45  ;;  %s1560_s13 = sshll.u32 %s2162_s25, 5  ;;  %s1158_s25 = sadd.s32 1, %s2162_s25  }
 0x49f   : >> { %1823 = vmatprep.subr.msk.bf16.mxu0 %vm2533_vm0, %v2180_v45  ;;  %1845 = vmatprep.subr.msk.bf16.mxu1 %vm2533_vm0, %v2180_v45  ;;  %s1327_s14 = scalar_lea.vmem %s2387_s18, %s1560_s13  ;;  %p1155_p5 = scmp.ge.s32.totalorder %s1158_s25, 18  }
 0x4a2   : >> { %v1162_v9 = vld [vmem:[%s1160_s7 + $0x8] sm:$0xff]  ;;  %v1161_v13 = vld [vmem:[%s1160_s7] sm:$0xff]  ;;  %v1164_v17 = vld [vmem:[%s1160_s7 + $0x18] sm:$0xff]  ;;  %1825 = vmatpush3.bf16.msk.msra.mxu0 %vm2533_vm0, %v2180_v45  ;;  %1848 = vmatpush3.bf16.msk.msra.mxu1 %vm2533_vm0, %v2180_v45 }
 0x4a3   : >> { %v1542_v10 = vld [vmem:[%s1160_s7 + $0x28] sm:$0xff]  ;;  %v1541_v14 = vld [vmem:[%s1160_s7 + $0x20] sm:$0xff]  ;;  %v1544_v18 = vld [vmem:[%s1160_s7 + $0x38] sm:$0xff]  ;;  %1736 = vmatprep.subr.msk.mxu0 %vm306_vm1, %v2508_v48  ;;  %1846 = vmatprep.subr.msk.mxu1 %vm306_vm1, %v2508_v48 }
 0x4a4   : >> { %v1548_v11 = vld [vmem:[%s1160_s7 + $0x48] sm:$0xff]  ;;  %v1181_v12 = vmax.f32 %v1162_v9, %v1542_v10  ;;  %v1547_v15 = vld [vmem:[%s1160_s7 + $0x40] sm:$0xff]  ;;  %v1180_v16 = vmax.f32 %v1161_v13, %v1541_v14  ;;  %v1550_v19 = vld [vmem:[%s1160_s7 + $0x58] sm:$0xff]  ;;  %v1183_v21 = vmax.f32 %v1164_v17, %v1544_v18 }
 0x4a5   : >> { %v1163_v22 = vld [vmem:[%s1160_s7 + $0x10] sm:$0xff] }
 0x4a6   : >> { %v1185_v20 = vmax.f32 %v1181_v12, %v1548_v11  ;;  %v1543_v23 = vld [vmem:[%s1160_s7 + $0x30] sm:$0xff]  ;;  %v1184_v46 = vmax.f32 %v1180_v16, %v1547_v15  ;;  %v1187_v50 = vmax.f32 %v1183_v21, %v1550_v19  ;;  %1737 = vmatpush3.msk.msra.mxu0 %vm306_vm1, %v2508_v48  ;;  %1849 = vmatpush3.msk.msra.mxu1 %vm306_vm1, %v2508_v48 }
 0x4a7   : >> { %v1549_v24 = vld [vmem:[%s1160_s7 + $0x50] sm:$0xff]  ;;  %v1182_v47 = vmax.f32 %v1163_v22, %v1543_v23 }
 0x4a8   : >> { %1194 = vrot.lane.b32.xlu1 %v1185_v20, %s2181_s26  ;;  %1192 = vrot.lane.b32.xlu0 %v1184_v46, %s2181_s26 }
 0x4a9   : >> { %v1186_v52 = vmax.f32 %v1182_v47, %v1549_v24 }
 0x4ac   : >> { %1198 = vrot.lane.b32.xlu1 %v1187_v50, %s2181_s26  ;;  %1196 = vrot.lane.b32.xlu0 %v1186_v52, %s2181_s26 }
 0x4b0   : >> { %1212 = vrot.lane.b32.xlu1 %v1186_v52, %s2182_s24  ;;  %1208 = vrot.lane.b32.xlu0 %v1184_v46, %s2182_s24 }
 0x4b4   : >> { %1214 = vrot.lane.b32.xlu1 %v1187_v50, %s2182_s24  ;;  %1210 = vrot.lane.b32.xlu0 %v1185_v20, %s2182_s24 }
 0x51a   : >> { %v1195_v53 = vpop.permute.xlu1 %1194  ;;  %v1193_v54 = vpop.permute.xlu0 %1192 }
 0x51b   : >> { %v1204_v58 = vmax.f32 %v1184_v46, %v1193_v54  ;;  %v1205_v0 = vmax.f32 %v1185_v20, %v1195_v53 }
 0x51e   : >> { %v1199_v55 = vpop.permute.xlu1 %1198  ;;  %v1197_v56 = vpop.permute.xlu0 %1196 }
 0x51f   : >> { %v1206_v57 = vmax.f32 %v1186_v52, %v1197_v56  ;;  %v1207_v63 = vmax.f32 %v1187_v50, %v1199_v55 }
 0x522   : >> { %v1213_v59 = vpop.permute.xlu1 %1212  ;;  %v1209_v61 = vpop.permute.xlu0 %1208 }
 0x523   : >> { %v1222_v60 = vmax.f32 %v1206_v57, %v1213_v59  ;;  %v1220_v62 = vmax.f32 %v1204_v58, %v1209_v61 }
 0x525   : >> { %1741 = vmatprep.mubr.msk.f32.mxu1 %vm1224_vm7, %v1222_v60  ;;  %1738 = vmatprep.mubr.msk.f32.mxu0 %vm1224_vm7, %v1220_v62 }
 0x526   : >> { %v1215_v1 = vpop.permute.xlu1 %1214  ;;  %v1211_v3 = vpop.permute.xlu0 %1210 }
 0x527   : >> { %v1223_v2 = vmax.f32 %v1207_v63, %v1215_v1  ;;  %v1221_v4 = vmax.f32 %v1205_v0, %v1211_v3 }
 0x529   : >> { %1742 = vmatmul.mubr.msk.f32.vlgmr.msra.gmra.mrb[0].mxu1 %vm1224_vm7, %v1223_v2  ;;  %1739 = vmatmul.mubr.msk.f32.vlgmr.msra.gmra.mrb[0].mxu0 %vm1224_vm7, %v1221_v4 }
 0x5f8   : > { %1157 = sbr.rel (!%p1155_p5) target bundleno = 1180 (0x49c), region = 161 }
 0x5fc   : >> { %v1743_v5 = vpop.f32.mrb[0].mxu1  ;;  %v1740_v6 = vpop.f32.mrb[0].mxu0 }
 0x5fd   : >> { %1332 = vst.msk [vmem:[%s1327_s14 + $0x18] sm:$0xff] %vm1328_vm8, %v1743_v5  ;;  %v1317_v7 = vpop.f32.mrb[1].mxu1  ;;  %1330 = vst.msk [vmem:[%s1327_s14 + $0x8] sm:$0xff] %vm1328_vm8, %v1740_v6  ;;  %v1307_v8 = vpop.f32.mrb[1].mxu0 }
 0x5fe   : >> { %1331 = vst.msk [vmem:[%s1327_s14 + $0x10] sm:$0xff] %vm1328_vm8, %v1317_v7  ;;  %1329 = vst.msk [vmem:[%s1327_s14] sm:$0xff] %vm1328_vm8, %v1307_v8 }
 0x5ff PF: > { %p16_p8 = scmp.ge.s32.totalorder %s2312_s10, 4   ;;  %s2734_s18 = smov %s2138_s19 }
 0x600   : > { %s2735_s19 = smov %s2142_s20  ;;  %s2736_s20 = smov %s2323_s15 }
 0x601   : > { %s2737_s21 = smov %s2312_s10  ;;  %18 = sbr.rel (!%p16_p8) target bundleno = 4 (0x4), region = 172 }
 0x608   :  { %1354 = vsyncpa [#allocation6], 1 }
 0x609   :  { %1356 = vsyncpa [#allocation6 + $0x1], 1 }
 0x60a   :  { %1357 = vsyncpa [#allocation8], 1 }

// kernel: qnetwork_forward.3
= control target key start
LH: loop header
LB: loop body
LE: loop exit
PB: predicated region body
PF: predicated region fallthrough
CT: control target
= control target key end

     0   :  { %v7597_v43 = vmov 1983009808   ;;  %v1370_v45 = vlaneseq  ;;  %s11891_s0 = inlined_call_operand.vmem [shape: f32[2,10368], index: 0, kind: input, shape index: {}]   ;;  %s11892_s1 = inlined_call_operand.vmem [shape: f32[10368,32], index: 1, kind: input, shape index: {}]   ;;  %s11893_s2 = inlined_call_operand.vmem [shape: f32[1,32], index: 2, kind: input, shape index: {}]   ;;  %s11894_s3 = inlined_call_operand.vmem [shape: f32[32,6], index: 3, kind: input, shape index: {}]   ;;  %s11895_s4 = inlined_call_operand.vmem [shape: f32[1,6], index: 4, kind: input, shape index: {}]   ;;  %s11896_s5 = inlined_call_operand.hbm [shape: f32[2,6], index: 5, kind: output, shape index: {}]  }
   0x1   :  { %v58_v0 = vld [vmem:[%s11892_s1 + $0x80] sm:$0xff]  ;;  %v59_v1 = vld [vmem:[%s11892_s1 + $0x88] sm:$0xff]  ;;  %v60_v11 = vld [vmem:[%s11892_s1 + $0x90] sm:$0xff]  ;;  %v1368_v44 = vunpack.c.l.s4 %v7597_v43 }
   0x2   :  { %v42_v2 = vld [vmem:[%s11892_s1] sm:$0xff]  ;;  %v6238_v3 = vpack.c.bf16 %v59_v1, %v58_v0  ;;  %v43_v4 = vld [vmem:[%s11892_s1 + $0x8] sm:$0xff]  ;;  %v61_v13 = vld [vmem:[%s11892_s1 + $0x98] sm:$0xff]  ;;  %v1371_v60 = vshrl.u32 %v1370_v45, 7 }
   0x3   :  { %v90_v5 = vld [vmem:[%s11892_s1 + $0x180] sm:$0xff]  ;;  %v91_v6 = vld [vmem:[%s11892_s1 + $0x188] sm:$0xff]  ;;  %v6240_v7 = vpack.c.bf16 %v43_v4, %v42_v2  ;;  %v44_v14 = vld [vmem:[%s11892_s1 + $0x10] sm:$0xff]  ;;  %v6242_v16 = vpack.c.bf16 %v61_v13, %v60_v11  ;;  %v1369_v59 = vunpack.c.0.s8 %v1368_v44 }
   0x4   :  { %v6270_v8 = vpack.c.bf16 %v91_v6, %v90_v5  ;;  %v74_v9 = vld [vmem:[%s11892_s1 + $0x100] sm:$0xff]  ;;  %v75_v10 = vld [vmem:[%s11892_s1 + $0x108] sm:$0xff]  ;;  %6239 = vmatprep.subr.bf16.mxu0 %v6238_v3  ;;  %v45_v15 = vld [vmem:[%s11892_s1 + $0x18] sm:$0xff] }
   0x5   :  { %v6272_v12 = vpack.c.bf16 %v75_v10, %v74_v9  ;;  %6241 = vmatpush3.bf16.msra.mxu0 %v6240_v7  ;;  %v6244_v17 = vpack.c.bf16 %v45_v15, %v44_v14  ;;  %v92_v18 = vld [vmem:[%s11892_s1 + $0x190] sm:$0xff]  ;;  %v93_v19 = vld [vmem:[%s11892_s1 + $0x198] sm:$0xff]  ;;  %v62_v23 = vld [vmem:[%s11892_s1 + $0xa0] sm:$0xff]  ;;  %v7776_v10 = vsub.s32 %v1369_v59, %v1371_v60 }
   0x6   :  { %6271 = vmatprep.subr.bf16.mxu1 %v6270_v8  ;;  %v76_v20 = vld [vmem:[%s11892_s1 + $0x110] sm:$0xff]  ;;  %v6274_v21 = vpack.c.bf16 %v93_v19, %v92_v18  ;;  %v77_v22 = vld [vmem:[%s11892_s1 + $0x118] sm:$0xff]  ;;  %v63_v24 = vld [vmem:[%s11892_s1 + $0xa8] sm:$0xff]  ;;  %6243 = vmatprep.subr.bf16.mxu0 %v6242_v16 }
   0x7   :  { %6273 = vmatpush3.bf16.msra.mxu1 %v6272_v12  ;;  %v6276_v25 = vpack.c.bf16 %v77_v22, %v76_v20  ;;  %v6246_v26 = vpack.c.bf16 %v63_v24, %v62_v23  ;;  %v46_v27 = vld [vmem:[%s11892_s1 + $0x20] sm:$0xff]  ;;  %v47_v28 = vld [vmem:[%s11892_s1 + $0x28] sm:$0xff]  ;;  %v64_v35 = vld [vmem:[%s11892_s1 + $0xb0] sm:$0xff] }
   0x8   :  { %v94_v29 = vld [vmem:[%s11892_s1 + $0x1a0] sm:$0xff]  ;;  %6275 = vmatprep.subr.bf16.mxu1 %v6274_v21  ;;  %v95_v30 = vld [vmem:[%s11892_s1 + $0x1a8] sm:$0xff]  ;;  %v6248_v33 = vpack.c.bf16 %v47_v28, %v46_v27  ;;  %v65_v36 = vld [vmem:[%s11892_s1 + $0xb8] sm:$0xff] }
   0x9   :  { %v78_v31 = vld [vmem:[%s11892_s1 + $0x120] sm:$0xff]  ;;  %v79_v32 = vld [vmem:[%s11892_s1 + $0x128] sm:$0xff]  ;;  %6245 = vmatpush3.bf16.msra.mxu0 %v6244_v17  ;;  %v6278_v34 = vpack.c.bf16 %v95_v30, %v94_v29  ;;  %v48_v37 = vld [vmem:[%s11892_s1 + $0x30] sm:$0xff]  ;;  %v6250_v39 = vpack.c.bf16 %v65_v36, %v64_v35 }
   0xa   :  { %6247 = vmatprep.subr.bf16.mxu0 %v6246_v26  ;;  %v6280_v38 = vpack.c.bf16 %v79_v32, %v78_v31  ;;  %v49_v40 = vld [vmem:[%s11892_s1 + $0x38] sm:$0xff]  ;;  %v96_v41 = vld [vmem:[%s11892_s1 + $0x1b0] sm:$0xff]  ;;  %v66_v49 = vld [vmem:[%s11892_s1 + $0xc0] sm:$0xff] }
   0xb   :  { %6277 = vmatpush3.bf16.msra.mxu1 %v6276_v25  ;;  %v97_v42 = vld [vmem:[%s11892_s1 + $0x1b8] sm:$0xff]  ;;  %v80_v47 = vld [vmem:[%s11892_s1 + $0x130] sm:$0xff]  ;;  %v67_v50 = vld [vmem:[%s11892_s1 + $0xc8] sm:$0xff]  ;;  %v6252_v51 = vpack.c.bf16 %v49_v40, %v48_v37 }
   0xc   :  { %6279 = vmatprep.subr.bf16.mxu1 %v6278_v34  ;;  %v6282_v46 = vpack.c.bf16 %v97_v42, %v96_v41  ;;  %v81_v48 = vld [vmem:[%s11892_s1 + $0x138] sm:$0xff]  ;;  %v98_v52 = vld [vmem:[%s11892_s1 + $0x1c0] sm:$0xff]  ;;  %v99_v53 = vld [vmem:[%s11892_s1 + $0x1c8] sm:$0xff]  ;;  %v6254_v55 = vpack.c.bf16 %v67_v50, %v66_v49 }
   0xd   :  { %6249 = vmatpush3.bf16.msra.mxu0 %v6248_v33  ;;  %v6284_v54 = vpack.c.bf16 %v81_v48, %v80_v47  ;;  %v50_v56 = vld [vmem:[%s11892_s1 + $0x40] sm:$0xff]  ;;  %v51_v57 = vld [vmem:[%s11892_s1 + $0x48] sm:$0xff]  ;;  %v6286_v61 = vpack.c.bf16 %v99_v53, %v98_v52  ;;  %v68_v63 = vld [vmem:[%s11892_s1 + $0xd0] sm:$0xff] }
   0xe   :  { %6251 = vmatprep.subr.bf16.mxu0 %v6250_v39  ;;  %v82_v58 = vld [vmem:[%s11892_s1 + $0x140] sm:$0xff]  ;;  %v83_v62 = vld [vmem:[%s11892_s1 + $0x148] sm:$0xff]  ;;  %v69_v0 = vld [vmem:[%s11892_s1 + $0xd8] sm:$0xff]  ;;  %v6256_v3 = vpack.c.bf16 %v51_v57, %v50_v56 }
   0xf   :  { %6281 = vmatpush3.bf16.msra.mxu1 %v6280_v38  ;;  %v100_v1 = vld [vmem:[%s11892_s1 + $0x1d0] sm:$0xff]  ;;  %v101_v2 = vld [vmem:[%s11892_s1 + $0x1d8] sm:$0xff]  ;;  %v6288_v5 = vpack.c.bf16 %v83_v62, %v82_v58  ;;  %v6258_v6 = vpack.c.bf16 %v69_v0, %v68_v63  ;;  %v70_v12 = vld [vmem:[%s11892_s1 + $0xe0] sm:$0xff] }
  0x10   :  { %6283 = vmatprep.subr.bf16.mxu1 %v6282_v46  ;;  %v52_v4 = vld [vmem:[%s11892_s1 + $0x50] sm:$0xff]  ;;  %v53_v7 = vld [vmem:[%s11892_s1 + $0x58] sm:$0xff]  ;;  %v6290_v11 = vpack.c.bf16 %v101_v2, %v100_v1  ;;  %v71_v13 = vld [vmem:[%s11892_s1 + $0xe8] sm:$0xff] }
  0x11   :  { %6253 = vmatpush3.bf16.msra.mxu0 %v6252_v51  ;;  %v84_v8 = vld [vmem:[%s11892_s1 + $0x150] sm:$0xff]  ;;  %v85_v9 = vld [vmem:[%s11892_s1 + $0x158] sm:$0xff]  ;;  %v102_v14 = vld [vmem:[%s11892_s1 + $0x1e0] sm:$0xff]  ;;  %v6260_v16 = vpack.c.bf16 %v53_v7, %v52_v4  ;;  %v6262_v19 = vpack.c.bf16 %v71_v13, %v70_v12 }
  0x12   :  { %6255 = vmatprep.subr.bf16.mxu0 %v6254_v55  ;;  %v103_v15 = vld [vmem:[%s11892_s1 + $0x1e8] sm:$0xff]  ;;  %v6292_v17 = vpack.c.bf16 %v85_v9, %v84_v8  ;;  %v21_v18 = vld [vmem:[%s11891_s0] sm:$0xff]  ;;  %v72_v27 = vld [vmem:[%s11892_s1 + $0xf0] sm:$0xff] }
  0x13   :  { %6285 = vmatpush3.bf16.msra.mxu1 %v6284_v54  ;;  %v54_v20 = vld [vmem:[%s11892_s1 + $0x60] sm:$0xff]  ;;  %v55_v21 = vld [vmem:[%s11892_s1 + $0x68] sm:$0xff]  ;;  %v1373_v23 = vrot.slane %v21_v18, %v7776_v10  ;;  %v1366_v24 = vcombine.high %v21_v18, %v21_v18  ;;  %v6294_v25 = vpack.c.bf16 %v103_v15, %v102_v14  ;;  %v73_v28 = vld [vmem:[%s11892_s1 + $0xf8] sm:$0xff] }
  0x14   :  { %6287 = vmatprep.subr.bf16.mxu1 %v6286_v61  ;;  %v86_v22 = vld [vmem:[%s11892_s1 + $0x160] sm:$0xff]  ;;  %v87_v26 = vld [vmem:[%s11892_s1 + $0x168] sm:$0xff]  ;;  %v104_v29 = vld [vmem:[%s11892_s1 + $0x1f0] sm:$0xff]  ;;  %v6264_v33 = vpack.c.bf16 %v55_v21, %v54_v20  ;;  %v6266_v35 = vpack.c.bf16 %v73_v28, %v72_v27 }
  0x15   :  { %6257 = vmatpush3.bf16.msra.mxu0 %v6256_v3  ;;  %v105_v30 = vld [vmem:[%s11892_s1 + $0x1f8] sm:$0xff]  ;;  %v1381_v31 = vcombine.high %v1373_v23, %v1373_v23  ;;  %v1380_v32 = vrot.slane %v1366_v24, %v7776_v10  ;;  %v6296_v34 = vpack.c.bf16 %v87_v26, %v86_v22  ;;  %v56_v36 = vld [vmem:[%s11892_s1 + $0x70] sm:$0xff]  ;;  %v122_v42 = vld [vmem:[%s11892_s1 + $0x280] sm:$0xff] }
  0x16   :  { %6259 = vmatprep.subr.bf16.mxu0 %v6258_v6  ;;  %v57_v37 = vld [vmem:[%s11892_s1 + $0x78] sm:$0xff]  ;;  %v88_v38 = vld [vmem:[%s11892_s1 + $0x170] sm:$0xff]  ;;  %v6298_v40 = vpack.c.bf16 %v105_v30, %v104_v29  ;;  %v123_v43 = vld [vmem:[%s11892_s1 + $0x288] sm:$0xff] }
  0x17   :  { %6289 = vmatpush3.bf16.msra.mxu1 %v6288_v5  ;;  %v1382_v39 = vcombine.high %v1380_v32, %v1380_v32  ;;  %1858 = vmatprep.mubr.f32.mxu0 %v1381_v31  ;;  %v89_v41 = vld [vmem:[%s11892_s1 + $0x178] sm:$0xff]  ;;  %v154_v44 = vld [vmem:[%s11892_s1 + $0x380] sm:$0xff]  ;;  %v155_v45 = vld [vmem:[%s11892_s1 + $0x388] sm:$0xff]  ;;  %v6268_v46 = vpack.c.bf16 %v57_v37, %v56_v36  ;;  %v6302_v48 = vpack.c.bf16 %v123_v43, %v122_v42 }
  0x18   :  { %6291 = vmatprep.subr.bf16.mxu1 %v6290_v11  ;;  %v6300_v47 = vpack.c.bf16 %v89_v41, %v88_v38  ;;  %v106_v49 = vld [vmem:[%s11892_s1 + $0x200] sm:$0xff]  ;;  %v107_v50 = vld [vmem:[%s11892_s1 + $0x208] sm:$0xff]  ;;  %v6334_v52 = vpack.c.bf16 %v155_v45, %v154_v44  ;;  %v124_v54 = vld [vmem:[%s11892_s1 + $0x290] sm:$0xff] }
  0x19   :  { %6261 = vmatpush3.bf16.msra.mxu0 %v6260_v16  ;;  %1928 = vmatprep.mubr.f32.mxu1 %v1382_v39  ;;  %v138_v51 = vld [vmem:[%s11892_s1 + $0x300] sm:$0xff]  ;;  %v139_v53 = vld [vmem:[%s11892_s1 + $0x308] sm:$0xff]  ;;  %v125_v55 = vld [vmem:[%s11892_s1 + $0x298] sm:$0xff]  ;;  %v6304_v58 = vpack.c.bf16 %v107_v50, %v106_v49 }
  0x1a   :  { %6263 = vmatprep.subr.bf16.mxu0 %v6262_v19  ;;  %v156_v56 = vld [vmem:[%s11892_s1 + $0x390] sm:$0xff]  ;;  %v157_v57 = vld [vmem:[%s11892_s1 + $0x398] sm:$0xff]  ;;  %v6336_v59 = vpack.c.bf16 %v139_v53, %v138_v51  ;;  %v6306_v60 = vpack.c.bf16 %v125_v55, %v124_v54  ;;  %v126_v2 = vld [vmem:[%s11892_s1 + $0x2a0] sm:$0xff] }
  0x1b   :  { %6293 = vmatpush3.bf16.msra.mxu1 %v6292_v17  ;;  %v108_v61 = vld [vmem:[%s11892_s1 + $0x210] sm:$0xff]  ;;  %v109_v62 = vld [vmem:[%s11892_s1 + $0x218] sm:$0xff]  ;;  %v6338_v0 = vpack.c.bf16 %v157_v57, %v156_v56  ;;  %v127_v3 = vld [vmem:[%s11892_s1 + $0x2a8] sm:$0xff] }
  0x1c   :  { %6295 = vmatprep.subr.bf16.mxu1 %v6294_v25  ;;  %v140_v63 = vld [vmem:[%s11892_s1 + $0x310] sm:$0xff]  ;;  %v141_v1 = vld [vmem:[%s11892_s1 + $0x318] sm:$0xff]  ;;  %v158_v4 = vld [vmem:[%s11892_s1 + $0x3a0] sm:$0xff]  ;;  %v6308_v6 = vpack.c.bf16 %v109_v62, %v108_v61  ;;  %v6310_v8 = vpack.c.bf16 %v127_v3, %v126_v2 }
  0x1d   :  { %6265 = vmatpush3.bf16.msra.mxu0 %v6264_v33  ;;  %v159_v5 = vld [vmem:[%s11892_s1 + $0x3a8] sm:$0xff]  ;;  %v6340_v7 = vpack.c.bf16 %v141_v1, %v140_v63  ;;  %v110_v9 = vld [vmem:[%s11892_s1 + $0x220] sm:$0xff]  ;;  %v128_v15 = vld [vmem:[%s11892_s1 + $0x2b0] sm:$0xff] }
  0x1e   :  { %6267 = vmatprep.subr.bf16.mxu0 %v6266_v35  ;;  %v111_v11 = vld [vmem:[%s11892_s1 + $0x228] sm:$0xff]  ;;  %v142_v12 = vld [vmem:[%s11892_s1 + $0x320] sm:$0xff]  ;;  %v6342_v13 = vpack.c.bf16 %v159_v5, %v158_v4  ;;  %v129_v16 = vld [vmem:[%s11892_s1 + $0x2b8] sm:$0xff] }
  0x1f   :  { %6297 = vmatpush3.bf16.msra.mxu1 %v6296_v34  ;;  %v143_v14 = vld [vmem:[%s11892_s1 + $0x328] sm:$0xff]  ;;  %v160_v17 = vld [vmem:[%s11892_s1 + $0x3b0] sm:$0xff]  ;;  %v161_v18 = vld [vmem:[%s11892_s1 + $0x3b8] sm:$0xff]  ;;  %v6312_v19 = vpack.c.bf16 %v111_v11, %v110_v9  ;;  %v6314_v22 = vpack.c.bf16 %v129_v16, %v128_v15 }
  0x20   :  { %6299 = vmatprep.subr.bf16.mxu1 %v6298_v40  ;;  %v112_v20 = vld [vmem:[%s11892_s1 + $0x230] sm:$0xff]  ;;  %v6344_v21 = vpack.c.bf16 %v143_v14, %v142_v12  ;;  %v145_v25 = vld [vmem:[%s11892_s1 + $0x338] sm:$0xff]  ;;  %v6346_v26 = vpack.c.bf16 %v161_v18, %v160_v17  ;;  %v130_v27 = vld [vmem:[%s11892_s1 + $0x2c0] sm:$0xff] }
  0x21   :  { %6269 = vmatpush3.bf16.msra.mxu0 %v6268_v46  ;;  %v144_v24 = vld [vmem:[%s11892_s1 + $0x330] sm:$0xff]  ;;  %v131_v28 = vld [vmem:[%s11892_s1 + $0x2c8] sm:$0xff]  ;;  %v162_v30 = vld [vmem:[%s11892_s1 + $0x3c0] sm:$0xff] }
  0x22   :  { %6303 = vmatprep.subr.bf16.mxu0 %v6302_v48  ;;  %v22_v29 = vld [vmem:[%s11891_s0 + $0x8] sm:$0xff]  ;;  %v6348_v35 = vpack.c.bf16 %v145_v25, %v144_v24  ;;  %v6318_v36 = vpack.c.bf16 %v131_v28, %v130_v27  ;;  %v114_v37 = vld [vmem:[%s11892_s1 + $0x240] sm:$0xff]  ;;  %v132_v44 = vld [vmem:[%s11892_s1 + $0x2d0] sm:$0xff] }
  0x23   :  { %6301 = vmatpush3.bf16.msra.mxu1 %v6300_v47  ;;  %v163_v31 = vld [vmem:[%s11892_s1 + $0x3c8] sm:$0xff]  ;;  %v1383_v33 = vcombine.high %v22_v29, %v22_v29  ;;  %v146_v39 = vld [vmem:[%s11892_s1 + $0x340] sm:$0xff]  ;;  %v133_v45 = vld [vmem:[%s11892_s1 + $0x2d8] sm:$0xff] }
  0x24   :  { %6335 = vmatprep.subr.bf16.mxu1 %v6334_v52  ;;  %1859 = vmatmul.mubr.f32.vlgmr.msra.gmra.mrb[0].mxu0 %v1373_v23  ;;  %v113_v23 = vld [vmem:[%s11892_s1 + $0x238] sm:$0xff]  ;;  %v115_v38 = vld [vmem:[%s11892_s1 + $0x248] sm:$0xff]  ;;  %v6350_v42 = vpack.c.bf16 %v163_v31, %v162_v30  ;;  %v164_v46 = vld [vmem:[%s11892_s1 + $0x3d0] sm:$0xff]  ;;  %v6322_v51 = vpack.c.bf16 %v133_v45, %v132_v44 }
  0x25   :  { %6305 = vmatpush3.bf16.msra.mxu0 %v6304_v58  ;;  %v6316_v34 = vpack.c.bf16 %v113_v23, %v112_v20  ;;  %v7957_v41 = vrot.slane %v1383_v33, %v7776_v10  ;;  %v147_v43 = vld [vmem:[%s11892_s1 + $0x348] sm:$0xff]  ;;  %v165_v47 = vld [vmem:[%s11892_s1 + $0x3d8] sm:$0xff]  ;;  %v6320_v49 = vpack.c.bf16 %v115_v38, %v114_v37  ;;  %v116_v52 = vld [vmem:[%s11892_s1 + $0x250] sm:$0xff] }
  0x26   :  { %1929 = vmatmul.mubr.f32.vlgmr.msra.gmra.mrb[0].mxu1 %v1380_v32  ;;  %6307 = vmatprep.subr.bf16.mxu0 %v6306_v60  ;;  %v7943_v32 = vrot.slane %v22_v29, %v7776_v10  ;;  %v6352_v50 = vpack.c.bf16 %v147_v43, %v146_v39  ;;  %v117_v53 = vld [vmem:[%s11892_s1 + $0x258] sm:$0xff]  ;;  %v148_v54 = vld [vmem:[%s11892_s1 + $0x350] sm:$0xff]  ;;  %v6354_v55 = vpack.c.bf16 %v165_v47, %v164_v46  ;;  %v134_v57 = vld [vmem:[%s11892_s1 + $0x2e0] sm:$0xff] }
  0x27   :  { %6337 = vmatpush3.bf16.msra.mxu1 %v6336_v59  ;;  %v1399_v48 = vcombine.high %v7957_v41, %v7957_v41  ;;  %v149_v56 = vld [vmem:[%s11892_s1 + $0x358] sm:$0xff]  ;;  %v135_v58 = vld [vmem:[%s11892_s1 + $0x2e8] sm:$0xff]  ;;  %v166_v59 = vld [vmem:[%s11892_s1 + $0x3e0] sm:$0xff]  ;;  %v6324_v61 = vpack.c.bf16 %v117_v53, %v116_v52 }
  0x28   :  { %6339 = vmatprep.subr.bf16.mxu1 %v6338_v0  ;;  %v1398_v40 = vcombine.high %v7943_v32, %v7943_v32  ;;  %v167_v60 = vld [vmem:[%s11892_s1 + $0x3e8] sm:$0xff]  ;;  %v6356_v62 = vpack.c.bf16 %v149_v56, %v148_v54  ;;  %v6326_v63 = vpack.c.bf16 %v135_v58, %v134_v57  ;;  %v118_v0 = vld [vmem:[%s11892_s1 + $0x260] sm:$0xff]  ;;  %v136_v5 = vld [vmem:[%s11892_s1 + $0x2f0] sm:$0xff] }
  0x29   :  { %6309 = vmatpush3.bf16.msra.mxu0 %v6308_v6  ;;  %2068 = vmatprep.mubr.f32.mxu1 %v1399_v48  ;;  %v119_v1 = vld [vmem:[%s11892_s1 + $0x268] sm:$0xff]  ;;  %v150_v2 = vld [vmem:[%s11892_s1 + $0x360] sm:$0xff]  ;;  %v6358_v3 = vpack.c.bf16 %v167_v60, %v166_v59  ;;  %v137_v6 = vld [vmem:[%s11892_s1 + $0x2f8] sm:$0xff] }
  0x2a   :  { %6311 = vmatprep.subr.bf16.mxu0 %v6310_v8  ;;  %1998 = vmatprep.mubr.f32.mxu0 %v1398_v40  ;;  %v151_v4 = vld [vmem:[%s11892_s1 + $0x368] sm:$0xff]  ;;  %v169_v8 = vld [vmem:[%s11892_s1 + $0x3f8] sm:$0xff]  ;;  %v6328_v9 = vpack.c.bf16 %v119_v1, %v118_v0  ;;  %v6330_v12 = vpack.c.bf16 %v137_v6, %v136_v5  ;;  %v152_v15 = vld [vmem:[%s11892_s1 + $0x370] sm:$0xff] }
  0x2b   :  { %6341 = vmatpush3.bf16.msra.mxu1 %v6340_v7  ;;  %v168_v7 = vld [vmem:[%s11892_s1 + $0x3f0] sm:$0xff]  ;;  %v6360_v11 = vpack.c.bf16 %v151_v4, %v150_v2  ;;  %v121_v14 = vld [vmem:[%s11892_s1 + $0x278] sm:$0xff]  ;;  %v186_v18 = vld [vmem:[%s11892_s1 + $0x480] sm:$0xff] }
  0x2c   :  { %6343 = vmatprep.subr.bf16.mxu1 %v6342_v13  ;;  %v120_v13 = vld [vmem:[%s11892_s1 + $0x270] sm:$0xff]  ;;  %v6362_v16 = vpack.c.bf16 %v169_v8, %v168_v7  ;;  %v153_v17 = vld [vmem:[%s11892_s1 + $0x378] sm:$0xff]  ;;  %v218_v20 = vld [vmem:[%s11892_s1 + $0x580] sm:$0xff] }
  0x2d   :  { %6313 = vmatpush3.bf16.msra.mxu0 %v6312_v19  ;;  %v187_v19 = vld [vmem:[%s11892_s1 + $0x488] sm:$0xff]  ;;  %v170_v23 = vld [vmem:[%s11892_s1 + $0x400] sm:$0xff]  ;;  %v6364_v24 = vpack.c.bf16 %v153_v17, %v152_v15  ;;  %v188_v30 = vld [vmem:[%s11892_s1 + $0x490] sm:$0xff] }
  0x2e   :  { %6315 = vmatprep.subr.bf16.mxu0 %v6314_v22  ;;  %v6332_v22 = vpack.c.bf16 %v121_v14, %v120_v13  ;;  %v6366_v25 = vpack.c.bf16 %v187_v19, %v186_v18  ;;  %v202_v27 = vld [vmem:[%s11892_s1 + $0x500] sm:$0xff]  ;;  %v203_v28 = vld [vmem:[%s11892_s1 + $0x508] sm:$0xff]  ;;  %v189_v31 = vld [vmem:[%s11892_s1 + $0x498] sm:$0xff] }
  0x2f   :  { %6345 = vmatpush3.bf16.msra.mxu1 %v6344_v21  ;;  %v219_v21 = vld [vmem:[%s11892_s1 + $0x588] sm:$0xff]  ;;  %v220_v33 = vld [vmem:[%s11892_s1 + $0x590] sm:$0xff]  ;;  %v6370_v38 = vpack.c.bf16 %v189_v31, %v188_v30  ;;  %v173_v40 = vld [vmem:[%s11892_s1 + $0x418] sm:$0xff] }
  0x30   :  { %6347 = vmatprep.subr.bf16.mxu1 %v6346_v26  ;;  %v171_v26 = vld [vmem:[%s11892_s1 + $0x408] sm:$0xff]  ;;  %v6398_v29 = vpack.c.bf16 %v219_v21, %v218_v20  ;;  %v23_v37 = vld [vmem:[%s11891_s0 + $0x10] sm:$0xff]  ;;  %v205_v46 = vld [vmem:[%s11892_s1 + $0x518] sm:$0xff] }
  0x31   :  { %6317 = vmatpush3.bf16.msra.mxu0 %v6316_v34  ;;  %v221_v34 = vld [vmem:[%s11892_s1 + $0x598] sm:$0xff]  ;;  %v172_v39 = vld [vmem:[%s11892_s1 + $0x410] sm:$0xff]  ;;  %v8085_v43 = vrot.slane %v23_v37, %v7776_v10  ;;  %v1400_v44 = vcombine.high %v23_v37, %v23_v37  ;;  %v190_v47 = vld [vmem:[%s11892_s1 + $0x4a0] sm:$0xff] }
  0x32   :  { %6319 = vmatprep.subr.bf16.mxu0 %v6318_v36  ;;  %v6400_v36 = vpack.c.bf16 %v203_v28, %v202_v27  ;;  %v6402_v45 = vpack.c.bf16 %v221_v34, %v220_v33  ;;  %v191_v48 = vld [vmem:[%s11892_s1 + $0x4a8] sm:$0xff]  ;;  %v6372_v53 = vpack.c.bf16 %v173_v40, %v172_v39  ;;  %v206_v57 = vld [vmem:[%s11892_s1 + $0x520] sm:$0xff]  ;;  %v192_v60 = vld [vmem:[%s11892_s1 + $0x4b0] sm:$0xff] }
  0x33   :  { %6349 = vmatpush3.bf16.msra.mxu1 %v6348_v35  ;;  %v6368_v35 = vpack.c.bf16 %v171_v26, %v170_v23  ;;  %v8106_v52 = vrot.slane %v1400_v44, %v7776_v10  ;;  %v6374_v54 = vpack.c.bf16 %v191_v48, %v190_v47  ;;  %v175_v56 = vld [vmem:[%s11892_s1 + $0x428] sm:$0xff]  ;;  %v177_v4 = vld [vmem:[%s11892_s1 + $0x438] sm:$0xff]  ;;  %v208_v5 = vld [vmem:[%s11892_s1 + $0x530] sm:$0xff] }
  0x34   :  { %6351 = vmatprep.subr.bf16.mxu1 %v6350_v42  ;;  %v204_v42 = vld [vmem:[%s11892_s1 + $0x510] sm:$0xff]  ;;  %v207_v59 = vld [vmem:[%s11892_s1 + $0x528] sm:$0xff]  ;;  %v209_v7 = vld [vmem:[%s11892_s1 + $0x538] sm:$0xff] }
  0x35   :  { %6321 = vmatpush3.bf16.msra.mxu0 %v6320_v49  ;;  %v222_v49 = vld [vmem:[%s11892_s1 + $0x5a0] sm:$0xff]  ;;  %v6408_v1 = vpack.c.bf16 %v207_v59, %v206_v57  ;;  %v6412_v14 = vpack.c.bf16 %v209_v7, %v208_v5  ;;  %v179_v17 = vld [vmem:[%s11892_s1 + $0x448] sm:$0xff]  ;;  %v196_v21 = vld [vmem:[%s11892_s1 + $0x4d0] sm:$0xff] }
  0x36   :  { %6323 = vmatprep.subr.bf16.mxu0 %v6322_v51  ;;  %v1415_v51 = vcombine.high %v8085_v43, %v8085_v43  ;;  %v194_v8 = vld [vmem:[%s11892_s1 + $0x4c0] sm:$0xff]  ;;  %v211_v20 = vld [vmem:[%s11892_s1 + $0x548] sm:$0xff]  ;;  %v228_v23 = vld [vmem:[%s11892_s1 + $0x5d0] sm:$0xff] }
  0x37   :  { %6353 = vmatpush3.bf16.msra.mxu1 %v6352_v50  ;;  %v223_v50 = vld [vmem:[%s11892_s1 + $0x5a8] sm:$0xff]  ;;  %v210_v18 = vld [vmem:[%s11892_s1 + $0x540] sm:$0xff]  ;;  %v180_v28 = vld [vmem:[%s11892_s1 + $0x450] sm:$0xff] }
  0x38   :  { %6355 = vmatprep.subr.bf16.mxu1 %v6354_v55  ;;  %v174_v55 = vld [vmem:[%s11892_s1 + $0x420] sm:$0xff]  ;;  %v6406_v58 = vpack.c.bf16 %v223_v50, %v222_v49  ;;  %v6416_v26 = vpack.c.bf16 %v211_v20, %v210_v18  ;;  %v212_v30 = vld [vmem:[%s11892_s1 + $0x550] sm:$0xff]  ;;  %v213_v33 = vld [vmem:[%s11892_s1 + $0x558] sm:$0xff] }
  0x39   :  { %6325 = vmatpush3.bf16.msra.mxu0 %v6324_v61  ;;  %v193_v61 = vld [vmem:[%s11892_s1 + $0x4b8] sm:$0xff]  ;;  %v6376_v0 = vpack.c.bf16 %v175_v56, %v174_v55  ;;  %v198_v34 = vld [vmem:[%s11892_s1 + $0x4e0] sm:$0xff]  ;;  %v231_v37 = vld [vmem:[%s11892_s1 + $0x5e8] sm:$0xff]  ;;  %v6420_v39 = vpack.c.bf16 %v213_v33, %v212_v30 }
  0x3a   :  { %6327 = vmatprep.subr.bf16.mxu0 %v6326_v63  ;;  %v225_v63 = vld [vmem:[%s11892_s1 + $0x5b8] sm:$0xff]  ;;  %v6378_v2 = vpack.c.bf16 %v193_v61, %v192_v60  ;;  %v183_v44 = vld [vmem:[%s11892_s1 + $0x468] sm:$0xff]  ;;  %v200_v48 = vld [vmem:[%s11892_s1 + $0x4f0] sm:$0xff] }
  0x3b   :  { %6357 = vmatpush3.bf16.msra.mxu1 %v6356_v62  ;;  %v224_v62 = vld [vmem:[%s11892_s1 + $0x5b0] sm:$0xff]  ;;  %v215_v47 = vld [vmem:[%s11892_s1 + $0x568] sm:$0xff]  ;;  %v201_v49 = vld [vmem:[%s11892_s1 + $0x4f8] sm:$0xff] }
  0x3c   :  { %6359 = vmatprep.subr.bf16.mxu1 %v6358_v3  ;;  %v176_v3 = vld [vmem:[%s11892_s1 + $0x430] sm:$0xff]  ;;  %v6410_v6 = vpack.c.bf16 %v225_v63, %v224_v62  ;;  %v6394_v55 = vpack.c.bf16 %v201_v49, %v200_v48  ;;  %v185_v57 = vld [vmem:[%s11892_s1 + $0x478] sm:$0xff]  ;;  %v250_v60 = vld [vmem:[%s11892_s1 + $0x680] sm:$0xff] }
  0x3d   :  { %6329 = vmatpush3.bf16.msra.mxu0 %v6328_v9  ;;  %v195_v9 = vld [vmem:[%s11892_s1 + $0x4c8] sm:$0xff]  ;;  %v6380_v13 = vpack.c.bf16 %v177_v4, %v176_v3  ;;  %v232_v50 = vld [vmem:[%s11892_s1 + $0x5f0] sm:$0xff]  ;;  %v217_v59 = vld [vmem:[%s11892_s1 + $0x578] sm:$0xff] }
  0x3e   :  { %6331 = vmatprep.subr.bf16.mxu0 %v6330_v12  ;;  %v227_v12 = vld [vmem:[%s11892_s1 + $0x5c8] sm:$0xff]  ;;  %v6382_v15 = vpack.c.bf16 %v195_v9, %v194_v8  ;;  %v184_v56 = vld [vmem:[%s11892_s1 + $0x470] sm:$0xff]  ;;  %v282_v62 = vld [vmem:[%s11892_s1 + $0x780] sm:$0xff] }
  0x3f   :  { %6361 = vmatpush3.bf16.msra.mxu1 %v6360_v11  ;;  %v226_v11 = vld [vmem:[%s11892_s1 + $0x5c0] sm:$0xff]  ;;  %v251_v61 = vld [vmem:[%s11892_s1 + $0x688] sm:$0xff]  ;;  %v252_v9 = vld [vmem:[%s11892_s1 + $0x690] sm:$0xff] }
  0x40   :  { %6363 = vmatprep.subr.bf16.mxu1 %v6362_v16  ;;  %v178_v16 = vld [vmem:[%s11892_s1 + $0x440] sm:$0xff]  ;;  %v6414_v19 = vpack.c.bf16 %v227_v12, %v226_v11  ;;  %v283_v63 = vld [vmem:[%s11892_s1 + $0x788] sm:$0xff]  ;;  %v6430_v3 = vpack.c.bf16 %v251_v61, %v250_v60  ;;  %v253_v11 = vld [vmem:[%s11892_s1 + $0x698] sm:$0xff] }
  0x41   :  { %6333 = vmatpush3.bf16.msra.mxu0 %v6332_v22  ;;  %v197_v22 = vld [vmem:[%s11892_s1 + $0x4d8] sm:$0xff]  ;;  %v234_v4 = vld [vmem:[%s11892_s1 + $0x600] sm:$0xff]  ;;  %v235_v5 = vld [vmem:[%s11892_s1 + $0x608] sm:$0xff]  ;;  %v6462_v7 = vpack.c.bf16 %v283_v63, %v282_v62  ;;  %v6434_v18 = vpack.c.bf16 %v253_v11, %v252_v9 }
  0x42   :  { %6367 = vmatprep.subr.bf16.mxu0 %v6366_v25  ;;  %v6384_v25 = vpack.c.bf16 %v179_v17, %v178_v16  ;;  %v6386_v27 = vpack.c.bf16 %v197_v22, %v196_v21  ;;  %v267_v8 = vld [vmem:[%s11892_s1 + $0x708] sm:$0xff]  ;;  %v6432_v16 = vpack.c.bf16 %v235_v5, %v234_v4  ;;  %v237_v20 = vld [vmem:[%s11892_s1 + $0x618] sm:$0xff]  ;;  %v268_v21 = vld [vmem:[%s11892_s1 + $0x710] sm:$0xff] }
  0x43   :  { %6365 = vmatpush3.bf16.msra.mxu1 %v6364_v24  ;;  %v229_v24 = vld [vmem:[%s11892_s1 + $0x5d8] sm:$0xff]  ;;  %v272_v48 = vld [vmem:[%s11892_s1 + $0x730] sm:$0xff]  ;;  %v275_v61 = vld [vmem:[%s11892_s1 + $0x748] sm:$0xff] }
  0x44   :  { %6399 = vmatprep.subr.bf16.mxu1 %v6398_v29  ;;  %1999 = vmatmul.mubr.f32.vlgmr.msra.gmra.mrb[2].mxu0 %v7943_v32  ;;  %v6404_v32 = vpack.c.bf16 %v205_v46, %v204_v42  ;;  %v181_v29 = vld [vmem:[%s11892_s1 + $0x458] sm:$0xff]  ;;  %v6418_v31 = vpack.c.bf16 %v229_v24, %v228_v23  ;;  %v182_v42 = vld [vmem:[%s11892_s1 + $0x460] sm:$0xff]  ;;  %v260_v62 = vld [vmem:[%s11892_s1 + $0x6d0] sm:$0xff] }
  0x45   :  { %6369 = vmatpush3.bf16.msra.mxu0 %v6368_v35  ;;  %2138 = vmatprep.mubr.f32.mxu0 %v1415_v51  ;;  %v199_v35 = vld [vmem:[%s11892_s1 + $0x4e8] sm:$0xff]  ;;  %v233_v51 = vld [vmem:[%s11892_s1 + $0x5f8] sm:$0xff]  ;;  %v254_v24 = vld [vmem:[%s11892_s1 + $0x6a0] sm:$0xff] }
  0x46   :  { %2069 = vmatmul.mubr.f32.vlgmr.msra.gmra.mrb[2].mxu1 %v7957_v41  ;;  %6371 = vmatprep.subr.bf16.mxu0 %v6370_v38  ;;  %v1416_v41 = vcombine.high %v8106_v52, %v8106_v52  ;;  %v6388_v38 = vpack.c.bf16 %v181_v29, %v180_v28  ;;  %v6390_v40 = vpack.c.bf16 %v199_v35, %v198_v34  ;;  %v269_v23 = vld [vmem:[%s11892_s1 + $0x718] sm:$0xff]  ;;  %v287_v28 = vld [vmem:[%s11892_s1 + $0x7a8] sm:$0xff]  ;;  %v270_v35 = vld [vmem:[%s11892_s1 + $0x720] sm:$0xff] }
  0x47   :  { %6401 = vmatpush3.bf16.msra.mxu1 %v6400_v36  ;;  %v230_v36 = vld [vmem:[%s11892_s1 + $0x5e0] sm:$0xff]  ;;  %v239_v34 = vld [vmem:[%s11892_s1 + $0x628] sm:$0xff]  ;;  %v261_v63 = vld [vmem:[%s11892_s1 + $0x6d8] sm:$0xff] }
  0x48   :  { %6403 = vmatprep.subr.bf16.mxu1 %v6402_v45  ;;  %2208 = vmatprep.mubr.f32.mxu1 %v1416_v41  ;;  %v214_v45 = vld [vmem:[%s11892_s1 + $0x560] sm:$0xff]  ;;  %v6422_v46 = vpack.c.bf16 %v231_v37, %v230_v36  ;;  %v216_v41 = vld [vmem:[%s11892_s1 + $0x570] sm:$0xff]  ;;  %v6450_v4 = vpack.c.bf16 %v261_v63, %v260_v62  ;;  %v277_v9 = vld [vmem:[%s11892_s1 + $0x758] sm:$0xff] }
  0x49   :  { %6373 = vmatpush3.bf16.msra.mxu0 %v6372_v53  ;;  %v6392_v53 = vpack.c.bf16 %v183_v44, %v182_v42  ;;  %v256_v37 = vld [vmem:[%s11892_s1 + $0x6b0] sm:$0xff]  ;;  %v262_v11 = vld [vmem:[%s11892_s1 + $0x6e0] sm:$0xff] }
  0x4a   :  { %6375 = vmatprep.subr.bf16.mxu0 %v6374_v54  ;;  %v6424_v54 = vpack.c.bf16 %v215_v47, %v214_v45  ;;  %v241_v47 = vld [vmem:[%s11892_s1 + $0x638] sm:$0xff]  ;;  %v244_v5 = vld [vmem:[%s11892_s1 + $0x650] sm:$0xff] }
  0x4b   :  { %6405 = vmatpush3.bf16.msra.mxu1 %v6404_v32  ;;  %v24_v32 = vld [vmem:[%s11891_s0 + $0x18] sm:$0xff]  ;;  %v332_v62 = vld [vmem:[%s11892_s1 + $0x910] sm:$0xff] }
  0x4c   :  { %6407 = vmatprep.subr.bf16.mxu1 %v6406_v58  ;;  %v6426_v58 = vpack.c.bf16 %v233_v51, %v232_v50  ;;  %v8277_v12 = vrot.slane %v24_v32, %v7776_v10  ;;  %v273_v50 = vld [vmem:[%s11892_s1 + $0x738] sm:$0xff]  ;;  %v258_v51 = vld [vmem:[%s11892_s1 + $0x6c0] sm:$0xff] }
  0x4d   :  { %6377 = vmatpush3.bf16.msra.mxu0 %v6376_v0  ;;  %v1417_v0 = vcombine.high %v24_v32, %v24_v32  ;;  %v290_v32 = vld [vmem:[%s11892_s1 + $0x7c0] sm:$0xff] }
  0x4e   :  { %6379 = vmatprep.subr.bf16.mxu0 %v6378_v2  ;;  %v6428_v2 = vpack.c.bf16 %v217_v59, %v216_v41  ;;  %v242_v41 = vld [vmem:[%s11892_s1 + $0x640] sm:$0xff] }
  0x4f   :  { %6409 = vmatpush3.bf16.msra.mxu1 %v6408_v1  ;;  %v6396_v1 = vpack.c.bf16 %v185_v57, %v184_v56  ;;  %v6476_v56 = vpack.c.bf16 %v273_v50, %v272_v48  ;;  %v274_v59 = vld [vmem:[%s11892_s1 + $0x740] sm:$0xff]  ;;  %v299_v48 = vld [vmem:[%s11892_s1 + $0x808] sm:$0xff] }
  0x50   :  { %6411 = vmatprep.subr.bf16.mxu1 %v6410_v6  ;;  %v266_v6 = vld [vmem:[%s11892_s1 + $0x700] sm:$0xff] }
  0x51   :  { %6381 = vmatpush3.bf16.msra.mxu0 %v6380_v13  ;;  %v284_v13 = vld [vmem:[%s11892_s1 + $0x790] sm:$0xff]  ;;  %v6464_v17 = vpack.c.bf16 %v267_v8, %v266_v6  ;;  %v245_v6 = vld [vmem:[%s11892_s1 + $0x658] sm:$0xff] }
  0x52   :  { %6383 = vmatprep.subr.bf16.mxu0 %v6382_v15  ;;  %v8286_v15 = vrot.slane %v1417_v0, %v7776_v10  ;;  %v292_v0 = vld [vmem:[%s11892_s1 + $0x7d0] sm:$0xff] }
  0x53   :  { %6413 = vmatpush3.bf16.msra.mxu1 %v6412_v14  ;;  %v285_v14 = vld [vmem:[%s11892_s1 + $0x798] sm:$0xff] }
  0x54   :  { %6415 = vmatprep.subr.bf16.mxu1 %v6414_v19  ;;  %v236_v19 = vld [vmem:[%s11892_s1 + $0x610] sm:$0xff]  ;;  %v6466_v22 = vpack.c.bf16 %v285_v14, %v284_v13  ;;  %v1433_v29 = vcombine.high %v8286_v15, %v8286_v15  ;;  %v263_v13 = vld [vmem:[%s11892_s1 + $0x6e8] sm:$0xff]  ;;  %v294_v14 = vld [vmem:[%s11892_s1 + $0x7e0] sm:$0xff] }
  0x55   :  { %6385 = vmatpush3.bf16.msra.mxu0 %v6384_v25  ;;  %v255_v25 = vld [vmem:[%s11892_s1 + $0x6a8] sm:$0xff]  ;;  %v6436_v30 = vpack.c.bf16 %v237_v20, %v236_v19  ;;  %v6454_v19 = vpack.c.bf16 %v263_v13, %v262_v11  ;;  %v246_v20 = vld [vmem:[%s11892_s1 + $0x660] sm:$0xff] }
  0x56   :  { %6387 = vmatprep.subr.bf16.mxu0 %v6386_v27  ;;  %v286_v27 = vld [vmem:[%s11892_s1 + $0x7a0] sm:$0xff]  ;;  %v6438_v33 = vpack.c.bf16 %v255_v25, %v254_v24  ;;  %v279_v24 = vld [vmem:[%s11892_s1 + $0x768] sm:$0xff]  ;;  %v264_v25 = vld [vmem:[%s11892_s1 + $0x6f0] sm:$0xff] }
  0x57   :  { %6417 = vmatpush3.bf16.msra.mxu1 %v6416_v26  ;;  %v1432_v26 = vcombine.high %v8277_v12, %v8277_v12  ;;  %v6470_v36 = vpack.c.bf16 %v287_v28, %v286_v27  ;;  %v296_v27 = vld [vmem:[%s11892_s1 + $0x7f0] sm:$0xff]  ;;  %v297_v28 = vld [vmem:[%s11892_s1 + $0x7f8] sm:$0xff]  ;;  %v303_v11 = vld [vmem:[%s11892_s1 + $0x828] sm:$0xff] }
  0x58   :  { %6419 = vmatprep.subr.bf16.mxu1 %v6418_v31  ;;  %v6468_v31 = vpack.c.bf16 %v269_v23, %v268_v21  ;;  %v247_v21 = vld [vmem:[%s11892_s1 + $0x668] sm:$0xff]  ;;  %v334_v13 = vld [vmem:[%s11892_s1 + $0x920] sm:$0xff] }
  0x59   :  { %6389 = vmatpush3.bf16.msra.mxu0 %v6388_v38  ;;  %v257_v38 = vld [vmem:[%s11892_s1 + $0x6b8] sm:$0xff] }
  0x5a   :  { %6391 = vmatprep.subr.bf16.mxu0 %v6390_v40  ;;  %v289_v40 = vld [vmem:[%s11892_s1 + $0x7b8] sm:$0xff]  ;;  %v6442_v45 = vpack.c.bf16 %v257_v38, %v256_v37  ;;  %v314_v37 = vld [vmem:[%s11892_s1 + $0x880] sm:$0xff]  ;;  %v315_v38 = vld [vmem:[%s11892_s1 + $0x888] sm:$0xff] }
  0x5b   :  { %6421 = vmatpush3.bf16.msra.mxu1 %v6420_v39  ;;  %v288_v39 = vld [vmem:[%s11892_s1 + $0x7b0] sm:$0xff] }
  0x5c   :  { %6423 = vmatprep.subr.bf16.mxu1 %v6422_v46  ;;  %v240_v46 = vld [vmem:[%s11892_s1 + $0x630] sm:$0xff]  ;;  %v6474_v49 = vpack.c.bf16 %v289_v40, %v288_v39  ;;  %v346_v39 = vld [vmem:[%s11892_s1 + $0x980] sm:$0xff]  ;;  %v347_v40 = vld [vmem:[%s11892_s1 + $0x988] sm:$0xff] }
  0x5d   :  { %6393 = vmatpush3.bf16.msra.mxu0 %v6392_v53  ;;  %v259_v53 = vld [vmem:[%s11892_s1 + $0x6c8] sm:$0xff]  ;;  %v6526_v50 = vpack.c.bf16 %v347_v40, %v346_v39  ;;  %v324_v39 = vld [vmem:[%s11892_s1 + $0x8d0] sm:$0xff]  ;;  %v325_v40 = vld [vmem:[%s11892_s1 + $0x8d8] sm:$0xff] }
  0x5e   :  { %6395 = vmatprep.subr.bf16.mxu0 %v6394_v55  ;;  %v6444_v55 = vpack.c.bf16 %v241_v47, %v240_v46  ;;  %v6446_v57 = vpack.c.bf16 %v259_v53, %v258_v51  ;;  %v6494_v46 = vpack.c.bf16 %v315_v38, %v314_v37  ;;  %v298_v47 = vld [vmem:[%s11892_s1 + $0x800] sm:$0xff]  ;;  %v331_v51 = vld [vmem:[%s11892_s1 + $0x908] sm:$0xff]  ;;  %v316_v53 = vld [vmem:[%s11892_s1 + $0x890] sm:$0xff] }
  0x5f   :  { %6425 = vmatpush3.bf16.msra.mxu1 %v6424_v54  ;;  %v291_v54 = vld [vmem:[%s11892_s1 + $0x7c8] sm:$0xff] }
  0x60   :  { %6427 = vmatprep.subr.bf16.mxu1 %v6426_v58  ;;  %v243_v58 = vld [vmem:[%s11892_s1 + $0x648] sm:$0xff]  ;;  %v6478_v60 = vpack.c.bf16 %v291_v54, %v290_v32  ;;  %v317_v32 = vld [vmem:[%s11892_s1 + $0x898] sm:$0xff] }
  0x61   :  { %6397 = vmatpush3.bf16.msra.mxu0 %v6396_v1  ;;  %v293_v1 = vld [vmem:[%s11892_s1 + $0x7d8] sm:$0xff]  ;;  %v339_v38 = vld [vmem:[%s11892_s1 + $0x948] sm:$0xff] }
  0x62   :  { %6431 = vmatprep.subr.bf16.mxu0 %v6430_v3  ;;  %v6480_v3 = vpack.c.bf16 %v275_v61, %v274_v59  ;;  %v6482_v8 = vpack.c.bf16 %v293_v1, %v292_v0  ;;  %v6498_v59 = vpack.c.bf16 %v317_v32, %v316_v53  ;;  %v301_v61 = vld [vmem:[%s11892_s1 + $0x818] sm:$0xff]  ;;  %v318_v1 = vld [vmem:[%s11892_s1 + $0x8a0] sm:$0xff] }
  0x63   :  { %6429 = vmatpush3.bf16.msra.mxu1 %v6428_v2  ;;  %v6448_v2 = vpack.c.bf16 %v243_v58, %v242_v41  ;;  %v6496_v41 = vpack.c.bf16 %v299_v48, %v298_v47  ;;  %v333_v0 = vld [vmem:[%s11892_s1 + $0x918] sm:$0xff]  ;;  %v6514_v47 = vpack.c.bf16 %v325_v40, %v324_v39  ;;  %v308_v48 = vld [vmem:[%s11892_s1 + $0x850] sm:$0xff]  ;;  %v326_v32 = vld [vmem:[%s11892_s1 + $0x8e0] sm:$0xff] }
  0x64   :  { %6463 = vmatprep.subr.bf16.mxu1 %v6462_v7  ;;  %2139 = vmatmul.mubr.f32.vlgmr.msra.gmra.mrb[4].mxu0 %v8085_v43  ;;  %v238_v43 = vld [vmem:[%s11892_s1 + $0x620] sm:$0xff]  ;;  %v276_v7 = vld [vmem:[%s11892_s1 + $0x750] sm:$0xff]  ;;  %v341_v53 = vld [vmem:[%s11892_s1 + $0x958] sm:$0xff] }
  0x65   :  { %6433 = vmatpush3.bf16.msra.mxu0 %v6432_v16  ;;  %2278 = vmatprep.mubr.f32.mxu0 %v1432_v26  ;;  %v6440_v42 = vpack.c.bf16 %v239_v34, %v238_v43  ;;  %v295_v16 = vld [vmem:[%s11892_s1 + $0x7e8] sm:$0xff]  ;;  %v265_v26 = vld [vmem:[%s11892_s1 + $0x6f8] sm:$0xff]  ;;  %v248_v43 = vld [vmem:[%s11892_s1 + $0x670] sm:$0xff] }
  0x66   :  { %2209 = vmatmul.mubr.f32.vlgmr.msra.gmra.mrb[4].mxu1 %v8106_v52  ;;  %6435 = vmatprep.subr.bf16.mxu0 %v6434_v18  ;;  %v271_v52 = vld [vmem:[%s11892_s1 + $0x728] sm:$0xff]  ;;  %v6484_v18 = vpack.c.bf16 %v277_v9, %v276_v7  ;;  %v6486_v23 = vpack.c.bf16 %v295_v16, %v294_v14  ;;  %v249_v34 = vld [vmem:[%s11892_s1 + $0x678] sm:$0xff]  ;;  %v320_v16 = vld [vmem:[%s11892_s1 + $0x8b0] sm:$0xff] }
  0x67   :  { %6465 = vmatpush3.bf16.msra.mxu1 %v6464_v17  ;;  %2348 = vmatprep.mubr.f32.mxu1 %v1433_v29  ;;  %v6472_v44 = vpack.c.bf16 %v271_v52, %v270_v35  ;;  %v6452_v17 = vpack.c.bf16 %v245_v6, %v244_v5  ;;  %v6456_v29 = vpack.c.bf16 %v247_v21, %v246_v20  ;;  %v280_v35 = vld [vmem:[%s11892_s1 + $0x770] sm:$0xff]  ;;  %v281_v52 = vld [vmem:[%s11892_s1 + $0x778] sm:$0xff]  ;;  %v351_v5 = vld [vmem:[%s11892_s1 + $0x9a8] sm:$0xff] }
  0x68   :  { %6467 = vmatprep.subr.bf16.mxu1 %v6466_v22  ;;  %v278_v22 = vld [vmem:[%s11892_s1 + $0x760] sm:$0xff]  ;;  %v396_v39 = vld [vmem:[%s11892_s1 + $0xb10] sm:$0xff] }
  0x69   :  { %6437 = vmatpush3.bf16.msra.mxu0 %v6436_v30  ;;  %v25_v30 = vld [vmem:[%s11891_s0 + $0x20] sm:$0xff] }
  0x6a   :  { %6439 = vmatprep.subr.bf16.mxu0 %v6438_v33  ;;  %v6458_v33 = vpack.c.bf16 %v265_v26, %v264_v25  ;;  %v8484_v54 = vrot.slane %v25_v30, %v7776_v10  ;;  %v336_v25 = vld [vmem:[%s11892_s1 + $0x930] sm:$0xff] }
  0x6b   :  { %6469 = vmatpush3.bf16.msra.mxu1 %v6468_v31  ;;  %v6488_v31 = vpack.c.bf16 %v279_v24, %v278_v22  ;;  %v305_v24 = vld [vmem:[%s11892_s1 + $0x838] sm:$0xff] }
  0x6c   :  { %6471 = vmatprep.subr.bf16.mxu1 %v6470_v36  ;;  %v6490_v36 = vpack.c.bf16 %v297_v28, %v296_v27  ;;  %v337_v27 = vld [vmem:[%s11892_s1 + $0x938] sm:$0xff]  ;;  %v322_v28 = vld [vmem:[%s11892_s1 + $0x8c0] sm:$0xff] }
  0x6d   :  { %6441 = vmatpush3.bf16.msra.mxu0 %v6440_v42  ;;  %v1434_v42 = vcombine.high %v25_v30, %v25_v30  ;;  %v354_v30 = vld [vmem:[%s11892_s1 + $0x9c0] sm:$0xff] }
  0x6e   :  { %6443 = vmatprep.subr.bf16.mxu0 %v6442_v45  ;;  %v6492_v45 = vpack.c.bf16 %v281_v52, %v280_v35  ;;  %v306_v35 = vld [vmem:[%s11892_s1 + $0x840] sm:$0xff] }
  0x6f   :  { %6473 = vmatpush3.bf16.msra.mxu1 %v6472_v44  ;;  %v6460_v44 = vpack.c.bf16 %v249_v34, %v248_v43  ;;  %v6540_v43 = vpack.c.bf16 %v337_v27, %v336_v25  ;;  %v338_v52 = vld [vmem:[%s11892_s1 + $0x940] sm:$0xff]  ;;  %v363_v25 = vld [vmem:[%s11892_s1 + $0xa08] sm:$0xff] }
  0x70   :  { %6475 = vmatprep.subr.bf16.mxu1 %v6474_v49  ;;  %v330_v49 = vld [vmem:[%s11892_s1 + $0x900] sm:$0xff] }
  0x71   :  { %6445 = vmatpush3.bf16.msra.mxu0 %v6444_v55  ;;  %v348_v55 = vld [vmem:[%s11892_s1 + $0x990] sm:$0xff]  ;;  %v6528_v58 = vpack.c.bf16 %v331_v51, %v330_v49  ;;  %v309_v49 = vld [vmem:[%s11892_s1 + $0x858] sm:$0xff] }
  0x72   :  { %6447 = vmatprep.subr.bf16.mxu0 %v6446_v57  ;;  %v8493_v57 = vrot.slane %v1434_v42, %v7776_v10  ;;  %v356_v42 = vld [vmem:[%s11892_s1 + $0x9d0] sm:$0xff] }
  0x73   :  { %6477 = vmatpush3.bf16.msra.mxu1 %v6476_v56  ;;  %v349_v56 = vld [vmem:[%s11892_s1 + $0x998] sm:$0xff] }
  0x74   :  { %6479 = vmatprep.subr.bf16.mxu1 %v6478_v60  ;;  %v300_v60 = vld [vmem:[%s11892_s1 + $0x810] sm:$0xff]  ;;  %v6530_v63 = vpack.c.bf16 %v349_v56, %v348_v55  ;;  %v1450_v6 = vcombine.high %v8493_v57, %v8493_v57  ;;  %v327_v55 = vld [vmem:[%s11892_s1 + $0x8e8] sm:$0xff]  ;;  %v358_v56 = vld [vmem:[%s11892_s1 + $0x9e0] sm:$0xff] }
  0x75   :  { %6449 = vmatpush3.bf16.msra.mxu0 %v6448_v2  ;;  %v319_v2 = vld [vmem:[%s11892_s1 + $0x8a8] sm:$0xff]  ;;  %v6500_v7 = vpack.c.bf16 %v301_v61, %v300_v60  ;;  %v6518_v60 = vpack.c.bf16 %v327_v55, %v326_v32  ;;  %v310_v61 = vld [vmem:[%s11892_s1 + $0x860] sm:$0xff] }
  0x76   :  { %6451 = vmatprep.subr.bf16.mxu0 %v6450_v4  ;;  %v350_v4 = vld [vmem:[%s11892_s1 + $0x9a0] sm:$0xff]  ;;  %v6502_v9 = vpack.c.bf16 %v319_v2, %v318_v1  ;;  %v343_v1 = vld [vmem:[%s11892_s1 + $0x968] sm:$0xff]  ;;  %v328_v2 = vld [vmem:[%s11892_s1 + $0x8f0] sm:$0xff] }
  0x77   :  { %6481 = vmatpush3.bf16.msra.mxu1 %v6480_v3  ;;  %v1449_v3 = vcombine.high %v8484_v54, %v8484_v54  ;;  %v6534_v14 = vpack.c.bf16 %v351_v5, %v350_v4  ;;  %v360_v4 = vld [vmem:[%s11892_s1 + $0x9f0] sm:$0xff]  ;;  %v361_v5 = vld [vmem:[%s11892_s1 + $0x9f8] sm:$0xff]  ;;  %v367_v32 = vld [vmem:[%s11892_s1 + $0xa28] sm:$0xff] }
  0x78   :  { %6483 = vmatprep.subr.bf16.mxu1 %v6482_v8  ;;  %v6532_v8 = vpack.c.bf16 %v333_v0, %v332_v62  ;;  %v311_v62 = vld [vmem:[%s11892_s1 + $0x868] sm:$0xff]  ;;  %v398_v55 = vld [vmem:[%s11892_s1 + $0xb20] sm:$0xff] }
  0x79   :  { %6453 = vmatpush3.bf16.msra.mxu0 %v6452_v17  ;;  %v321_v17 = vld [vmem:[%s11892_s1 + $0x8b8] sm:$0xff] }
  0x7a   :  { %6455 = vmatprep.subr.bf16.mxu0 %v6454_v19  ;;  %v353_v19 = vld [vmem:[%s11892_s1 + $0x9b8] sm:$0xff]  ;;  %v6506_v22 = vpack.c.bf16 %v321_v17, %v320_v16  ;;  %v378_v16 = vld [vmem:[%s11892_s1 + $0xa80] sm:$0xff]  ;;  %v379_v17 = vld [vmem:[%s11892_s1 + $0xa88] sm:$0xff] }
  0x7b   :  { %6485 = vmatpush3.bf16.msra.mxu1 %v6484_v18  ;;  %v352_v18 = vld [vmem:[%s11892_s1 + $0x9b0] sm:$0xff] }
  0x7c   :  { %6487 = vmatprep.subr.bf16.mxu1 %v6486_v23  ;;  %v304_v23 = vld [vmem:[%s11892_s1 + $0x830] sm:$0xff]  ;;  %v6538_v26 = vpack.c.bf16 %v353_v19, %v352_v18  ;;  %v410_v18 = vld [vmem:[%s11892_s1 + $0xb80] sm:$0xff]  ;;  %v411_v19 = vld [vmem:[%s11892_s1 + $0xb88] sm:$0xff] }
  0x7d   :  { %6457 = vmatpush3.bf16.msra.mxu0 %v6456_v29  ;;  %v323_v29 = vld [vmem:[%s11892_s1 + $0x8c8] sm:$0xff]  ;;  %v6590_v27 = vpack.c.bf16 %v411_v19, %v410_v18  ;;  %v388_v18 = vld [vmem:[%s11892_s1 + $0xad0] sm:$0xff]  ;;  %v389_v19 = vld [vmem:[%s11892_s1 + $0xad8] sm:$0xff] }
  0x7e   :  { %6459 = vmatprep.subr.bf16.mxu0 %v6458_v33  ;;  %v6508_v33 = vpack.c.bf16 %v305_v24, %v304_v23  ;;  %v6510_v34 = vpack.c.bf16 %v323_v29, %v322_v28  ;;  %v6558_v23 = vpack.c.bf16 %v379_v17, %v378_v16  ;;  %v362_v24 = vld [vmem:[%s11892_s1 + $0xa00] sm:$0xff]  ;;  %v395_v28 = vld [vmem:[%s11892_s1 + $0xb08] sm:$0xff]  ;;  %v380_v29 = vld [vmem:[%s11892_s1 + $0xa90] sm:$0xff] }
  0x7f   :  { %6489 = vmatpush3.bf16.msra.mxu1 %v6488_v31  ;;  %v355_v31 = vld [vmem:[%s11892_s1 + $0x9c8] sm:$0xff] }
  0x80   :  { %6491 = vmatprep.subr.bf16.mxu1 %v6490_v36  ;;  %v307_v36 = vld [vmem:[%s11892_s1 + $0x848] sm:$0xff]  ;;  %v6542_v37 = vpack.c.bf16 %v355_v31, %v354_v30  ;;  %v381_v30 = vld [vmem:[%s11892_s1 + $0xa98] sm:$0xff] }
  0x81   :  { %6461 = vmatpush3.bf16.msra.mxu0 %v6460_v44  ;;  %v357_v44 = vld [vmem:[%s11892_s1 + $0x9d8] sm:$0xff]  ;;  %v403_v17 = vld [vmem:[%s11892_s1 + $0xb48] sm:$0xff] }
  0x82   :  { %6495 = vmatprep.subr.bf16.mxu0 %v6494_v46  ;;  %v6544_v46 = vpack.c.bf16 %v339_v38, %v338_v52  ;;  %v6546_v51 = vpack.c.bf16 %v357_v44, %v356_v42  ;;  %v6562_v52 = vpack.c.bf16 %v381_v30, %v380_v29  ;;  %v365_v38 = vld [vmem:[%s11892_s1 + $0xa18] sm:$0xff]  ;;  %v382_v44 = vld [vmem:[%s11892_s1 + $0xaa0] sm:$0xff] }
  0x83   :  { %6493 = vmatpush3.bf16.msra.mxu1 %v6492_v45  ;;  %v6512_v45 = vpack.c.bf16 %v307_v36, %v306_v35  ;;  %v6560_v35 = vpack.c.bf16 %v363_v25, %v362_v24  ;;  %v397_v42 = vld [vmem:[%s11892_s1 + $0xb18] sm:$0xff]  ;;  %v6578_v24 = vpack.c.bf16 %v389_v19, %v388_v18  ;;  %v372_v25 = vld [vmem:[%s11892_s1 + $0xa50] sm:$0xff]  ;;  %v390_v30 = vld [vmem:[%s11892_s1 + $0xae0] sm:$0xff] }
  0x84   :  { %6527 = vmatprep.subr.bf16.mxu1 %v6526_v50  ;;  %2279 = vmatmul.mubr.f32.vlgmr.msra.gmra.mrb[6].mxu0 %v8277_v12  ;;  %v302_v12 = vld [vmem:[%s11892_s1 + $0x820] sm:$0xff]  ;;  %v340_v50 = vld [vmem:[%s11892_s1 + $0x950] sm:$0xff]  ;;  %v405_v29 = vld [vmem:[%s11892_s1 + $0xb58] sm:$0xff] }
  0x85   :  { %6497 = vmatpush3.bf16.msra.mxu0 %v6496_v41  ;;  %2418 = vmatprep.mubr.f32.mxu0 %v1449_v3  ;;  %v6504_v20 = vpack.c.bf16 %v303_v11, %v302_v12  ;;  %v359_v41 = vld [vmem:[%s11892_s1 + $0x9e8] sm:$0xff]  ;;  %v329_v3 = vld [vmem:[%s11892_s1 + $0x8f8] sm:$0xff]  ;;  %v312_v12 = vld [vmem:[%s11892_s1 + $0x870] sm:$0xff] }
  0x86   :  { %2349 = vmatmul.mubr.f32.vlgmr.msra.gmra.mrb[6].mxu1 %v8286_v15  ;;  %6499 = vmatprep.subr.bf16.mxu0 %v6498_v59  ;;  %v335_v15 = vld [vmem:[%s11892_s1 + $0x928] sm:$0xff]  ;;  %v6548_v59 = vpack.c.bf16 %v341_v53, %v340_v50  ;;  %v6550_v0 = vpack.c.bf16 %v359_v41, %v358_v56  ;;  %v313_v11 = vld [vmem:[%s11892_s1 + $0x878] sm:$0xff]  ;;  %v384_v41 = vld [vmem:[%s11892_s1 + $0xab0] sm:$0xff] }
  0x87   :  { %6529 = vmatpush3.bf16.msra.mxu1 %v6528_v58  ;;  %2488 = vmatprep.mubr.f32.mxu1 %v1450_v6  ;;  %v6536_v21 = vpack.c.bf16 %v335_v15, %v334_v13  ;;  %v6516_v58 = vpack.c.bf16 %v309_v49, %v308_v48  ;;  %v6520_v6 = vpack.c.bf16 %v311_v62, %v310_v61  ;;  %v344_v13 = vld [vmem:[%s11892_s1 + $0x970] sm:$0xff]  ;;  %v345_v15 = vld [vmem:[%s11892_s1 + $0x978] sm:$0xff]  ;;  %v415_v48 = vld [vmem:[%s11892_s1 + $0xba8] sm:$0xff] }
  0x88   :  { %6531 = vmatprep.subr.bf16.mxu1 %v6530_v63  ;;  %v342_v63 = vld [vmem:[%s11892_s1 + $0x960] sm:$0xff]  ;;  %v460_v18 = vld [vmem:[%s11892_s1 + $0xd10] sm:$0xff] }
  0x89   :  { %6501 = vmatpush3.bf16.msra.mxu0 %v6500_v7  ;;  %v26_v7 = vld [vmem:[%s11891_s0 + $0x28] sm:$0xff] }
  0x8a   :  { %6503 = vmatprep.subr.bf16.mxu0 %v6502_v9  ;;  %v6522_v9 = vpack.c.bf16 %v329_v3, %v328_v2  ;;  %v8691_v31 = vrot.slane %v26_v7, %v7776_v10  ;;  %v400_v2 = vld [vmem:[%s11892_s1 + $0xb30] sm:$0xff] }
  0x8b   :  { %6533 = vmatpush3.bf16.msra.mxu1 %v6532_v8  ;;  %v6552_v8 = vpack.c.bf16 %v343_v1, %v342_v63  ;;  %v369_v1 = vld [vmem:[%s11892_s1 + $0xa38] sm:$0xff] }
  0x8c   :  { %6535 = vmatprep.subr.bf16.mxu1 %v6534_v14  ;;  %v6554_v14 = vpack.c.bf16 %v361_v5, %v360_v4  ;;  %v401_v4 = vld [vmem:[%s11892_s1 + $0xb38] sm:$0xff]  ;;  %v386_v5 = vld [vmem:[%s11892_s1 + $0xac0] sm:$0xff] }
  0x8d   :  { %6505 = vmatpush3.bf16.msra.mxu0 %v6504_v20  ;;  %v1451_v20 = vcombine.high %v26_v7, %v26_v7  ;;  %v418_v7 = vld [vmem:[%s11892_s1 + $0xbc0] sm:$0xff] }
  0x8e   :  { %6507 = vmatprep.subr.bf16.mxu0 %v6506_v22  ;;  %v6556_v22 = vpack.c.bf16 %v345_v15, %v344_v13  ;;  %v370_v13 = vld [vmem:[%s11892_s1 + $0xa40] sm:$0xff] }
  0x8f   :  { %6537 = vmatpush3.bf16.msra.mxu1 %v6536_v21  ;;  %v6524_v21 = vpack.c.bf16 %v313_v11, %v312_v12  ;;  %v6604_v12 = vpack.c.bf16 %v401_v4, %v400_v2  ;;  %v402_v15 = vld [vmem:[%s11892_s1 + $0xb40] sm:$0xff]  ;;  %v427_v2 = vld [vmem:[%s11892_s1 + $0xc08] sm:$0xff] }
  0x90   :  { %6539 = vmatprep.subr.bf16.mxu1 %v6538_v26  ;;  %v394_v26 = vld [vmem:[%s11892_s1 + $0xb00] sm:$0xff] }
  0x91   :  { %6509 = vmatpush3.bf16.msra.mxu0 %v6508_v33  ;;  %v412_v33 = vld [vmem:[%s11892_s1 + $0xb90] sm:$0xff]  ;;  %v6592_v36 = vpack.c.bf16 %v395_v28, %v394_v26  ;;  %v373_v26 = vld [vmem:[%s11892_s1 + $0xa58] sm:$0xff] }
  0x92   :  { %6511 = vmatprep.subr.bf16.mxu0 %v6510_v34  ;;  %v8700_v34 = vrot.slane %v1451_v20, %v7776_v10  ;;  %v420_v20 = vld [vmem:[%s11892_s1 + $0xbd0] sm:$0xff] }
  0x93   :  { %6541 = vmatpush3.bf16.msra.mxu1 %v6540_v43  ;;  %v413_v43 = vld [vmem:[%s11892_s1 + $0xb98] sm:$0xff] }
  0x94   :  { %6543 = vmatprep.subr.bf16.mxu1 %v6542_v37  ;;  %v364_v37 = vld [vmem:[%s11892_s1 + $0xa10] sm:$0xff]  ;;  %v6594_v40 = vpack.c.bf16 %v413_v43, %v412_v33  ;;  %v1467_v49 = vcombine.high %v8700_v34, %v8700_v34  ;;  %v391_v33 = vld [vmem:[%s11892_s1 + $0xae8] sm:$0xff]  ;;  %v422_v43 = vld [vmem:[%s11892_s1 + $0xbe0] sm:$0xff] }
  0x95   :  { %6513 = vmatpush3.bf16.msra.mxu0 %v6512_v45  ;;  %v383_v45 = vld [vmem:[%s11892_s1 + $0xaa8] sm:$0xff]  ;;  %v6564_v50 = vpack.c.bf16 %v365_v38, %v364_v37  ;;  %v6582_v37 = vpack.c.bf16 %v391_v33, %v390_v30  ;;  %v374_v38 = vld [vmem:[%s11892_s1 + $0xa60] sm:$0xff] }
  0x96   :  { %6515 = vmatprep.subr.bf16.mxu0 %v6514_v47  ;;  %v414_v47 = vld [vmem:[%s11892_s1 + $0xba0] sm:$0xff]  ;;  %v6566_v53 = vpack.c.bf16 %v383_v45, %v382_v44  ;;  %v407_v44 = vld [vmem:[%s11892_s1 + $0xb68] sm:$0xff]  ;;  %v392_v45 = vld [vmem:[%s11892_s1 + $0xaf0] sm:$0xff] }
  0x97   :  { %6545 = vmatpush3.bf16.msra.mxu1 %v6544_v46  ;;  %v1466_v46 = vcombine.high %v8691_v31, %v8691_v31  ;;  %v6598_v56 = vpack.c.bf16 %v415_v48, %v414_v47  ;;  %v424_v47 = vld [vmem:[%s11892_s1 + $0xbf0] sm:$0xff]  ;;  %v425_v48 = vld [vmem:[%s11892_s1 + $0xbf8] sm:$0xff]  ;;  %v431_v30 = vld [vmem:[%s11892_s1 + $0xc28] sm:$0xff] }
  0x98   :  { %6547 = vmatprep.subr.bf16.mxu1 %v6546_v51  ;;  %v6596_v51 = vpack.c.bf16 %v397_v42, %v396_v39  ;;  %v375_v39 = vld [vmem:[%s11892_s1 + $0xa68] sm:$0xff]  ;;  %v462_v33 = vld [vmem:[%s11892_s1 + $0xd20] sm:$0xff] }
  0x99   :  { %6517 = vmatpush3.bf16.msra.mxu0 %v6516_v58  ;;  %v385_v58 = vld [vmem:[%s11892_s1 + $0xab8] sm:$0xff] }
  0x9a   :  { %6519 = vmatprep.subr.bf16.mxu0 %v6518_v60  ;;  %v417_v60 = vld [vmem:[%s11892_s1 + $0xbb8] sm:$0xff]  ;;  %v6570_v63 = vpack.c.bf16 %v385_v58, %v384_v41  ;;  %v442_v41 = vld [vmem:[%s11892_s1 + $0xc80] sm:$0xff]  ;;  %v443_v58 = vld [vmem:[%s11892_s1 + $0xc88] sm:$0xff] }
  0x9b   :  { %6549 = vmatpush3.bf16.msra.mxu1 %v6548_v59  ;;  %v416_v59 = vld [vmem:[%s11892_s1 + $0xbb0] sm:$0xff] }
  0x9c   :  { %6551 = vmatprep.subr.bf16.mxu1 %v6550_v0  ;;  %v368_v0 = vld [vmem:[%s11892_s1 + $0xa30] sm:$0xff]  ;;  %v6602_v3 = vpack.c.bf16 %v417_v60, %v416_v59  ;;  %v474_v59 = vld [vmem:[%s11892_s1 + $0xd80] sm:$0xff]  ;;  %v475_v60 = vld [vmem:[%s11892_s1 + $0xd88] sm:$0xff] }
  0x9d   :  { %6521 = vmatpush3.bf16.msra.mxu0 %v6520_v6  ;;  %v387_v6 = vld [vmem:[%s11892_s1 + $0xac8] sm:$0xff]  ;;  %v6654_v4 = vpack.c.bf16 %v475_v60, %v474_v59  ;;  %v452_v59 = vld [vmem:[%s11892_s1 + $0xcd0] sm:$0xff]  ;;  %v453_v60 = vld [vmem:[%s11892_s1 + $0xcd8] sm:$0xff] }
  0x9e   :  { %6523 = vmatprep.subr.bf16.mxu0 %v6522_v9  ;;  %v6572_v9 = vpack.c.bf16 %v369_v1, %v368_v0  ;;  %v6574_v11 = vpack.c.bf16 %v387_v6, %v386_v5  ;;  %v6622_v0 = vpack.c.bf16 %v443_v58, %v442_v41  ;;  %v426_v1 = vld [vmem:[%s11892_s1 + $0xc00] sm:$0xff]  ;;  %v459_v5 = vld [vmem:[%s11892_s1 + $0xd08] sm:$0xff]  ;;  %v444_v6 = vld [vmem:[%s11892_s1 + $0xc90] sm:$0xff] }
  0x9f   :  { %6553 = vmatpush3.bf16.msra.mxu1 %v6552_v8  ;;  %v419_v8 = vld [vmem:[%s11892_s1 + $0xbc8] sm:$0xff] }
  0xa0   :  { %6555 = vmatprep.subr.bf16.mxu1 %v6554_v14  ;;  %v371_v14 = vld [vmem:[%s11892_s1 + $0xa48] sm:$0xff]  ;;  %v6606_v16 = vpack.c.bf16 %v419_v8, %v418_v7  ;;  %v445_v7 = vld [vmem:[%s11892_s1 + $0xc98] sm:$0xff] }
  0xa1   :  { %6525 = vmatpush3.bf16.msra.mxu0 %v6524_v21  ;;  %v421_v21 = vld [vmem:[%s11892_s1 + $0xbd8] sm:$0xff]  ;;  %v467_v58 = vld [vmem:[%s11892_s1 + $0xd48] sm:$0xff] }
  0xa2   :  { %6559 = vmatprep.subr.bf16.mxu0 %v6558_v23  ;;  %v6608_v23 = vpack.c.bf16 %v403_v17, %v402_v15  ;;  %v6610_v28 = vpack.c.bf16 %v421_v21, %v420_v20  ;;  %v6626_v15 = vpack.c.bf16 %v445_v7, %v444_v6  ;;  %v429_v17 = vld [vmem:[%s11892_s1 + $0xc18] sm:$0xff]  ;;  %v446_v21 = vld [vmem:[%s11892_s1 + $0xca0] sm:$0xff] }
  0xa3   :  { %6557 = vmatpush3.bf16.msra.mxu1 %v6556_v22  ;;  %v6576_v22 = vpack.c.bf16 %v371_v14, %v370_v13  ;;  %v6624_v13 = vpack.c.bf16 %v427_v2, %v426_v1  ;;  %v461_v20 = vld [vmem:[%s11892_s1 + $0xd18] sm:$0xff]  ;;  %v6642_v1 = vpack.c.bf16 %v453_v60, %v452_v59  ;;  %v436_v2 = vld [vmem:[%s11892_s1 + $0xc50] sm:$0xff]  ;;  %v454_v7 = vld [vmem:[%s11892_s1 + $0xce0] sm:$0xff] }
  0xa4   :  { %6591 = vmatprep.subr.bf16.mxu1 %v6590_v27  ;;  %2419 = vmatmul.mubr.f32.vlgmr.msra.gmra.mrb[8].mxu0 %v8484_v54  ;;  %v366_v54 = vld [vmem:[%s11892_s1 + $0xa20] sm:$0xff]  ;;  %v404_v27 = vld [vmem:[%s11892_s1 + $0xb50] sm:$0xff]  ;;  %v469_v6 = vld [vmem:[%s11892_s1 + $0xd58] sm:$0xff] }
  0xa5   :  { %6561 = vmatpush3.bf16.msra.mxu0 %v6560_v35  ;;  %2558 = vmatprep.mubr.f32.mxu0 %v1466_v46  ;;  %v6568_v61 = vpack.c.bf16 %v367_v32, %v366_v54  ;;  %v423_v35 = vld [vmem:[%s11892_s1 + $0xbe8] sm:$0xff]  ;;  %v393_v46 = vld [vmem:[%s11892_s1 + $0xaf8] sm:$0xff]  ;;  %v376_v54 = vld [vmem:[%s11892_s1 + $0xa70] sm:$0xff] }
  0xa6   :  { %2489 = vmatmul.mubr.f32.vlgmr.msra.gmra.mrb[8].mxu1 %v8493_v57  ;;  %6563 = vmatprep.subr.bf16.mxu0 %v6562_v52  ;;  %v399_v57 = vld [vmem:[%s11892_s1 + $0xb28] sm:$0xff]  ;;  %v6612_v52 = vpack.c.bf16 %v405_v29, %v404_v27  ;;  %v6614_v42 = vpack.c.bf16 %v423_v35, %v422_v43  ;;  %v377_v32 = vld [vmem:[%s11892_s1 + $0xa78] sm:$0xff]  ;;  %v448_v35 = vld [vmem:[%s11892_s1 + $0xcb0] sm:$0xff] }
  0xa7   :  { %6593 = vmatpush3.bf16.msra.mxu1 %v6592_v36  ;;  %2628 = vmatprep.mubr.f32.mxu1 %v1467_v49  ;;  %v6600_v62 = vpack.c.bf16 %v399_v57, %v398_v55  ;;  %v6580_v36 = vpack.c.bf16 %v373_v26, %v372_v25  ;;  %v6584_v49 = vpack.c.bf16 %v375_v39, %v374_v38  ;;  %v408_v55 = vld [vmem:[%s11892_s1 + $0xb70] sm:$0xff]  ;;  %v409_v57 = vld [vmem:[%s11892_s1 + $0xb78] sm:$0xff]  ;;  %v479_v25 = vld [vmem:[%s11892_s1 + $0xda8] sm:$0xff] }
  0xa8   :  { %6595 = vmatprep.subr.bf16.mxu1 %v6594_v40  ;;  %v406_v40 = vld [vmem:[%s11892_s1 + $0xb60] sm:$0xff]  ;;  %v524_v59 = vld [vmem:[%s11892_s1 + $0xf10] sm:$0xff] }
  0xa9   :  { %6565 = vmatpush3.bf16.msra.mxu0 %v6564_v50  ;;  %v27_v50 = vld [vmem:[%s11891_s0 + $0x30] sm:$0xff] }
  0xaa   :  { %6567 = vmatprep.subr.bf16.mxu0 %v6566_v53  ;;  %v6586_v53 = vpack.c.bf16 %v393_v46, %v392_v45  ;;  %v8898_v8 = vrot.slane %v27_v50, %v7776_v10  ;;  %v464_v45 = vld [vmem:[%s11892_s1 + $0xd30] sm:$0xff] }
  0xab   :  { %6597 = vmatpush3.bf16.msra.mxu1 %v6596_v51  ;;  %v6616_v51 = vpack.c.bf16 %v407_v44, %v406_v40  ;;  %v433_v44 = vld [vmem:[%s11892_s1 + $0xc38] sm:$0xff] }
  0xac   :  { %6599 = vmatprep.subr.bf16.mxu1 %v6598_v56  ;;  %v6618_v56 = vpack.c.bf16 %v425_v48, %v424_v47  ;;  %v465_v47 = vld [vmem:[%s11892_s1 + $0xd38] sm:$0xff]  ;;  %v450_v48 = vld [vmem:[%s11892_s1 + $0xcc0] sm:$0xff] }
  0xad   :  { %6569 = vmatpush3.bf16.msra.mxu0 %v6568_v61  ;;  %v1468_v61 = vcombine.high %v27_v50, %v27_v50  ;;  %v482_v50 = vld [vmem:[%s11892_s1 + $0xdc0] sm:$0xff] }
  0xae   :  { %6571 = vmatprep.subr.bf16.mxu0 %v6570_v63  ;;  %v6620_v63 = vpack.c.bf16 %v409_v57, %v408_v55  ;;  %v434_v55 = vld [vmem:[%s11892_s1 + $0xc40] sm:$0xff] }
  0xaf   :  { %6601 = vmatpush3.bf16.msra.mxu1 %v6600_v62  ;;  %v6588_v62 = vpack.c.bf16 %v377_v32, %v376_v54  ;;  %v6668_v54 = vpack.c.bf16 %v465_v47, %v464_v45  ;;  %v466_v57 = vld [vmem:[%s11892_s1 + $0xd40] sm:$0xff]  ;;  %v491_v45 = vld [vmem:[%s11892_s1 + $0xe08] sm:$0xff] }
  0xb0   :  { %6603 = vmatprep.subr.bf16.mxu1 %v6602_v3  ;;  %v458_v3 = vld [vmem:[%s11892_s1 + $0xd00] sm:$0xff] }
  0xb1   :  { %6573 = vmatpush3.bf16.msra.mxu0 %v6572_v9  ;;  %v476_v9 = vld [vmem:[%s11892_s1 + $0xd90] sm:$0xff]  ;;  %v6656_v14 = vpack.c.bf16 %v459_v5, %v458_v3  ;;  %v437_v3 = vld [vmem:[%s11892_s1 + $0xc58] sm:$0xff] }
  0xb2   :  { %6575 = vmatprep.subr.bf16.mxu0 %v6574_v11  ;;  %v8907_v11 = vrot.slane %v1468_v61, %v7776_v10  ;;  %v484_v61 = vld [vmem:[%s11892_s1 + $0xdd0] sm:$0xff] }
  0xb3   :  { %6605 = vmatpush3.bf16.msra.mxu1 %v6604_v12  ;;  %v477_v12 = vld [vmem:[%s11892_s1 + $0xd98] sm:$0xff] }
  0xb4   :  { %6607 = vmatprep.subr.bf16.mxu1 %v6606_v16  ;;  %v428_v16 = vld [vmem:[%s11892_s1 + $0xc10] sm:$0xff]  ;;  %v6658_v19 = vpack.c.bf16 %v477_v12, %v476_v9  ;;  %v1484_v26 = vcombine.high %v8907_v11, %v8907_v11  ;;  %v455_v9 = vld [vmem:[%s11892_s1 + $0xce8] sm:$0xff]  ;;  %v486_v12 = vld [vmem:[%s11892_s1 + $0xde0] sm:$0xff] }
  0xb5   :  { %6577 = vmatpush3.bf16.msra.mxu0 %v6576_v22  ;;  %v447_v22 = vld [vmem:[%s11892_s1 + $0xca8] sm:$0xff]  ;;  %v6628_v27 = vpack.c.bf16 %v429_v17, %v428_v16  ;;  %v6646_v16 = vpack.c.bf16 %v455_v9, %v454_v7  ;;  %v438_v17 = vld [vmem:[%s11892_s1 + $0xc60] sm:$0xff] }
  0xb6   :  { %6579 = vmatprep.subr.bf16.mxu0 %v6578_v24  ;;  %v478_v24 = vld [vmem:[%s11892_s1 + $0xda0] sm:$0xff]  ;;  %v6630_v29 = vpack.c.bf16 %v447_v22, %v446_v21  ;;  %v471_v21 = vld [vmem:[%s11892_s1 + $0xd68] sm:$0xff]  ;;  %v456_v22 = vld [vmem:[%s11892_s1 + $0xcf0] sm:$0xff] }
  0xb7   :  { %6609 = vmatpush3.bf16.msra.mxu1 %v6608_v23  ;;  %v1483_v23 = vcombine.high %v8898_v8, %v8898_v8  ;;  %v6662_v43 = vpack.c.bf16 %v479_v25, %v478_v24  ;;  %v488_v24 = vld [vmem:[%s11892_s1 + $0xdf0] sm:$0xff]  ;;  %v489_v25 = vld [vmem:[%s11892_s1 + $0xdf8] sm:$0xff]  ;;  %v495_v7 = vld [vmem:[%s11892_s1 + $0xe28] sm:$0xff] }
  0xb8   :  { %6611 = vmatprep.subr.bf16.mxu1 %v6610_v28  ;;  %v6660_v28 = vpack.c.bf16 %v461_v20, %v460_v18  ;;  %v439_v18 = vld [vmem:[%s11892_s1 + $0xc68] sm:$0xff]  ;;  %v526_v9 = vld [vmem:[%s11892_s1 + $0xf20] sm:$0xff] }
  0xb9   :  { %6581 = vmatpush3.bf16.msra.mxu0 %v6580_v36  ;;  %v449_v36 = vld [vmem:[%s11892_s1 + $0xcb8] sm:$0xff] }
  0xba   :  { %6583 = vmatprep.subr.bf16.mxu0 %v6582_v37  ;;  %v481_v37 = vld [vmem:[%s11892_s1 + $0xdb8] sm:$0xff]  ;;  %v6634_v40 = vpack.c.bf16 %v449_v36, %v448_v35  ;;  %v506_v35 = vld [vmem:[%s11892_s1 + $0xe80] sm:$0xff]  ;;  %v507_v36 = vld [vmem:[%s11892_s1 + $0xe88] sm:$0xff] }
  0xbb   :  { %6613 = vmatpush3.bf16.msra.mxu1 %v6612_v52  ;;  %v480_v52 = vld [vmem:[%s11892_s1 + $0xdb0] sm:$0xff] }
  0xbc   :  { %6615 = vmatprep.subr.bf16.mxu1 %v6614_v42  ;;  %v432_v42 = vld [vmem:[%s11892_s1 + $0xc30] sm:$0xff]  ;;  %v6666_v46 = vpack.c.bf16 %v481_v37, %v480_v52  ;;  %v538_v52 = vld [vmem:[%s11892_s1 + $0xf80] sm:$0xff]  ;;  %v539_v37 = vld [vmem:[%s11892_s1 + $0xf88] sm:$0xff] }
  0xbd   :  { %6585 = vmatpush3.bf16.msra.mxu0 %v6584_v49  ;;  %v451_v49 = vld [vmem:[%s11892_s1 + $0xcc8] sm:$0xff]  ;;  %v6718_v47 = vpack.c.bf16 %v539_v37, %v538_v52  ;;  %v516_v52 = vld [vmem:[%s11892_s1 + $0xed0] sm:$0xff]  ;;  %v517_v37 = vld [vmem:[%s11892_s1 + $0xed8] sm:$0xff] }
  0xbe   :  { %6587 = vmatprep.subr.bf16.mxu0 %v6586_v53  ;;  %v6636_v53 = vpack.c.bf16 %v433_v44, %v432_v42  ;;  %v6638_v32 = vpack.c.bf16 %v451_v49, %v450_v48  ;;  %v6686_v42 = vpack.c.bf16 %v507_v36, %v506_v35  ;;  %v490_v44 = vld [vmem:[%s11892_s1 + $0xe00] sm:$0xff]  ;;  %v523_v48 = vld [vmem:[%s11892_s1 + $0xf08] sm:$0xff]  ;;  %v508_v49 = vld [vmem:[%s11892_s1 + $0xe90] sm:$0xff] }
  0xbf   :  { %6617 = vmatpush3.bf16.msra.mxu1 %v6616_v51  ;;  %v483_v51 = vld [vmem:[%s11892_s1 + $0xdc8] sm:$0xff] }
  0xc0   :  { %6619 = vmatprep.subr.bf16.mxu1 %v6618_v56  ;;  %v435_v56 = vld [vmem:[%s11892_s1 + $0xc48] sm:$0xff]  ;;  %v6670_v41 = vpack.c.bf16 %v483_v51, %v482_v50  ;;  %v509_v50 = vld [vmem:[%s11892_s1 + $0xe98] sm:$0xff] }
  0xc1   :  { %6589 = vmatpush3.bf16.msra.mxu0 %v6588_v62  ;;  %v485_v62 = vld [vmem:[%s11892_s1 + $0xdd8] sm:$0xff]  ;;  %v531_v36 = vld [vmem:[%s11892_s1 + $0xf48] sm:$0xff] }
  0xc2   :  { %6623 = vmatprep.subr.bf16.mxu0 %v6622_v0  ;;  %v6672_v0 = vpack.c.bf16 %v467_v58, %v466_v57  ;;  %v6674_v5 = vpack.c.bf16 %v485_v62, %v484_v61  ;;  %v6690_v57 = vpack.c.bf16 %v509_v50, %v508_v49  ;;  %v493_v58 = vld [vmem:[%s11892_s1 + $0xe18] sm:$0xff]  ;;  %v510_v62 = vld [vmem:[%s11892_s1 + $0xea0] sm:$0xff] }
  0xc3   :  { %6621 = vmatpush3.bf16.msra.mxu1 %v6620_v63  ;;  %v6640_v63 = vpack.c.bf16 %v435_v56, %v434_v55  ;;  %v6688_v55 = vpack.c.bf16 %v491_v45, %v490_v44  ;;  %v525_v61 = vld [vmem:[%s11892_s1 + $0xf18] sm:$0xff]  ;;  %v6706_v44 = vpack.c.bf16 %v517_v37, %v516_v52  ;;  %v500_v45 = vld [vmem:[%s11892_s1 + $0xe50] sm:$0xff]  ;;  %v518_v50 = vld [vmem:[%s11892_s1 + $0xee0] sm:$0xff] }
  0xc4   :  { %6655 = vmatprep.subr.bf16.mxu1 %v6654_v4  ;;  %2559 = vmatmul.mubr.f32.vlgmr.msra.gmra.mrb[10].mxu0 %v8691_v31  ;;  %v430_v31 = vld [vmem:[%s11892_s1 + $0xc20] sm:$0xff]  ;;  %v468_v4 = vld [vmem:[%s11892_s1 + $0xd50] sm:$0xff]  ;;  %v533_v49 = vld [vmem:[%s11892_s1 + $0xf58] sm:$0xff] }
  0xc5   :  { %6625 = vmatpush3.bf16.msra.mxu0 %v6624_v13  ;;  %2698 = vmatprep.mubr.f32.mxu0 %v1483_v23  ;;  %v6632_v38 = vpack.c.bf16 %v431_v30, %v430_v31  ;;  %v487_v13 = vld [vmem:[%s11892_s1 + $0xde8] sm:$0xff]  ;;  %v457_v23 = vld [vmem:[%s11892_s1 + $0xcf8] sm:$0xff]  ;;  %v440_v31 = vld [vmem:[%s11892_s1 + $0xc70] sm:$0xff] }
  0xc6   :  { %2629 = vmatmul.mubr.f32.vlgmr.msra.gmra.mrb[10].mxu1 %v8700_v34  ;;  %6627 = vmatprep.subr.bf16.mxu0 %v6626_v15  ;;  %v463_v34 = vld [vmem:[%s11892_s1 + $0xd28] sm:$0xff]  ;;  %v6676_v15 = vpack.c.bf16 %v469_v6, %v468_v4  ;;  %v6678_v20 = vpack.c.bf16 %v487_v13, %v486_v12  ;;  %v441_v30 = vld [vmem:[%s11892_s1 + $0xc78] sm:$0xff]  ;;  %v512_v13 = vld [vmem:[%s11892_s1 + $0xeb0] sm:$0xff] }
  0xc7   :  { %6657 = vmatpush3.bf16.msra.mxu1 %v6656_v14  ;;  %2768 = vmatprep.mubr.f32.mxu1 %v1484_v26  ;;  %v6664_v39 = vpack.c.bf16 %v463_v34, %v462_v33  ;;  %v6644_v14 = vpack.c.bf16 %v437_v3, %v436_v2  ;;  %v6648_v26 = vpack.c.bf16 %v439_v18, %v438_v17  ;;  %v472_v33 = vld [vmem:[%s11892_s1 + $0xd70] sm:$0xff]  ;;  %v473_v34 = vld [vmem:[%s11892_s1 + $0xd78] sm:$0xff]  ;;  %v543_v2 = vld [vmem:[%s11892_s1 + $0xfa8] sm:$0xff] }
  0xc8   :  { %6659 = vmatprep.subr.bf16.mxu1 %v6658_v19  ;;  %v470_v19 = vld [vmem:[%s11892_s1 + $0xd60] sm:$0xff]  ;;  %v604_v37 = vld [vmem:[%s11892_s1 + $0x1190] sm:$0xff] }
  0xc9   :  { %6629 = vmatpush3.bf16.msra.mxu0 %v6628_v27  ;;  %v28_v27 = vld [vmem:[%s11891_s0 + $0x38] sm:$0xff] }
  0xca   :  { %6631 = vmatprep.subr.bf16.mxu0 %v6630_v29  ;;  %v6650_v29 = vpack.c.bf16 %v457_v23, %v456_v22  ;;  %v9105_v51 = vrot.slane %v28_v27, %v7776_v10  ;;  %v528_v22 = vld [vmem:[%s11892_s1 + $0xf30] sm:$0xff] }
  0xcb   :  { %6661 = vmatpush3.bf16.msra.mxu1 %v6660_v28  ;;  %v6680_v28 = vpack.c.bf16 %v471_v21, %v470_v19  ;;  %v497_v21 = vld [vmem:[%s11892_s1 + $0xe38] sm:$0xff] }
  0xcc   :  { %6663 = vmatprep.subr.bf16.mxu1 %v6662_v43  ;;  %v6682_v43 = vpack.c.bf16 %v489_v25, %v488_v24  ;;  %v529_v24 = vld [vmem:[%s11892_s1 + $0xf38] sm:$0xff]  ;;  %v514_v25 = vld [vmem:[%s11892_s1 + $0xec0] sm:$0xff] }
  0xcd   :  { %6633 = vmatpush3.bf16.msra.mxu0 %v6632_v38  ;;  %v1485_v38 = vcombine.high %v28_v27, %v28_v27  ;;  %v546_v27 = vld [vmem:[%s11892_s1 + $0xfc0] sm:$0xff] }
  0xce   :  { %6635 = vmatprep.subr.bf16.mxu0 %v6634_v40  ;;  %v6684_v40 = vpack.c.bf16 %v473_v34, %v472_v33  ;;  %v498_v33 = vld [vmem:[%s11892_s1 + $0xe40] sm:$0xff] }
  0xcf   :  { %6665 = vmatpush3.bf16.msra.mxu1 %v6664_v39  ;;  %v6652_v39 = vpack.c.bf16 %v441_v30, %v440_v31  ;;  %v6732_v31 = vpack.c.bf16 %v529_v24, %v528_v22  ;;  %v530_v34 = vld [vmem:[%s11892_s1 + $0xf40] sm:$0xff]  ;;  %v571_v22 = vld [vmem:[%s11892_s1 + $0x1088] sm:$0xff] }
  0xd0   :  { %6667 = vmatprep.subr.bf16.mxu1 %v6666_v46  ;;  %v522_v46 = vld [vmem:[%s11892_s1 + $0xf00] sm:$0xff]  ;;  %v603_v24 = vld [vmem:[%s11892_s1 + $0x1188] sm:$0xff] }
  0xd1   :  { %6637 = vmatpush3.bf16.msra.mxu0 %v6636_v53  ;;  %v540_v53 = vld [vmem:[%s11892_s1 + $0xf90] sm:$0xff]  ;;  %v6720_v56 = vpack.c.bf16 %v523_v48, %v522_v46  ;;  %v501_v46 = vld [vmem:[%s11892_s1 + $0xe58] sm:$0xff] }
  0xd2   :  { %6639 = vmatprep.subr.bf16.mxu0 %v6638_v32  ;;  %v9114_v32 = vrot.slane %v1485_v38, %v7776_v10  ;;  %v548_v38 = vld [vmem:[%s11892_s1 + $0xfd0] sm:$0xff] }
  0xd3   :  { %6669 = vmatpush3.bf16.msra.mxu1 %v6668_v54  ;;  %v541_v54 = vld [vmem:[%s11892_s1 + $0xf98] sm:$0xff] }
  0xd4   :  { %6671 = vmatprep.subr.bf16.mxu1 %v6670_v41  ;;  %v492_v41 = vld [vmem:[%s11892_s1 + $0xe10] sm:$0xff]  ;;  %v6722_v60 = vpack.c.bf16 %v541_v54, %v540_v53  ;;  %v1501_v3 = vcombine.high %v9114_v32, %v9114_v32  ;;  %v519_v53 = vld [vmem:[%s11892_s1 + $0xee8] sm:$0xff]  ;;  %v550_v54 = vld [vmem:[%s11892_s1 + $0xfe0] sm:$0xff] }
  0xd5   :  { %6641 = vmatpush3.bf16.msra.mxu0 %v6640_v63  ;;  %v511_v63 = vld [vmem:[%s11892_s1 + $0xea8] sm:$0xff]  ;;  %v6692_v4 = vpack.c.bf16 %v493_v58, %v492_v41  ;;  %v6710_v41 = vpack.c.bf16 %v519_v53, %v518_v50  ;;  %v502_v58 = vld [vmem:[%s11892_s1 + $0xe60] sm:$0xff] }
  0xd6   :  { %6643 = vmatprep.subr.bf16.mxu0 %v6642_v1  ;;  %v542_v1 = vld [vmem:[%s11892_s1 + $0xfa0] sm:$0xff]  ;;  %v6694_v6 = vpack.c.bf16 %v511_v63, %v510_v62  ;;  %v535_v63 = vld [vmem:[%s11892_s1 + $0xf68] sm:$0xff] }
  0xd7   :  { %6673 = vmatpush3.bf16.msra.mxu1 %v6672_v0  ;;  %v1500_v0 = vcombine.high %v9105_v51, %v9105_v51  ;;  %v6726_v12 = vpack.c.bf16 %v543_v2, %v542_v1  ;;  %v521_v1 = vld [vmem:[%s11892_s1 + $0xef8] sm:$0xff]  ;;  %v4766_v2 = vld [vmem:[%s11893_s2] ss:$0 sm:$0xff]  ;;  %v575_v53 = vld [vmem:[%s11892_s1 + $0x10a8] sm:$0xff] }
  0xd8   :  { %6675 = vmatprep.subr.bf16.mxu1 %v6674_v5  ;;  %v6724_v5 = vpack.c.bf16 %v525_v61, %v524_v59  ;;  %v503_v59 = vld [vmem:[%s11892_s1 + $0xe68] sm:$0xff]  ;;  %v574_v50 = vld [vmem:[%s11892_s1 + $0x10a0] sm:$0xff] }
  0xd9   :  { %6645 = vmatpush3.bf16.msra.mxu0 %v6644_v14  ;;  %v513_v14 = vld [vmem:[%s11892_s1 + $0xeb8] sm:$0xff] }
  0xda   :  { %6647 = vmatprep.subr.bf16.mxu0 %v6646_v16  ;;  %v545_v16 = vld [vmem:[%s11892_s1 + $0xfb8] sm:$0xff]  ;;  %v6698_v19 = vpack.c.bf16 %v513_v14, %v512_v13 }
  0xdb   :  { %6677 = vmatpush3.bf16.msra.mxu1 %v6676_v15  ;;  %v544_v15 = vld [vmem:[%s11892_s1 + $0xfb0] sm:$0xff] }
  0xdc   :  { %6679 = vmatprep.subr.bf16.mxu1 %v6678_v20  ;;  %v496_v20 = vld [vmem:[%s11892_s1 + $0xe30] sm:$0xff]  ;;  %v6730_v23 = vpack.c.bf16 %v545_v16, %v544_v15  ;;  %v505_v16 = vld [vmem:[%s11892_s1 + $0xe78] sm:$0xff] }
  0xdd   :  { %6649 = vmatpush3.bf16.msra.mxu0 %v6648_v26  ;;  %v515_v26 = vld [vmem:[%s11892_s1 + $0xec8] sm:$0xff]  ;;  %v504_v15 = vld [vmem:[%s11892_s1 + $0xe70] sm:$0xff] }
  0xde   :  { %6651 = vmatprep.subr.bf16.mxu0 %v6650_v29  ;;  %v6700_v29 = vpack.c.bf16 %v497_v21, %v496_v20  ;;  %v6702_v30 = vpack.c.bf16 %v515_v26, %v514_v25  ;;  %v537_v20 = vld [vmem:[%s11892_s1 + $0xf78] sm:$0xff]  ;;  %v570_v21 = vld [vmem:[%s11892_s1 + $0x1080] sm:$0xff] }
  0xdf   :  { %6681 = vmatpush3.bf16.msra.mxu1 %v6680_v28  ;;  %v547_v28 = vld [vmem:[%s11892_s1 + $0xfc8] sm:$0xff] }
  0xe0   :  { %6683 = vmatprep.subr.bf16.mxu1 %v6682_v43  ;;  %v499_v43 = vld [vmem:[%s11892_s1 + $0xe48] sm:$0xff]  ;;  %v6734_v35 = vpack.c.bf16 %v547_v28, %v546_v27  ;;  %v6716_v27 = vpack.c.bf16 %v505_v16, %v504_v15 }
  0xe1   :  { %6653 = vmatpush3.bf16.msra.mxu0 %v6652_v39  ;;  %v549_v39 = vld [vmem:[%s11892_s1 + $0xfd8] sm:$0xff]  ;;  %v611_v15 = vld [vmem:[%s11892_s1 + $0x11c8] sm:$0xff] }
  0xe2   :  { %6687 = vmatprep.subr.bf16.mxu0 %v6686_v42  ;;  %v6736_v42 = vpack.c.bf16 %v531_v36, %v530_v34  ;;  %v6738_v48 = vpack.c.bf16 %v549_v39, %v548_v38  ;;  %v587_v34 = vld [vmem:[%s11892_s1 + $0x1108] sm:$0xff]  ;;  %v573_v36 = vld [vmem:[%s11892_s1 + $0x1098] sm:$0xff] }
  0xe3   :  { %6685 = vmatpush3.bf16.msra.mxu1 %v6684_v40  ;;  %v6704_v40 = vpack.c.bf16 %v499_v43, %v498_v33  ;;  %v586_v33 = vld [vmem:[%s11892_s1 + $0x1100] sm:$0xff]  ;;  %v605_v38 = vld [vmem:[%s11892_s1 + $0x1198] sm:$0xff] }
  0xe4   :  { %6719 = vmatprep.subr.bf16.mxu1 %v6718_v47  ;;  %2699 = vmatmul.mubr.f32.vlgmr.msra.gmra.mrb[12].mxu0 %v8898_v8  ;;  %v494_v8 = vld [vmem:[%s11892_s1 + $0xe20] sm:$0xff]  ;;  %v532_v47 = vld [vmem:[%s11892_s1 + $0xf50] sm:$0xff] }
  0xe5   :  { %6689 = vmatpush3.bf16.msra.mxu0 %v6688_v55  ;;  %2838 = vmatprep.mubr.f32.mxu0 %v1500_v0  ;;  %v6696_v17 = vpack.c.bf16 %v495_v7, %v494_v8  ;;  %v551_v55 = vld [vmem:[%s11892_s1 + $0xfe8] sm:$0xff]  ;;  %v520_v0 = vld [vmem:[%s11892_s1 + $0xef0] sm:$0xff] }
  0xe6   :  { %2769 = vmatmul.mubr.f32.vlgmr.msra.gmra.mrb[12].mxu1 %v8907_v11  ;;  %6691 = vmatprep.subr.bf16.mxu0 %v6690_v57  ;;  %v527_v11 = vld [vmem:[%s11892_s1 + $0xf28] sm:$0xff]  ;;  %v6740_v57 = vpack.c.bf16 %v533_v49, %v532_v47  ;;  %v6742_v62 = vpack.c.bf16 %v551_v55, %v550_v54  ;;  %v6714_v14 = vpack.c.bf16 %v521_v1, %v520_v0  ;;  %v588_v47 = vld [vmem:[%s11892_s1 + $0x1110] sm:$0xff]  ;;  %v589_v49 = vld [vmem:[%s11892_s1 + $0x1118] sm:$0xff] }
  0xe7   :  { %6721 = vmatpush3.bf16.msra.mxu1 %v6720_v56  ;;  %2908 = vmatprep.mubr.f32.mxu1 %v1501_v3  ;;  %v6728_v18 = vpack.c.bf16 %v527_v11, %v526_v9  ;;  %v6708_v56 = vpack.c.bf16 %v501_v46, %v500_v45  ;;  %v6712_v9 = vpack.c.bf16 %v503_v59, %v502_v58  ;;  %v556_v45 = vld [vmem:[%s11892_s1 + $0x1010] sm:$0xff]  ;;  %v557_v46 = vld [vmem:[%s11892_s1 + $0x1018] sm:$0xff]  ;;  %v606_v55 = vld [vmem:[%s11892_s1 + $0x11a0] sm:$0xff] }
  0xe8   :  { %6723 = vmatprep.subr.bf16.mxu1 %v6722_v60  ;;  %v534_v60 = vld [vmem:[%s11892_s1 + $0xf60] sm:$0xff]  ;;  %v6788_v58 = vpack.c.bf16 %v589_v49, %v588_v47  ;;  %v6758_v59 = vpack.c.bf16 %v575_v53, %v574_v50  ;;  %v577_v0 = vld [vmem:[%s11892_s1 + $0x10b8] sm:$0xff]  ;;  %v608_v1 = vld [vmem:[%s11892_s1 + $0x11b0] sm:$0xff] }
  0xe9   :  { %6693 = vmatpush3.bf16.msra.mxu0 %v6692_v4  ;;  %v6744_v13 = vpack.c.bf16 %v535_v63, %v534_v60  ;;  %v559_v60 = vld [vmem:[%s11892_s1 + $0x1028] sm:$0xff]  ;;  %v576_v63 = vld [vmem:[%s11892_s1 + $0x10b0] sm:$0xff] }
  0xea   :  { %6695 = vmatprep.subr.bf16.mxu0 %v6694_v6  ;;  %v553_v6 = vld [vmem:[%s11892_s1 + $0xff8] sm:$0xff] }
  0xeb   :  { %6725 = vmatpush3.bf16.msra.mxu1 %v6724_v5  ;;  %v552_v5 = vld [vmem:[%s11892_s1 + $0xff0] sm:$0xff] }
  0xec   :  { %6727 = vmatprep.subr.bf16.mxu1 %v6726_v12  ;;  %v29_v12 = vld [vmem:[%s11891_s0 + $0x40] sm:$0xff] }
  0xed   :  { %6697 = vmatpush3.bf16.msra.mxu0 %v6696_v17  ;;  %v536_v17 = vld [vmem:[%s11892_s1 + $0xf70] sm:$0xff]  ;;  %v1502_v25 = vcombine.high %v29_v12, %v29_v12  ;;  %v9317_v52 = vrot.slane %v29_v12, %v7776_v10  ;;  %v593_v12 = vld [vmem:[%s11892_s1 + $0x1138] sm:$0xff] }
  0xee   :  { %6699 = vmatprep.subr.bf16.mxu0 %v6698_v19  ;;  %v6746_v19 = vpack.c.bf16 %v553_v6, %v552_v5  ;;  %v6748_v28 = vpack.c.bf16 %v537_v20, %v536_v17  ;;  %v6762_v5 = vpack.c.bf16 %v577_v0, %v576_v63  ;;  %v560_v6 = vld [vmem:[%s11892_s1 + $0x1030] sm:$0xff]  ;;  %v562_v17 = vld [vmem:[%s11892_s1 + $0x1040] sm:$0xff]  ;;  %v563_v20 = vld [vmem:[%s11892_s1 + $0x1048] sm:$0xff] }
  0xef   :  { %6729 = vmatpush3.bf16.msra.mxu1 %v6728_v18  ;;  %v9326_v39 = vrot.slane %v1502_v25, %v7776_v10  ;;  %v1517_v54 = vcombine.high %v9317_v52, %v9317_v52 }
  0xf0   :  { %6731 = vmatprep.subr.bf16.mxu1 %v6730_v23  ;;  %v602_v23 = vld [vmem:[%s11892_s1 + $0x1180] sm:$0xff] }
  0xf1   :  { %6701 = vmatpush3.bf16.msra.mxu0 %v6700_v29  ;;  %v6750_v29 = vpack.c.bf16 %v571_v22, %v570_v21  ;;  %v6782_v43 = vpack.c.bf16 %v603_v24, %v602_v23  ;;  %v594_v21 = vld [vmem:[%s11892_s1 + $0x1140] sm:$0xff] }
  0xf2   :  { %6703 = vmatprep.subr.bf16.mxu0 %v6702_v30  ;;  %v555_v30 = vld [vmem:[%s11892_s1 + $0x1008] sm:$0xff] }
  0xf3   :  { %6733 = vmatpush3.bf16.msra.mxu1 %v6732_v31  ;;  %v554_v31 = vld [vmem:[%s11892_s1 + $0x1000] sm:$0xff] }
  0xf4   :  { %6735 = vmatprep.subr.bf16.mxu1 %v6734_v35  ;;  %v572_v35 = vld [vmem:[%s11892_s1 + $0x1090] sm:$0xff] }
  0xf5   :  { %6705 = vmatpush3.bf16.msra.mxu0 %v6704_v40  ;;  %v6752_v40 = vpack.c.bf16 %v555_v30, %v554_v31 }
  0xf6   :  { %6707 = vmatprep.subr.bf16.mxu0 %v6706_v44  ;;  %v6754_v44 = vpack.c.bf16 %v573_v36, %v572_v35 }
  0xf7   :  { %6737 = vmatpush3.bf16.msra.mxu1 %v6736_v42  ;;  %v4802_v61 = vpop.f32.mrb[0].mxu0  ;;  %v6784_v42 = vpack.c.bf16 %v587_v34, %v586_v33 }
  0xf8   :  { %6739 = vmatprep.subr.bf16.mxu1 %v6738_v48  ;;  %v4803_v3 = vpop.f32.mrb[1].mxu0  ;;  %v6786_v48 = vpack.c.bf16 %v605_v38, %v604_v37 }
  0xf9   :  { %v4837_v4 = vpop.f32.mrb[0].mxu1  ;;  %v4804_v8 = vadd.f32 %v4803_v3, %v4802_v61  ;;  %6709 = vmatpush3.bf16.msra.mxu0 %v6708_v56  ;;  %v607_v56 = vld [vmem:[%s11892_s1 + $0x11a8] sm:$0xff]  ;;  %v590_v61 = vld [vmem:[%s11892_s1 + $0x1120] sm:$0xff] }
  0xfa   :  { %v4838_v7 = vpop.f32.mrb[1].mxu1  ;;  %6711 = vmatprep.subr.bf16.mxu0 %v6710_v41  ;;  %v6756_v41 = vpack.c.bf16 %v557_v46, %v556_v45 }
  0xfb   :  { %v4839_v11 = vadd.f32 %v4838_v7, %v4837_v4  ;;  %6741 = vmatpush3.bf16.msra.mxu1 %v6740_v57  ;;  %v1861_v18 = vadd.f32 %v4804_v8, %v4766_v2  ;;  %v1518_v57 = vcombine.high %v9326_v39, %v9326_v39  ;;  %v609_v2 = vld [vmem:[%s11892_s1 + $0x11b8] sm:$0xff]  ;;  %v592_v7 = vld [vmem:[%s11892_s1 + $0x1130] sm:$0xff] }
  0xfc   :  { %6743 = vmatprep.subr.bf16.mxu1 %v6742_v62  ;;  %v6790_v62 = vpack.c.bf16 %v607_v56, %v606_v55  ;;  %v561_v8 = vld [vmem:[%s11892_s1 + $0x1038] sm:$0xff] }
  0xfd   :  { %v9296_v26 = vadd.f32 %v4839_v11, %v1861_v18  ;;  %6713 = vmatpush3.bf16.msra.mxu0 %v6712_v9  ;;  %v6794_v9 = vpack.c.bf16 %v609_v2, %v608_v1  ;;  %v578_v11 = vld [vmem:[%s11892_s1 + $0x10c0] sm:$0xff]  ;;  %v6764_v16 = vpack.c.bf16 %v561_v8, %v560_v6  ;;  %v6796_v18 = vpack.c.bf16 %v593_v12, %v592_v7 }
  0xfe   :  { %6715 = vmatprep.subr.bf16.mxu0 %v6714_v14  ;;  %v610_v14 = vld [vmem:[%s11892_s1 + $0x11c0] sm:$0xff] }
  0xff   :  { %6745 = vmatpush3.bf16.msra.mxu1 %v6744_v13  ;;  %v579_v13 = vld [vmem:[%s11892_s1 + $0x10c8] sm:$0xff] }
 0x100   :  { %6747 = vmatprep.subr.bf16.mxu1 %v6746_v19  ;;  %v6766_v19 = vpack.c.bf16 %v579_v13, %v578_v11 }
 0x101   :  { %6717 = vmatpush3.bf16.msra.mxu0 %v6716_v27 }
 0x102   :  { %6751 = vmatprep.subr.bf16.mxu0 %v6750_v29 }
 0x103   :  { %6749 = vmatpush3.bf16.msra.mxu1 %v6748_v28 }
 0x104   :  { %6783 = vmatprep.subr.bf16.mxu1 %v6782_v43  ;;  %2839 = vmatmul.mubr.f32.vlgmr.msra.gmra.mrb[14].mxu0 %v9105_v51  ;;  %v558_v51 = vld [vmem:[%s11892_s1 + $0x1020] sm:$0xff] }
 0x105   :  { %6753 = vmatpush3.bf16.msra.mxu0 %v6752_v40  ;;  %2978 = vmatprep.mubr.f32.mxu0 %v1517_v54  ;;  %v6760_v3 = vpack.c.bf16 %v559_v60, %v558_v51 }
 0x106   :  { %2909 = vmatmul.mubr.f32.vlgmr.msra.gmra.mrb[14].mxu1 %v9114_v32  ;;  %6755 = vmatprep.subr.bf16.mxu0 %v6754_v44  ;;  %v591_v32 = vld [vmem:[%s11892_s1 + $0x1128] sm:$0xff] }
 0x107   :  { %6785 = vmatpush3.bf16.msra.mxu1 %v6784_v42  ;;  %3048 = vmatprep.mubr.f32.mxu1 %v1518_v57  ;;  %v6792_v4 = vpack.c.bf16 %v591_v32, %v590_v61 }
 0x108   :  { %6787 = vmatprep.subr.bf16.mxu1 %v6786_v48 }
 0x109   :  { %6757 = vmatpush3.bf16.msra.mxu0 %v6756_v41 }
 0x10a   :  { %6759 = vmatprep.subr.bf16.mxu0 %v6758_v59 }
 0x10b   :  { %6789 = vmatpush3.bf16.msra.mxu1 %v6788_v58 }
 0x10c   :  { %6791 = vmatprep.subr.bf16.mxu1 %v6790_v62 }
 0x10d   :  { %6761 = vmatpush3.bf16.msra.mxu0 %v6760_v3 }
 0x10e   :  { %6763 = vmatprep.subr.bf16.mxu0 %v6762_v5 }
 0x10f   :  { %6793 = vmatpush3.bf16.msra.mxu1 %v6792_v4 }
 0x110   :  { %10 = vsyncpa [#allocation3], 0  ;;  %6795 = vmatprep.subr.bf16.mxu1 %v6794_v9  ;;  %v6798_v22 = vpack.c.bf16 %v611_v15, %v610_v14  ;;  %v595_v23 = vld [vmem:[%s11892_s1 + $0x1148] sm:$0xff]  ;;  %v580_v24 = vld [vmem:[%s11892_s1 + $0x10d0] sm:$0xff]  ;;  %v6768_v29 = vpack.c.bf16 %v563_v20, %v562_v17  ;;  %vm7599_vm0 = vmmov 0   ;;  %vm4676_vm1 = vcmask 261120  }
 0x111   :  { %v581_v25 = vld [vmem:[%s11892_s1 + $0x10d8] sm:$0xff]  ;;  %v612_v27 = vld [vmem:[%s11892_s1 + $0x11d0] sm:$0xff]  ;;  %6765 = vmatpush3.bf16.msra.mxu0 %v6764_v16  ;;  %v6800_v31 = vpack.c.bf16 %v595_v23, %v594_v21  ;;  %v582_v37 = vld [vmem:[%s11892_s1 + $0x10e0] sm:$0xff]  ;;  %s7601_s24 = smov [#allocation2]   ;;  %vm4750_vm2 = vcmask 41984  }
 0x112   :  { %v613_v28 = vld [vmem:[%s11892_s1 + $0x11d8] sm:$0xff]  ;;  %6767 = vmatprep.subr.bf16.mxu0 %v6766_v19  ;;  %v6770_v30 = vpack.c.bf16 %v581_v25, %v580_v24  ;;  %v564_v33 = vld [vmem:[%s11892_s1 + $0x1050] sm:$0xff]  ;;  %v583_v38 = vld [vmem:[%s11892_s1 + $0x10e8] sm:$0xff]  ;;  %s4758_s25 = sshll.u32 %s7601_s24, 4  ;;  %s4759_s25 = int_to_ptr.vmem [resolvable:$true] %s4758_s25 }
 0x113   :  { %6797 = vmatpush3.bf16.msra.mxu1 %v6796_v18  ;;  %v565_v43 = vld [vmem:[%s11892_s1 + $0x1058] sm:$0xff]  ;;  %v596_v34 = vld [vmem:[%s11892_s1 + $0x1150] sm:$0xff]  ;;  %v6802_v35 = vpack.c.bf16 %v613_v28, %v612_v27  ;;  %v614_v40 = vld [vmem:[%s11892_s1 + $0x11e0] sm:$0xff]  ;;  %v6774_v46 = vpack.c.bf16 %v583_v38, %v582_v37  ;;  %s7573_s26 = scalar_lea.vmem %s4759_s25, 32  ;;  %p7578_p1 = scmp.lt.s32.totalorder %s4759_s25, %s4759_s25 }
 0x114   :  { %6799 = vmatprep.subr.bf16.mxu1 %v6798_v22  ;;  %v597_v36 = vld [vmem:[%s11892_s1 + $0x1158] sm:$0xff]  ;;  %v615_v42 = vld [vmem:[%s11892_s1 + $0x11e8] sm:$0xff]  ;;  %v6772_v44 = vpack.c.bf16 %v565_v43, %v564_v33  ;;  %v566_v47 = vld [vmem:[%s11892_s1 + $0x1060] sm:$0xff]  ;;  %p7574_p0 = scmp.ne.s32.totalorder %s4759_s25, %s7573_s26  ;;  %p7579_p2 = scmp.lt.s32.totalorder %s7573_s26, %s7573_s26 }
 0x115   :  { %6769 = vmatpush3.bf16.msra.mxu0 %v6768_v29  ;;  %v6804_v45 = vpack.c.bf16 %v597_v36, %v596_v34  ;;  %v567_v48 = vld [vmem:[%s11892_s1 + $0x1068] sm:$0xff]  ;;  %v598_v49 = vld [vmem:[%s11892_s1 + $0x1160] sm:$0xff]  ;;  %v6806_v53 = vpack.c.bf16 %v615_v42, %v614_v40  ;;  %v584_v55 = vld [vmem:[%s11892_s1 + $0x10f0] sm:$0xff] }
 0x116   :  { %6771 = vmatprep.subr.bf16.mxu0 %v6770_v30  ;;  %v599_v54 = vld [vmem:[%s11892_s1 + $0x1168] sm:$0xff]  ;;  %v585_v56 = vld [vmem:[%s11892_s1 + $0x10f8] sm:$0xff]  ;;  %v616_v58 = vld [vmem:[%s11892_s1 + $0x11f0] sm:$0xff]  ;;  %v6776_v61 = vpack.c.bf16 %v567_v48, %v566_v47  ;;  %p7580_p3 = por %p7579_p2, %p7578_p1 }
 0x117   :  { %6801 = vmatpush3.bf16.msra.mxu1 %v6800_v31  ;;  %v4872_v50 = vpop.f32.mrb[2].mxu0  ;;  %v617_v59 = vld [vmem:[%s11892_s1 + $0x11f8] sm:$0xff]  ;;  %v30_v62 = vld [vmem:[%s11891_s0 + $0x48] sm:$0xff]  ;;  %v6808_v63 = vpack.c.bf16 %v599_v54, %v598_v49  ;;  %v6778_v0 = vpack.c.bf16 %v585_v56, %v584_v55  ;;  %v568_v1 = vld [vmem:[%s11892_s1 + $0x1070] sm:$0xff] }
 0x118   :  { %6803 = vmatprep.subr.bf16.mxu1 %v6802_v35  ;;  %v4873_v57 = vpop.f32.mrb[3].mxu0  ;;  %v569_v2 = vld [vmem:[%s11892_s1 + $0x1078] sm:$0xff]  ;;  %v600_v3 = vld [vmem:[%s11892_s1 + $0x1170] sm:$0xff]  ;;  %v6810_v5 = vpack.c.bf16 %v617_v59, %v616_v58  ;;  %v634_v8 = vld [vmem:[%s11892_s1 + $0x1280] sm:$0xff]  ;;  %v1519_v12 = vcombine.high %v30_v62, %v30_v62  ;;  %v9527_v23 = vrot.slane %v30_v62, %v7776_v10  ;;  %p7581_p4 = pnand %p7580_p3, %p7574_p0 }
 0x119   :  { %v4907_v41 = vpop.f32.mrb[2].mxu1  ;;  %v4874_v51 = vadd.f32 %v4873_v57, %v4872_v50  ;;  %6773 = vmatpush3.bf16.msra.mxu0 %v6772_v44  ;;  %v601_v6 = vld [vmem:[%s11892_s1 + $0x1178] sm:$0xff]  ;;  %v635_v7 = vld [vmem:[%s11892_s1 + $0x1288] sm:$0xff]  ;;  %v666_v9 = vld [vmem:[%s11892_s1 + $0x1380] sm:$0xff]  ;;  %v6780_v13 = vpack.c.bf16 %v569_v2, %v568_v1 }
 0x11a   :  { %v4908_v60 = vpop.f32.mrb[3].mxu1  ;;  %6775 = vmatprep.subr.bf16.mxu0 %v6774_v46  ;;  %v6812_v14 = vpack.c.bf16 %v601_v6, %v600_v3  ;;  %v6814_v15 = vpack.c.bf16 %v635_v7, %v634_v8  ;;  %v618_v16 = vld [vmem:[%s11892_s1 + $0x1200] sm:$0xff]  ;;  %v619_v17 = vld [vmem:[%s11892_s1 + $0x1208] sm:$0xff]  ;;  %v636_v21 = vld [vmem:[%s11892_s1 + $0x1290] sm:$0xff]  ;;  %v9536_v27 = vrot.slane %v1519_v12, %v7776_v10  ;;  %v1534_v38 = vcombine.high %v9527_v23, %v9527_v23 }
 0x11b   :  { %v4909_v32 = vadd.f32 %v4908_v60, %v4907_v41  ;;  %6805 = vmatpush3.bf16.msra.mxu1 %v6804_v45  ;;  %v2001_v4 = vadd.f32 %v4874_v51, %v9296_v26  ;;  %v667_v26 = vld [vmem:[%s11892_s1 + $0x1388] sm:$0xff]  ;;  %v650_v18 = vld [vmem:[%s11892_s1 + $0x1300] sm:$0xff]  ;;  %v637_v22 = vld [vmem:[%s11892_s1 + $0x1298] sm:$0xff]  ;;  %v6816_v28 = vpack.c.bf16 %v619_v17, %v618_v16 }
 0x11c   :  { %6807 = vmatprep.subr.bf16.mxu1 %v6806_v53  ;;  %v6846_v19 = vpack.c.bf16 %v667_v26, %v666_v9  ;;  %v651_v20 = vld [vmem:[%s11892_s1 + $0x1308] sm:$0xff]  ;;  %v668_v24 = vld [vmem:[%s11892_s1 + $0x1390] sm:$0xff]  ;;  %v669_v25 = vld [vmem:[%s11892_s1 + $0x1398] sm:$0xff]  ;;  %v6818_v31 = vpack.c.bf16 %v637_v22, %v636_v21  ;;  %v1535_v44 = vcombine.high %v9536_v27, %v9536_v27 }
 0x11d   :  { %v9506_v11 = vadd.f32 %v4909_v32, %v2001_v4  ;;  %6777 = vmatpush3.bf16.msra.mxu0 %v6776_v61  ;;  %v6848_v29 = vpack.c.bf16 %v651_v20, %v650_v18  ;;  %v620_v30 = vld [vmem:[%s11892_s1 + $0x1210] sm:$0xff]  ;;  %v621_v33 = vld [vmem:[%s11892_s1 + $0x1218] sm:$0xff]  ;;  %v6850_v34 = vpack.c.bf16 %v669_v25, %v668_v24  ;;  %v638_v36 = vld [vmem:[%s11892_s1 + $0x12a0] sm:$0xff] }
 0x11e   :  { %6779 = vmatprep.subr.bf16.mxu0 %v6778_v0  ;;  %v652_v43 = vld [vmem:[%s11892_s1 + $0x1310] sm:$0xff]  ;;  %v653_v35 = vld [vmem:[%s11892_s1 + $0x1318] sm:$0xff]  ;;  %v639_v37 = vld [vmem:[%s11892_s1 + $0x12a8] sm:$0xff]  ;;  %v6820_v45 = vpack.c.bf16 %v621_v33, %v620_v30 }
 0x11f   :  { %6809 = vmatpush3.bf16.msra.mxu1 %v6808_v63  ;;  %v670_v40 = vld [vmem:[%s11892_s1 + $0x13a0] sm:$0xff]  ;;  %v671_v42 = vld [vmem:[%s11892_s1 + $0x13a8] sm:$0xff]  ;;  %v6852_v46 = vpack.c.bf16 %v653_v35, %v652_v43  ;;  %v6822_v47 = vpack.c.bf16 %v639_v37, %v638_v36  ;;  %v640_v53 = vld [vmem:[%s11892_s1 + $0x12b0] sm:$0xff] }
 0x120   :  { %6811 = vmatprep.subr.bf16.mxu1 %v6810_v5  ;;  %v623_v48 = vld [vmem:[%s11892_s1 + $0x1228] sm:$0xff]  ;;  %v654_v49 = vld [vmem:[%s11892_s1 + $0x1320] sm:$0xff]  ;;  %v6854_v50 = vpack.c.bf16 %v671_v42, %v670_v40  ;;  %v641_v54 = vld [vmem:[%s11892_s1 + $0x12b8] sm:$0xff] }
 0x121   :  { %6781 = vmatpush3.bf16.msra.mxu0 %v6780_v13  ;;  %v672_v55 = vld [vmem:[%s11892_s1 + $0x13b0] sm:$0xff]  ;;  %v673_v56 = vld [vmem:[%s11892_s1 + $0x13b8] sm:$0xff]  ;;  %v6826_v58 = vpack.c.bf16 %v641_v54, %v640_v53  ;;  %v642_v32 = vld [vmem:[%s11892_s1 + $0x12c0] sm:$0xff] }
 0x122   :  { %6815 = vmatprep.subr.bf16.mxu0 %v6814_v15  ;;  %v624_v59 = vld [vmem:[%s11892_s1 + $0x1230] sm:$0xff]  ;;  %v625_v51 = vld [vmem:[%s11892_s1 + $0x1238] sm:$0xff]  ;;  %v6858_v61 = vpack.c.bf16 %v673_v56, %v672_v55  ;;  %v643_v63 = vld [vmem:[%s11892_s1 + $0x12c8] sm:$0xff] }
 0x123   :  { %6813 = vmatpush3.bf16.msra.mxu1 %v6812_v14  ;;  %v656_v60 = vld [vmem:[%s11892_s1 + $0x1330] sm:$0xff]  ;;  %v657_v62 = vld [vmem:[%s11892_s1 + $0x1338] sm:$0xff]  ;;  %v674_v0 = vld [vmem:[%s11892_s1 + $0x13c0] sm:$0xff]  ;;  %v6828_v2 = vpack.c.bf16 %v625_v51, %v624_v59  ;;  %v6830_v4 = vpack.c.bf16 %v643_v63, %v642_v32 }
 0x124   :  { %6847 = vmatprep.subr.bf16.mxu1 %v6846_v19  ;;  %2979 = vmatmul.mubr.f32.vlgmr.msra.gmra.mrb[16].mxu0 %v9317_v52  ;;  %v622_v52 = vld [vmem:[%s11892_s1 + $0x1220] sm:$0xff]  ;;  %v675_v1 = vld [vmem:[%s11892_s1 + $0x13c8] sm:$0xff]  ;;  %v6860_v3 = vpack.c.bf16 %v657_v62, %v656_v60  ;;  %v644_v26 = vld [vmem:[%s11892_s1 + $0x12d0] sm:$0xff] }
 0x125   :  { %6817 = vmatpush3.bf16.msra.mxu0 %v6816_v28  ;;  %3118 = vmatprep.mubr.f32.mxu0 %v1534_v38  ;;  %v6824_v57 = vpack.c.bf16 %v623_v48, %v622_v52  ;;  %v626_v5 = vld [vmem:[%s11892_s1 + $0x1240] sm:$0xff]  ;;  %v627_v6 = vld [vmem:[%s11892_s1 + $0x1248] sm:$0xff]  ;;  %v6862_v7 = vpack.c.bf16 %v675_v1, %v674_v0  ;;  %v645_v12 = vld [vmem:[%s11892_s1 + $0x12d8] sm:$0xff] }
 0x126   :  { %3049 = vmatmul.mubr.f32.vlgmr.msra.gmra.mrb[16].mxu1 %v9326_v39  ;;  %6819 = vmatprep.subr.bf16.mxu0 %v6818_v31  ;;  %v655_v39 = vld [vmem:[%s11892_s1 + $0x1328] sm:$0xff]  ;;  %v658_v8 = vld [vmem:[%s11892_s1 + $0x1340] sm:$0xff]  ;;  %v676_v13 = vld [vmem:[%s11892_s1 + $0x13d0] sm:$0xff]  ;;  %v6832_v15 = vpack.c.bf16 %v627_v6, %v626_v5  ;;  %v6834_v17 = vpack.c.bf16 %v645_v12, %v644_v26 }
 0x127   :  { %6849 = vmatpush3.bf16.msra.mxu1 %v6848_v29  ;;  %3188 = vmatprep.mubr.f32.mxu1 %v1535_v44  ;;  %v6856_v41 = vpack.c.bf16 %v655_v39, %v654_v49  ;;  %v659_v9 = vld [vmem:[%s11892_s1 + $0x1348] sm:$0xff]  ;;  %v677_v14 = vld [vmem:[%s11892_s1 + $0x13d8] sm:$0xff]  ;;  %v628_v18 = vld [vmem:[%s11892_s1 + $0x1250] sm:$0xff] }
 0x128   :  { %6851 = vmatprep.subr.bf16.mxu1 %v6850_v34  ;;  %v6864_v16 = vpack.c.bf16 %v659_v9, %v658_v8  ;;  %v629_v19 = vld [vmem:[%s11892_s1 + $0x1258] sm:$0xff]  ;;  %v660_v20 = vld [vmem:[%s11892_s1 + $0x1350] sm:$0xff]  ;;  %v6866_v21 = vpack.c.bf16 %v677_v14, %v676_v13  ;;  %v646_v24 = vld [vmem:[%s11892_s1 + $0x12e0] sm:$0xff] }
 0x129   :  { %6821 = vmatpush3.bf16.msra.mxu0 %v6820_v45  ;;  %v661_v22 = vld [vmem:[%s11892_s1 + $0x1358] sm:$0xff]  ;;  %v647_v25 = vld [vmem:[%s11892_s1 + $0x12e8] sm:$0xff]  ;;  %v678_v28 = vld [vmem:[%s11892_s1 + $0x13e0] sm:$0xff]  ;;  %v6836_v31 = vpack.c.bf16 %v629_v19, %v628_v18 }
 0x12a   :  { %6823 = vmatprep.subr.bf16.mxu0 %v6822_v47  ;;  %v679_v29 = vld [vmem:[%s11892_s1 + $0x13e8] sm:$0xff]  ;;  %v6868_v30 = vpack.c.bf16 %v661_v22, %v660_v20  ;;  %v6838_v33 = vpack.c.bf16 %v647_v25, %v646_v24  ;;  %v630_v43 = vld [vmem:[%s11892_s1 + $0x1260] sm:$0xff]  ;;  %v648_v40 = vld [vmem:[%s11892_s1 + $0x12f0] sm:$0xff] }
 0x12b   :  { %6853 = vmatpush3.bf16.msra.mxu1 %v6852_v46  ;;  %v631_v34 = vld [vmem:[%s11892_s1 + $0x1268] sm:$0xff]  ;;  %v662_v35 = vld [vmem:[%s11892_s1 + $0x1360] sm:$0xff]  ;;  %v6870_v37 = vpack.c.bf16 %v679_v29, %v678_v28  ;;  %v649_v42 = vld [vmem:[%s11892_s1 + $0x12f8] sm:$0xff] }
 0x12c   :  { %6855 = vmatprep.subr.bf16.mxu1 %v6854_v50  ;;  %v663_v38 = vld [vmem:[%s11892_s1 + $0x1368] sm:$0xff]  ;;  %v680_v46 = vld [vmem:[%s11892_s1 + $0x13f0] sm:$0xff]  ;;  %v681_v47 = vld [vmem:[%s11892_s1 + $0x13f8] sm:$0xff]  ;;  %v6840_v49 = vpack.c.bf16 %v631_v34, %v630_v43  ;;  %v6842_v54 = vpack.c.bf16 %v649_v42, %v648_v40 }
 0x12d   :  { %6825 = vmatpush3.bf16.msra.mxu0 %v6824_v57  ;;  %v31_v50 = vld [vmem:[%s11891_s0 + $0x50] sm:$0xff]  ;;  %v6872_v53 = vpack.c.bf16 %v663_v38, %v662_v35  ;;  %v633_v56 = vld [vmem:[%s11892_s1 + $0x1278] sm:$0xff]  ;;  %v698_v51 = vld [vmem:[%s11892_s1 + $0x1480] sm:$0xff] }
 0x12e   :  { %6827 = vmatprep.subr.bf16.mxu0 %v6826_v58  ;;  %v632_v55 = vld [vmem:[%s11892_s1 + $0x1270] sm:$0xff]  ;;  %v6874_v58 = vpack.c.bf16 %v681_v47, %v680_v46  ;;  %v665_v59 = vld [vmem:[%s11892_s1 + $0x1378] sm:$0xff]  ;;  %v699_v60 = vld [vmem:[%s11892_s1 + $0x1488] sm:$0xff]  ;;  %v1536_v62 = vcombine.high %v31_v50, %v31_v50  ;;  %v9737_v9 = vrot.slane %v31_v50, %v7776_v10 }
 0x12f   :  { %6857 = vmatpush3.bf16.msra.mxu1 %v6856_v41  ;;  %v664_v57 = vld [vmem:[%s11892_s1 + $0x1370] sm:$0xff]  ;;  %v6844_v63 = vpack.c.bf16 %v633_v56, %v632_v55  ;;  %v6878_v1 = vpack.c.bf16 %v699_v60, %v698_v51  ;;  %v715_v6 = vld [vmem:[%s11892_s1 + $0x1508] sm:$0xff]  ;;  %v733_v12 = vld [vmem:[%s11892_s1 + $0x1598] sm:$0xff] }
 0x130   :  { %6859 = vmatprep.subr.bf16.mxu1 %v6858_v61  ;;  %v730_v61 = vld [vmem:[%s11892_s1 + $0x1580] sm:$0xff]  ;;  %v6876_v0 = vpack.c.bf16 %v665_v59, %v664_v57  ;;  %v700_v8 = vld [vmem:[%s11892_s1 + $0x1490] sm:$0xff]  ;;  %v9746_v13 = vrot.slane %v1536_v62, %v7776_v10  ;;  %v685_v18 = vld [vmem:[%s11892_s1 + $0x1418] sm:$0xff]  ;;  %v1551_v25 = vcombine.high %v9737_v9, %v9737_v9 }
 0x131   :  { %6829 = vmatpush3.bf16.msra.mxu0 %v6828_v2  ;;  %v682_v2 = vld [vmem:[%s11892_s1 + $0x1400] sm:$0xff]  ;;  %v732_v26 = vld [vmem:[%s11892_s1 + $0x1590] sm:$0xff]  ;;  %v703_v24 = vld [vmem:[%s11892_s1 + $0x14a8] sm:$0xff] }
 0x132   :  { %6831 = vmatprep.subr.bf16.mxu0 %v6830_v4  ;;  %v714_v4 = vld [vmem:[%s11892_s1 + $0x1500] sm:$0xff]  ;;  %v716_v19 = vld [vmem:[%s11892_s1 + $0x1510] sm:$0xff]  ;;  %v6914_v20 = vpack.c.bf16 %v733_v12, %v732_v26  ;;  %v735_v29 = vld [vmem:[%s11892_s1 + $0x15a8] sm:$0xff] }
 0x133   :  { %6861 = vmatpush3.bf16.msra.mxu1 %v6860_v3  ;;  %v683_v3 = vld [vmem:[%s11892_s1 + $0x1408] sm:$0xff]  ;;  %v702_v22 = vld [vmem:[%s11892_s1 + $0x14a0] sm:$0xff]  ;;  %v705_v38 = vld [vmem:[%s11892_s1 + $0x14b8] sm:$0xff] }
 0x134   :  { %6863 = vmatprep.subr.bf16.mxu1 %v6862_v7  ;;  %v701_v7 = vld [vmem:[%s11892_s1 + $0x1498] sm:$0xff]  ;;  %v6880_v14 = vpack.c.bf16 %v683_v3, %v682_v2  ;;  %v734_v28 = vld [vmem:[%s11892_s1 + $0x15a0] sm:$0xff]  ;;  %v6886_v43 = vpack.c.bf16 %v703_v24, %v702_v22  ;;  %v687_v34 = vld [vmem:[%s11892_s1 + $0x1428] sm:$0xff] }
 0x135   :  { %6833 = vmatpush3.bf16.msra.mxu0 %v6832_v15  ;;  %v6912_v15 = vpack.c.bf16 %v715_v6, %v714_v4  ;;  %v718_v35 = vld [vmem:[%s11892_s1 + $0x1520] sm:$0xff]  ;;  %v736_v40 = vld [vmem:[%s11892_s1 + $0x15b0] sm:$0xff]  ;;  %v737_v42 = vld [vmem:[%s11892_s1 + $0x15b8] sm:$0xff] }
 0x136   :  { %6835 = vmatprep.subr.bf16.mxu0 %v6834_v17  ;;  %v684_v17 = vld [vmem:[%s11892_s1 + $0x1410] sm:$0xff]  ;;  %v721_v50 = vld [vmem:[%s11892_s1 + $0x1538] sm:$0xff]  ;;  %v739_v55 = vld [vmem:[%s11892_s1 + $0x15c8] sm:$0xff] }
 0x137   :  { %6865 = vmatpush3.bf16.msra.mxu1 %v6864_v16  ;;  %v4942_v36 = vpop.f32.mrb[4].mxu0  ;;  %v6882_v16 = vpack.c.bf16 %v701_v7, %v700_v8  ;;  %v688_v47 = vld [vmem:[%s11892_s1 + $0x1430] sm:$0xff]  ;;  %v691_v59 = vld [vmem:[%s11892_s1 + $0x1448] sm:$0xff]  ;;  %v722_v51 = vld [vmem:[%s11892_s1 + $0x1540] sm:$0xff] }
 0x138   :  { %6867 = vmatprep.subr.bf16.mxu1 %v6866_v21  ;;  %v4943_v44 = vpop.f32.mrb[5].mxu0  ;;  %v717_v21 = vld [vmem:[%s11892_s1 + $0x1518] sm:$0xff]  ;;  %v692_v4 = vld [vmem:[%s11892_s1 + $0x1450] sm:$0xff]  ;;  %v710_v26 = vld [vmem:[%s11892_s1 + $0x14e0] sm:$0xff] }
 0x139   :  { %v4977_v45 = vpop.f32.mrb[4].mxu1  ;;  %v4944_v52 = vadd.f32 %v4943_v44, %v4942_v36  ;;  %6837 = vmatpush3.bf16.msra.mxu0 %v6836_v31  ;;  %v1552_v31 = vcombine.high %v9746_v13, %v9746_v13  ;;  %v6918_v36 = vpack.c.bf16 %v735_v29, %v734_v28  ;;  %v709_v62 = vld [vmem:[%s11892_s1 + $0x14d8] sm:$0xff]  ;;  %v724_v6 = vld [vmem:[%s11892_s1 + $0x1550] sm:$0xff]  ;;  %v711_v12 = vld [vmem:[%s11892_s1 + $0x14e8] sm:$0xff] }
 0x13a   :  { %v4978_v48 = vpop.f32.mrb[5].mxu1  ;;  %6839 = vmatprep.subr.bf16.mxu0 %v6838_v33  ;;  %v6916_v33 = vpack.c.bf16 %v717_v21, %v716_v19  ;;  %v725_v7 = vld [vmem:[%s11892_s1 + $0x1558] sm:$0xff]  ;;  %v694_v19 = vld [vmem:[%s11892_s1 + $0x1460] sm:$0xff]  ;;  %v712_v28 = vld [vmem:[%s11892_s1 + $0x14f0] sm:$0xff] }
 0x13b   :  { %v4979_v39 = vadd.f32 %v4978_v48, %v4977_v45  ;;  %6869 = vmatpush3.bf16.msra.mxu1 %v6868_v30  ;;  %v2141_v41 = vadd.f32 %v4944_v52, %v9506_v11  ;;  %v731_v11 = vld [vmem:[%s11892_s1 + $0x1588] sm:$0xff]  ;;  %v6884_v30 = vpack.c.bf16 %v685_v18, %v684_v17  ;;  %v689_v52 = vld [vmem:[%s11892_s1 + $0x1438] sm:$0xff]  ;;  %v720_v48 = vld [vmem:[%s11892_s1 + $0x1530] sm:$0xff]  ;;  %v6932_v17 = vpack.c.bf16 %v725_v7, %v724_v6 }
 0x13c   :  { %6871 = vmatprep.subr.bf16.mxu1 %v6870_v37  ;;  %v6910_v5 = vpack.c.bf16 %v731_v11, %v730_v61  ;;  %v704_v37 = vld [vmem:[%s11892_s1 + $0x14b0] sm:$0xff]  ;;  %v6892_v56 = vpack.c.bf16 %v689_v52, %v688_v47  ;;  %v6924_v57 = vpack.c.bf16 %v721_v50, %v720_v48  ;;  %v723_v61 = vld [vmem:[%s11892_s1 + $0x1548] sm:$0xff]  ;;  %v6902_v18 = vpack.c.bf16 %v711_v12, %v710_v26  ;;  %v726_v21 = vld [vmem:[%s11892_s1 + $0x1560] sm:$0xff] }
 0x13d   :  { %v9716_v32 = vadd.f32 %v4979_v39, %v2141_v41  ;;  %6841 = vmatpush3.bf16.msra.mxu0 %v6840_v49  ;;  %v6890_v46 = vpack.c.bf16 %v705_v38, %v704_v37  ;;  %v6922_v49 = vpack.c.bf16 %v737_v42, %v736_v40  ;;  %v706_v39 = vld [vmem:[%s11892_s1 + $0x14c0] sm:$0xff]  ;;  %v708_v11 = vld [vmem:[%s11892_s1 + $0x14d0] sm:$0xff]  ;;  %v6928_v2 = vpack.c.bf16 %v723_v61, %v722_v51  ;;  %v713_v29 = vld [vmem:[%s11892_s1 + $0x14f8] sm:$0xff] }
 0x13e   :  { %6843 = vmatprep.subr.bf16.mxu0 %v6842_v54  ;;  %v738_v54 = vld [vmem:[%s11892_s1 + $0x15c0] sm:$0xff]  ;;  %v6898_v3 = vpack.c.bf16 %v709_v62, %v708_v11  ;;  %v6906_v38 = vpack.c.bf16 %v713_v29, %v712_v28  ;;  %v696_v40 = vld [vmem:[%s11892_s1 + $0x1470] sm:$0xff]  ;;  %v697_v42 = vld [vmem:[%s11892_s1 + $0x1478] sm:$0xff] }
 0x13f   :  { %6873 = vmatpush3.bf16.msra.mxu1 %v6872_v53  ;;  %v707_v53 = vld [vmem:[%s11892_s1 + $0x14c8] sm:$0xff]  ;;  %v6926_v60 = vpack.c.bf16 %v739_v55, %v738_v54  ;;  %v729_v47 = vld [vmem:[%s11892_s1 + $0x1578] sm:$0xff]  ;;  %v762_v52 = vld [vmem:[%s11892_s1 + $0x1680] sm:$0xff] }
 0x140   :  { %6875 = vmatprep.subr.bf16.mxu1 %v6874_v58  ;;  %v6894_v41 = vpack.c.bf16 %v707_v53, %v706_v39  ;;  %v690_v58 = vld [vmem:[%s11892_s1 + $0x1440] sm:$0xff]  ;;  %v763_v48 = vld [vmem:[%s11892_s1 + $0x1688] sm:$0xff]  ;;  %v6908_v53 = vpack.c.bf16 %v697_v42, %v696_v40  ;;  %v764_v51 = vld [vmem:[%s11892_s1 + $0x1690] sm:$0xff] }
 0x141   :  { %6845 = vmatpush3.bf16.msra.mxu0 %v6844_v63  ;;  %v740_v63 = vld [vmem:[%s11892_s1 + $0x15d0] sm:$0xff]  ;;  %v6942_v55 = vpack.c.bf16 %v763_v48, %v762_v52  ;;  %v797_v62 = vld [vmem:[%s11892_s1 + $0x1798] sm:$0xff]  ;;  %v766_v7 = vld [vmem:[%s11892_s1 + $0x16a0] sm:$0xff] }
 0x142   :  { %6879 = vmatprep.subr.bf16.mxu0 %v6878_v1  ;;  %v6896_v1 = vpack.c.bf16 %v691_v59, %v690_v58  ;;  %v779_v59 = vld [vmem:[%s11892_s1 + $0x1708] sm:$0xff]  ;;  %v796_v11 = vld [vmem:[%s11892_s1 + $0x1790] sm:$0xff]  ;;  %v801_v29 = vld [vmem:[%s11892_s1 + $0x17b8] sm:$0xff] }
 0x143   :  { %6877 = vmatpush3.bf16.msra.mxu1 %v6876_v0  ;;  %v741_v0 = vld [vmem:[%s11892_s1 + $0x15d8] sm:$0xff]  ;;  %v6978_v6 = vpack.c.bf16 %v797_v62, %v796_v11  ;;  %v767_v26 = vld [vmem:[%s11892_s1 + $0x16a8] sm:$0xff]  ;;  %v800_v28 = vld [vmem:[%s11892_s1 + $0x17b0] sm:$0xff] }
 0x144   :  { %6911 = vmatprep.subr.bf16.mxu1 %v6910_v5  ;;  %3119 = vmatmul.mubr.f32.vlgmr.msra.gmra.mrb[18].mxu0 %v9527_v23  ;;  %v686_v23 = vld [vmem:[%s11892_s1 + $0x1420] sm:$0xff]  ;;  %v693_v5 = vld [vmem:[%s11892_s1 + $0x1458] sm:$0xff]  ;;  %v6930_v8 = vpack.c.bf16 %v741_v0, %v740_v63  ;;  %v803_v40 = vld [vmem:[%s11892_s1 + $0x17c8] sm:$0xff] }
 0x145   :  { %6881 = vmatpush3.bf16.msra.mxu0 %v6880_v14  ;;  %3258 = vmatprep.mubr.f32.mxu0 %v1551_v25  ;;  %v6888_v44 = vpack.c.bf16 %v687_v34, %v686_v23  ;;  %v742_v14 = vld [vmem:[%s11892_s1 + $0x15e0] sm:$0xff]  ;;  %v727_v25 = vld [vmem:[%s11892_s1 + $0x1568] sm:$0xff] }
 0x146   :  { %3189 = vmatmul.mubr.f32.vlgmr.msra.gmra.mrb[18].mxu1 %v9536_v27  ;;  %6883 = vmatprep.subr.bf16.mxu0 %v6882_v16  ;;  %v719_v27 = vld [vmem:[%s11892_s1 + $0x1528] sm:$0xff]  ;;  %v6900_v16 = vpack.c.bf16 %v693_v5, %v692_v4  ;;  %v6936_v37 = vpack.c.bf16 %v727_v25, %v726_v21  ;;  %v749_v4 = vld [vmem:[%s11892_s1 + $0x1618] sm:$0xff]  ;;  %v780_v5 = vld [vmem:[%s11892_s1 + $0x1710] sm:$0xff] }
 0x147   :  { %6913 = vmatpush3.bf16.msra.mxu1 %v6912_v15  ;;  %3328 = vmatprep.mubr.f32.mxu1 %v1552_v31  ;;  %v6920_v45 = vpack.c.bf16 %v719_v27, %v718_v35  ;;  %v743_v15 = vld [vmem:[%s11892_s1 + $0x15e8] sm:$0xff]  ;;  %v782_v21 = vld [vmem:[%s11892_s1 + $0x1720] sm:$0xff]  ;;  %v769_v25 = vld [vmem:[%s11892_s1 + $0x16b8] sm:$0xff] }
 0x148   :  { %6915 = vmatprep.subr.bf16.mxu1 %v6914_v20  ;;  %v695_v20 = vld [vmem:[%s11892_s1 + $0x1468] sm:$0xff]  ;;  %v6934_v24 = vpack.c.bf16 %v743_v15, %v742_v14  ;;  %v798_v14 = vld [vmem:[%s11892_s1 + $0x17a0] sm:$0xff] }
 0x149   :  { %6885 = vmatpush3.bf16.msra.mxu0 %v6884_v30  ;;  %v6904_v35 = vpack.c.bf16 %v695_v20, %v694_v19  ;;  %v799_v15 = vld [vmem:[%s11892_s1 + $0x17a8] sm:$0xff]  ;;  %v6950_v19 = vpack.c.bf16 %v767_v26, %v766_v7  ;;  %v786_v52 = vld [vmem:[%s11892_s1 + $0x1740] sm:$0xff] }
 0x14a   :  { %6887 = vmatprep.subr.bf16.mxu0 %v6886_v43  ;;  %v745_v43 = vld [vmem:[%s11892_s1 + $0x15f8] sm:$0xff]  ;;  %v751_v20 = vld [vmem:[%s11892_s1 + $0x1628] sm:$0xff]  ;;  %v774_v11 = vld [vmem:[%s11892_s1 + $0x16e0] sm:$0xff] }
 0x14b   :  { %6917 = vmatpush3.bf16.msra.mxu1 %v6916_v33  ;;  %v744_v33 = vld [vmem:[%s11892_s1 + $0x15f0] sm:$0xff]  ;;  %v775_v62 = vld [vmem:[%s11892_s1 + $0x16e8] sm:$0xff] }
 0x14c   :  { %6919 = vmatprep.subr.bf16.mxu1 %v6918_v36  ;;  %v32_v36 = vld [vmem:[%s11891_s0 + $0x58] sm:$0xff] }
 0x14d   :  { %6889 = vmatpush3.bf16.msra.mxu0 %v6888_v44  ;;  %v728_v44 = vld [vmem:[%s11892_s1 + $0x1570] sm:$0xff]  ;;  %v1553_v50 = vcombine.high %v32_v36, %v32_v36  ;;  %v9947_v61 = vrot.slane %v32_v36, %v7776_v10  ;;  %v785_v36 = vld [vmem:[%s11892_s1 + $0x1738] sm:$0xff] }
 0x14e   :  { %6891 = vmatprep.subr.bf16.mxu0 %v6890_v46  ;;  %v6938_v46 = vpack.c.bf16 %v745_v43, %v744_v33  ;;  %v6940_v54 = vpack.c.bf16 %v729_v47, %v728_v44  ;;  %v752_v43 = vld [vmem:[%s11892_s1 + $0x1630] sm:$0xff]  ;;  %v755_v47 = vld [vmem:[%s11892_s1 + $0x1648] sm:$0xff] }
 0x14f   :  { %6921 = vmatpush3.bf16.msra.mxu1 %v6920_v45  ;;  %v9956_v63 = vrot.slane %v1553_v50, %v7776_v10  ;;  %v1568_v12 = vcombine.high %v9947_v61, %v9947_v61  ;;  %v773_v50 = vld [vmem:[%s11892_s1 + $0x16d8] sm:$0xff] }
 0x150   :  { %6923 = vmatprep.subr.bf16.mxu1 %v6922_v49  ;;  %v794_v49 = vld [vmem:[%s11892_s1 + $0x1780] sm:$0xff] }
 0x151   :  { %6893 = vmatpush3.bf16.msra.mxu0 %v6892_v56  ;;  %v746_v56 = vld [vmem:[%s11892_s1 + $0x1600] sm:$0xff] }
 0x152   :  { %6895 = vmatprep.subr.bf16.mxu0 %v6894_v41  ;;  %v778_v41 = vld [vmem:[%s11892_s1 + $0x1700] sm:$0xff] }
 0x153   :  { %6925 = vmatpush3.bf16.msra.mxu1 %v6924_v57  ;;  %v747_v57 = vld [vmem:[%s11892_s1 + $0x1608] sm:$0xff] }
 0x154   :  { %6927 = vmatprep.subr.bf16.mxu1 %v6926_v60  ;;  %v765_v60 = vld [vmem:[%s11892_s1 + $0x1698] sm:$0xff]  ;;  %v6944_v0 = vpack.c.bf16 %v747_v57, %v746_v56 }
 0x155   :  { %6897 = vmatpush3.bf16.msra.mxu0 %v6896_v1  ;;  %v6976_v1 = vpack.c.bf16 %v779_v59, %v778_v41  ;;  %v756_v41 = vld [vmem:[%s11892_s1 + $0x1650] sm:$0xff] }
 0x156   :  { %6899 = vmatprep.subr.bf16.mxu0 %v6898_v3  ;;  %v748_v3 = vld [vmem:[%s11892_s1 + $0x1610] sm:$0xff] }
 0x157   :  { %6929 = vmatpush3.bf16.msra.mxu1 %v6928_v2  ;;  %v5012_v22 = vpop.f32.mrb[6].mxu0  ;;  %v6946_v2 = vpack.c.bf16 %v765_v60, %v764_v51  ;;  %v788_v59 = vld [vmem:[%s11892_s1 + $0x1750] sm:$0xff]  ;;  %v789_v60 = vld [vmem:[%s11892_s1 + $0x1758] sm:$0xff] }
 0x158   :  { %6931 = vmatprep.subr.bf16.mxu1 %v6930_v8  ;;  %v5013_v31 = vpop.f32.mrb[7].mxu0  ;;  %v781_v8 = vld [vmem:[%s11892_s1 + $0x1718] sm:$0xff] }
 0x159   :  { %v5047_v30 = vpop.f32.mrb[6].mxu1  ;;  %v5014_v23 = vadd.f32 %v5013_v31, %v5012_v22  ;;  %6901 = vmatpush3.bf16.msra.mxu0 %v6900_v16  ;;  %v1569_v16 = vcombine.high %v9956_v63, %v9956_v63  ;;  %v6982_v22 = vpack.c.bf16 %v799_v15, %v798_v14  ;;  %v776_v14 = vld [vmem:[%s11892_s1 + $0x16f0] sm:$0xff]  ;;  %v777_v15 = vld [vmem:[%s11892_s1 + $0x16f8] sm:$0xff] }
 0x15a   :  { %v5048_v34 = vpop.f32.mrb[7].mxu1  ;;  %6903 = vmatprep.subr.bf16.mxu0 %v6902_v18  ;;  %v6980_v18 = vpack.c.bf16 %v781_v8, %v780_v5  ;;  %v758_v5 = vld [vmem:[%s11892_s1 + $0x1660] sm:$0xff] }
 0x15b   :  { %v5049_v27 = vadd.f32 %v5048_v34, %v5047_v30  ;;  %6933 = vmatpush3.bf16.msra.mxu1 %v6932_v17  ;;  %v2281_v45 = vadd.f32 %v5014_v23, %v9716_v32  ;;  %v795_v32 = vld [vmem:[%s11892_s1 + $0x1788] sm:$0xff]  ;;  %v6948_v17 = vpack.c.bf16 %v749_v4, %v748_v3  ;;  %v753_v23 = vld [vmem:[%s11892_s1 + $0x1638] sm:$0xff]  ;;  %v784_v34 = vld [vmem:[%s11892_s1 + $0x1730] sm:$0xff]  ;;  %v6996_v3 = vpack.c.bf16 %v789_v60, %v788_v59 }
 0x15c   :  { %6935 = vmatprep.subr.bf16.mxu1 %v6934_v24  ;;  %v6974_v58 = vpack.c.bf16 %v795_v32, %v794_v49  ;;  %v768_v24 = vld [vmem:[%s11892_s1 + $0x16b0] sm:$0xff]  ;;  %v6956_v42 = vpack.c.bf16 %v753_v23, %v752_v43  ;;  %v6988_v44 = vpack.c.bf16 %v785_v36, %v784_v34  ;;  %v787_v49 = vld [vmem:[%s11892_s1 + $0x1748] sm:$0xff]  ;;  %v6966_v4 = vpack.c.bf16 %v775_v62, %v774_v11  ;;  %v790_v8 = vld [vmem:[%s11892_s1 + $0x1760] sm:$0xff] }
 0x15d   :  { %v9926_v39 = vadd.f32 %v5049_v27, %v2281_v45  ;;  %6905 = vmatpush3.bf16.msra.mxu0 %v6904_v35  ;;  %v6954_v33 = vpack.c.bf16 %v769_v25, %v768_v24  ;;  %v6986_v35 = vpack.c.bf16 %v801_v29, %v800_v28  ;;  %v770_v27 = vld [vmem:[%s11892_s1 + $0x16c0] sm:$0xff]  ;;  %v772_v32 = vld [vmem:[%s11892_s1 + $0x16d0] sm:$0xff]  ;;  %v6992_v56 = vpack.c.bf16 %v787_v49, %v786_v52  ;;  %v761_v29 = vld [vmem:[%s11892_s1 + $0x1678] sm:$0xff] }
 0x15e   :  { %6907 = vmatprep.subr.bf16.mxu0 %v6906_v38  ;;  %v802_v38 = vld [vmem:[%s11892_s1 + $0x17c0] sm:$0xff]  ;;  %v6962_v57 = vpack.c.bf16 %v773_v50, %v772_v32  ;;  %v6970_v25 = vpack.c.bf16 %v777_v15, %v776_v14  ;;  %v760_v28 = vld [vmem:[%s11892_s1 + $0x1670] sm:$0xff]  ;;  %v793_v43 = vld [vmem:[%s11892_s1 + $0x1778] sm:$0xff] }
 0x15f   :  { %6937 = vmatpush3.bf16.msra.mxu1 %v6936_v37  ;;  %v771_v37 = vld [vmem:[%s11892_s1 + $0x16c8] sm:$0xff]  ;;  %v6990_v48 = vpack.c.bf16 %v803_v40, %v802_v38  ;;  %v826_v23 = vld [vmem:[%s11892_s1 + $0x1880] sm:$0xff]  ;;  %v828_v52 = vld [vmem:[%s11892_s1 + $0x1890] sm:$0xff] }
 0x160   :  { %6939 = vmatprep.subr.bf16.mxu1 %v6938_v46  ;;  %v6958_v45 = vpack.c.bf16 %v771_v37, %v770_v27  ;;  %v754_v46 = vld [vmem:[%s11892_s1 + $0x1640] sm:$0xff]  ;;  %v827_v34 = vld [vmem:[%s11892_s1 + $0x1888] sm:$0xff]  ;;  %v6972_v37 = vpack.c.bf16 %v761_v29, %v760_v28  ;;  %v860_v32 = vld [vmem:[%s11892_s1 + $0x1990] sm:$0xff] }
 0x161   :  { %6909 = vmatpush3.bf16.msra.mxu0 %v6908_v53  ;;  %v804_v53 = vld [vmem:[%s11892_s1 + $0x17d0] sm:$0xff]  ;;  %v7006_v40 = vpack.c.bf16 %v827_v34, %v826_v23  ;;  %v861_v50 = vld [vmem:[%s11892_s1 + $0x1998] sm:$0xff]  ;;  %v830_v60 = vld [vmem:[%s11892_s1 + $0x18a0] sm:$0xff] }
 0x162   :  { %6943 = vmatprep.subr.bf16.mxu0 %v6942_v55  ;;  %v6960_v55 = vpack.c.bf16 %v755_v47, %v754_v46  ;;  %v843_v47 = vld [vmem:[%s11892_s1 + $0x1908] sm:$0xff]  ;;  %v7042_v59 = vpack.c.bf16 %v861_v50, %v860_v32  ;;  %v864_v14 = vld [vmem:[%s11892_s1 + $0x19b0] sm:$0xff]  ;;  %v865_v15 = vld [vmem:[%s11892_s1 + $0x19b8] sm:$0xff] }
 0x163   :  { %6941 = vmatpush3.bf16.msra.mxu1 %v6940_v54  ;;  %v805_v54 = vld [vmem:[%s11892_s1 + $0x17d8] sm:$0xff]  ;;  %v831_v11 = vld [vmem:[%s11892_s1 + $0x18a8] sm:$0xff]  ;;  %v850_v23 = vld [vmem:[%s11892_s1 + $0x1940] sm:$0xff] }
 0x164   :  { %6975 = vmatprep.subr.bf16.mxu1 %v6974_v58  ;;  %3259 = vmatmul.mubr.f32.vlgmr.msra.gmra.mrb[20].mxu0 %v9737_v9  ;;  %v750_v9 = vld [vmem:[%s11892_s1 + $0x1620] sm:$0xff]  ;;  %v757_v58 = vld [vmem:[%s11892_s1 + $0x1658] sm:$0xff]  ;;  %v6994_v51 = vpack.c.bf16 %v805_v54, %v804_v53  ;;  %v867_v28 = vld [vmem:[%s11892_s1 + $0x19c8] sm:$0xff] }
 0x165   :  { %6945 = vmatpush3.bf16.msra.mxu0 %v6944_v0  ;;  %3398 = vmatprep.mubr.f32.mxu0 %v1568_v12  ;;  %v6952_v31 = vpack.c.bf16 %v751_v20, %v750_v9  ;;  %v806_v0 = vld [vmem:[%s11892_s1 + $0x17e0] sm:$0xff]  ;;  %v791_v12 = vld [vmem:[%s11892_s1 + $0x1768] sm:$0xff] }
 0x166   :  { %3329 = vmatmul.mubr.f32.vlgmr.msra.gmra.mrb[20].mxu1 %v9746_v13  ;;  %6947 = vmatprep.subr.bf16.mxu0 %v6946_v2  ;;  %v783_v13 = vld [vmem:[%s11892_s1 + $0x1728] sm:$0xff]  ;;  %v6964_v2 = vpack.c.bf16 %v757_v58, %v756_v41  ;;  %v7000_v24 = vpack.c.bf16 %v791_v12, %v790_v8  ;;  %v813_v41 = vld [vmem:[%s11892_s1 + $0x1818] sm:$0xff]  ;;  %v844_v58 = vld [vmem:[%s11892_s1 + $0x1910] sm:$0xff] }
 0x167   :  { %6977 = vmatpush3.bf16.msra.mxu1 %v6976_v1  ;;  %3468 = vmatprep.mubr.f32.mxu1 %v1569_v16  ;;  %v6984_v30 = vpack.c.bf16 %v783_v13, %v782_v21  ;;  %v807_v1 = vld [vmem:[%s11892_s1 + $0x17e8] sm:$0xff]  ;;  %v846_v8 = vld [vmem:[%s11892_s1 + $0x1920] sm:$0xff]  ;;  %v833_v12 = vld [vmem:[%s11892_s1 + $0x18b8] sm:$0xff] }
 0x168   :  { %6979 = vmatprep.subr.bf16.mxu1 %v6978_v6  ;;  %v759_v6 = vld [vmem:[%s11892_s1 + $0x1668] sm:$0xff]  ;;  %v6998_v26 = vpack.c.bf16 %v807_v1, %v806_v0  ;;  %v862_v0 = vld [vmem:[%s11892_s1 + $0x19a0] sm:$0xff] }
 0x169   :  { %6949 = vmatpush3.bf16.msra.mxu0 %v6948_v17  ;;  %v6968_v21 = vpack.c.bf16 %v759_v6, %v758_v5  ;;  %v863_v1 = vld [vmem:[%s11892_s1 + $0x19a8] sm:$0xff]  ;;  %v7014_v5 = vpack.c.bf16 %v831_v11, %v830_v60  ;;  %v838_v32 = vld [vmem:[%s11892_s1 + $0x18e0] sm:$0xff] }
 0x16a   :  { %6951 = vmatprep.subr.bf16.mxu0 %v6950_v19  ;;  %v809_v19 = vld [vmem:[%s11892_s1 + $0x17f8] sm:$0xff]  ;;  %v815_v6 = vld [vmem:[%s11892_s1 + $0x1828] sm:$0xff] }
 0x16b   :  { %6981 = vmatpush3.bf16.msra.mxu1 %v6980_v18  ;;  %v808_v18 = vld [vmem:[%s11892_s1 + $0x17f0] sm:$0xff]  ;;  %v839_v50 = vld [vmem:[%s11892_s1 + $0x18e8] sm:$0xff] }
 0x16c   :  { %6983 = vmatprep.subr.bf16.mxu1 %v6982_v22  ;;  %v33_v22 = vld [vmem:[%s11891_s0 + $0x60] sm:$0xff] }
 0x16d   :  { %6953 = vmatpush3.bf16.msra.mxu0 %v6952_v31  ;;  %v792_v31 = vld [vmem:[%s11892_s1 + $0x1770] sm:$0xff]  ;;  %v1570_v36 = vcombine.high %v33_v22, %v33_v22  ;;  %v10157_v49 = vrot.slane %v33_v22, %v7776_v10  ;;  %v849_v22 = vld [vmem:[%s11892_s1 + $0x1938] sm:$0xff] }
 0x16e   :  { %6955 = vmatprep.subr.bf16.mxu0 %v6954_v33  ;;  %v7002_v33 = vpack.c.bf16 %v809_v19, %v808_v18  ;;  %v7004_v38 = vpack.c.bf16 %v793_v43, %v792_v31  ;;  %v816_v19 = vld [vmem:[%s11892_s1 + $0x1830] sm:$0xff]  ;;  %v819_v43 = vld [vmem:[%s11892_s1 + $0x1848] sm:$0xff] }
 0x16f   :  { %6985 = vmatpush3.bf16.msra.mxu1 %v6984_v30  ;;  %v10166_v53 = vrot.slane %v1570_v36, %v7776_v10  ;;  %v1585_v62 = vcombine.high %v10157_v49, %v10157_v49  ;;  %v837_v36 = vld [vmem:[%s11892_s1 + $0x18d8] sm:$0xff] }
 0x170   :  { %6987 = vmatprep.subr.bf16.mxu1 %v6986_v35  ;;  %v858_v35 = vld [vmem:[%s11892_s1 + $0x1980] sm:$0xff] }
 0x171   :  { %6957 = vmatpush3.bf16.msra.mxu0 %v6956_v42  ;;  %v810_v42 = vld [vmem:[%s11892_s1 + $0x1800] sm:$0xff] }
 0x172   :  { %6959 = vmatprep.subr.bf16.mxu0 %v6958_v45  ;;  %v842_v45 = vld [vmem:[%s11892_s1 + $0x1900] sm:$0xff] }
 0x173   :  { %6989 = vmatpush3.bf16.msra.mxu1 %v6988_v44  ;;  %v811_v44 = vld [vmem:[%s11892_s1 + $0x1808] sm:$0xff] }
 0x174   :  { %6991 = vmatprep.subr.bf16.mxu1 %v6990_v48  ;;  %v829_v48 = vld [vmem:[%s11892_s1 + $0x1898] sm:$0xff]  ;;  %v7008_v54 = vpack.c.bf16 %v811_v44, %v810_v42 }
 0x175   :  { %6961 = vmatpush3.bf16.msra.mxu0 %v6960_v55  ;;  %v7040_v55 = vpack.c.bf16 %v843_v47, %v842_v45  ;;  %v820_v45 = vld [vmem:[%s11892_s1 + $0x1850] sm:$0xff] }
 0x176   :  { %6963 = vmatprep.subr.bf16.mxu0 %v6962_v57  ;;  %v812_v57 = vld [vmem:[%s11892_s1 + $0x1810] sm:$0xff] }
 0x177   :  { %6993 = vmatpush3.bf16.msra.mxu1 %v6992_v56  ;;  %v5082_v7 = vpop.f32.mrb[8].mxu0  ;;  %v7010_v56 = vpack.c.bf16 %v829_v48, %v828_v52  ;;  %v852_v47 = vld [vmem:[%s11892_s1 + $0x1950] sm:$0xff]  ;;  %v853_v48 = vld [vmem:[%s11892_s1 + $0x1958] sm:$0xff] }
 0x178   :  { %6995 = vmatprep.subr.bf16.mxu1 %v6994_v51  ;;  %v5083_v16 = vpop.f32.mrb[9].mxu0  ;;  %v845_v51 = vld [vmem:[%s11892_s1 + $0x1918] sm:$0xff] }
 0x179   :  { %v5117_v17 = vpop.f32.mrb[8].mxu1  ;;  %v5084_v9 = vadd.f32 %v5083_v16, %v5082_v7  ;;  %6965 = vmatpush3.bf16.msra.mxu0 %v6964_v2  ;;  %v1586_v2 = vcombine.high %v10166_v53, %v10166_v53  ;;  %v7046_v7 = vpack.c.bf16 %v863_v1, %v862_v0  ;;  %v840_v0 = vld [vmem:[%s11892_s1 + $0x18f0] sm:$0xff]  ;;  %v841_v1 = vld [vmem:[%s11892_s1 + $0x18f8] sm:$0xff] }
 0x17a   :  { %v5118_v20 = vpop.f32.mrb[9].mxu1  ;;  %6967 = vmatprep.subr.bf16.mxu0 %v6966_v4  ;;  %v7044_v4 = vpack.c.bf16 %v845_v51, %v844_v58  ;;  %v822_v58 = vld [vmem:[%s11892_s1 + $0x1860] sm:$0xff] }
 0x17b   :  { %v5119_v13 = vadd.f32 %v5118_v20, %v5117_v17  ;;  %6997 = vmatpush3.bf16.msra.mxu1 %v6996_v3  ;;  %v2421_v30 = vadd.f32 %v5084_v9, %v9926_v39  ;;  %v859_v39 = vld [vmem:[%s11892_s1 + $0x1988] sm:$0xff]  ;;  %v7012_v3 = vpack.c.bf16 %v813_v41, %v812_v57  ;;  %v817_v9 = vld [vmem:[%s11892_s1 + $0x1838] sm:$0xff]  ;;  %v848_v20 = vld [vmem:[%s11892_s1 + $0x1930] sm:$0xff]  ;;  %v7060_v57 = vpack.c.bf16 %v853_v48, %v852_v47 }
 0x17c   :  { %6999 = vmatprep.subr.bf16.mxu1 %v6998_v26  ;;  %v7038_v46 = vpack.c.bf16 %v859_v39, %v858_v35  ;;  %v832_v26 = vld [vmem:[%s11892_s1 + $0x18b0] sm:$0xff]  ;;  %v7020_v29 = vpack.c.bf16 %v817_v9, %v816_v19  ;;  %v7052_v31 = vpack.c.bf16 %v849_v22, %v848_v20  ;;  %v851_v35 = vld [vmem:[%s11892_s1 + $0x1948] sm:$0xff]  ;;  %v7030_v41 = vpack.c.bf16 %v839_v50, %v838_v32  ;;  %v854_v51 = vld [vmem:[%s11892_s1 + $0x1960] sm:$0xff] }
 0x17d   :  { %v10136_v27 = vadd.f32 %v5119_v13, %v2421_v30  ;;  %6969 = vmatpush3.bf16.msra.mxu0 %v6968_v21  ;;  %v7018_v18 = vpack.c.bf16 %v833_v12, %v832_v26  ;;  %v7050_v21 = vpack.c.bf16 %v865_v15, %v864_v14  ;;  %v834_v13 = vld [vmem:[%s11892_s1 + $0x18c0] sm:$0xff]  ;;  %v836_v39 = vld [vmem:[%s11892_s1 + $0x18d0] sm:$0xff]  ;;  %v7056_v42 = vpack.c.bf16 %v851_v35, %v850_v23  ;;  %v825_v15 = vld [vmem:[%s11892_s1 + $0x1878] sm:$0xff] }
 0x17e   :  { %6971 = vmatprep.subr.bf16.mxu0 %v6970_v25  ;;  %v866_v25 = vld [vmem:[%s11892_s1 + $0x19c0] sm:$0xff]  ;;  %v7026_v44 = vpack.c.bf16 %v837_v36, %v836_v39  ;;  %v7034_v12 = vpack.c.bf16 %v841_v1, %v840_v0  ;;  %v824_v14 = vld [vmem:[%s11892_s1 + $0x1870] sm:$0xff]  ;;  %v857_v19 = vld [vmem:[%s11892_s1 + $0x1978] sm:$0xff] }
 0x17f   :  { %7001 = vmatpush3.bf16.msra.mxu1 %v7000_v24  ;;  %v835_v24 = vld [vmem:[%s11892_s1 + $0x18c8] sm:$0xff]  ;;  %v7054_v34 = vpack.c.bf16 %v867_v28, %v866_v25  ;;  %v890_v9 = vld [vmem:[%s11892_s1 + $0x1a80] sm:$0xff]  ;;  %v892_v23 = vld [vmem:[%s11892_s1 + $0x1a90] sm:$0xff] }
 0x180   :  { %7003 = vmatprep.subr.bf16.mxu1 %v7002_v33  ;;  %v7022_v30 = vpack.c.bf16 %v835_v24, %v834_v13  ;;  %v818_v33 = vld [vmem:[%s11892_s1 + $0x1840] sm:$0xff]  ;;  %v891_v20 = vld [vmem:[%s11892_s1 + $0x1a88] sm:$0xff]  ;;  %v7036_v24 = vpack.c.bf16 %v825_v15, %v824_v14  ;;  %v924_v39 = vld [vmem:[%s11892_s1 + $0x1b90] sm:$0xff] }
 0x181   :  { %6973 = vmatpush3.bf16.msra.mxu0 %v6972_v37  ;;  %v868_v37 = vld [vmem:[%s11892_s1 + $0x19d0] sm:$0xff]  ;;  %v7070_v28 = vpack.c.bf16 %v891_v20, %v890_v9  ;;  %v925_v36 = vld [vmem:[%s11892_s1 + $0x1b98] sm:$0xff]  ;;  %v894_v48 = vld [vmem:[%s11892_s1 + $0x1aa0] sm:$0xff] }
 0x182   :  { %7007 = vmatprep.subr.bf16.mxu0 %v7006_v40  ;;  %v7024_v40 = vpack.c.bf16 %v819_v43, %v818_v33  ;;  %v907_v43 = vld [vmem:[%s11892_s1 + $0x1b08] sm:$0xff]  ;;  %v7106_v47 = vpack.c.bf16 %v925_v36, %v924_v39  ;;  %v928_v0 = vld [vmem:[%s11892_s1 + $0x1bb0] sm:$0xff]  ;;  %v929_v1 = vld [vmem:[%s11892_s1 + $0x1bb8] sm:$0xff] }
 0x183   :  { %7005 = vmatpush3.bf16.msra.mxu1 %v7004_v38  ;;  %v869_v38 = vld [vmem:[%s11892_s1 + $0x19d8] sm:$0xff]  ;;  %v895_v32 = vld [vmem:[%s11892_s1 + $0x1aa8] sm:$0xff]  ;;  %v914_v9 = vld [vmem:[%s11892_s1 + $0x1b40] sm:$0xff] }
 0x184   :  { %7039 = vmatprep.subr.bf16.mxu1 %v7038_v46  ;;  %3399 = vmatmul.mubr.f32.vlgmr.msra.gmra.mrb[22].mxu0 %v9947_v61  ;;  %v814_v61 = vld [vmem:[%s11892_s1 + $0x1820] sm:$0xff]  ;;  %v821_v46 = vld [vmem:[%s11892_s1 + $0x1858] sm:$0xff]  ;;  %v7058_v52 = vpack.c.bf16 %v869_v38, %v868_v37  ;;  %v931_v14 = vld [vmem:[%s11892_s1 + $0x1bc8] sm:$0xff] }
 0x185   :  { %7009 = vmatpush3.bf16.msra.mxu0 %v7008_v54  ;;  %3538 = vmatprep.mubr.f32.mxu0 %v1585_v62  ;;  %v7016_v16 = vpack.c.bf16 %v815_v6, %v814_v61  ;;  %v870_v54 = vld [vmem:[%s11892_s1 + $0x19e0] sm:$0xff]  ;;  %v855_v62 = vld [vmem:[%s11892_s1 + $0x1968] sm:$0xff] }
 0x186   :  { %3469 = vmatmul.mubr.f32.vlgmr.msra.gmra.mrb[22].mxu1 %v9956_v63  ;;  %7011 = vmatprep.subr.bf16.mxu0 %v7010_v56  ;;  %v847_v63 = vld [vmem:[%s11892_s1 + $0x1928] sm:$0xff]  ;;  %v7028_v56 = vpack.c.bf16 %v821_v46, %v820_v45  ;;  %v7064_v26 = vpack.c.bf16 %v855_v62, %v854_v51  ;;  %v877_v45 = vld [vmem:[%s11892_s1 + $0x1a18] sm:$0xff]  ;;  %v908_v46 = vld [vmem:[%s11892_s1 + $0x1b10] sm:$0xff] }
 0x187   :  { %7041 = vmatpush3.bf16.msra.mxu1 %v7040_v55  ;;  %3608 = vmatprep.mubr.f32.mxu1 %v1586_v2  ;;  %v7048_v17 = vpack.c.bf16 %v847_v63, %v846_v8  ;;  %v871_v55 = vld [vmem:[%s11892_s1 + $0x19e8] sm:$0xff]  ;;  %v910_v51 = vld [vmem:[%s11892_s1 + $0x1b20] sm:$0xff]  ;;  %v897_v62 = vld [vmem:[%s11892_s1 + $0x1ab8] sm:$0xff] }
 0x188   :  { %7043 = vmatprep.subr.bf16.mxu1 %v7042_v59  ;;  %v823_v59 = vld [vmem:[%s11892_s1 + $0x1868] sm:$0xff]  ;;  %v7062_v11 = vpack.c.bf16 %v871_v55, %v870_v54  ;;  %v926_v54 = vld [vmem:[%s11892_s1 + $0x1ba0] sm:$0xff] }
 0x189   :  { %7013 = vmatpush3.bf16.msra.mxu0 %v7012_v3  ;;  %v7032_v8 = vpack.c.bf16 %v823_v59, %v822_v58  ;;  %v927_v55 = vld [vmem:[%s11892_s1 + $0x1ba8] sm:$0xff]  ;;  %v7078_v58 = vpack.c.bf16 %v895_v32, %v894_v48  ;;  %v902_v39 = vld [vmem:[%s11892_s1 + $0x1ae0] sm:$0xff] }
 0x18a   :  { %7015 = vmatprep.subr.bf16.mxu0 %v7014_v5  ;;  %v873_v5 = vld [vmem:[%s11892_s1 + $0x19f8] sm:$0xff]  ;;  %v879_v59 = vld [vmem:[%s11892_s1 + $0x1a28] sm:$0xff] }
 0x18b   :  { %7045 = vmatpush3.bf16.msra.mxu1 %v7044_v4  ;;  %v872_v4 = vld [vmem:[%s11892_s1 + $0x19f0] sm:$0xff]  ;;  %v903_v36 = vld [vmem:[%s11892_s1 + $0x1ae8] sm:$0xff] }
 0x18c   :  { %7047 = vmatprep.subr.bf16.mxu1 %v7046_v7  ;;  %v34_v7 = vld [vmem:[%s11891_s0 + $0x68] sm:$0xff] }
 0x18d   :  { %7017 = vmatpush3.bf16.msra.mxu0 %v7016_v16  ;;  %v856_v16 = vld [vmem:[%s11892_s1 + $0x1970] sm:$0xff]  ;;  %v1587_v22 = vcombine.high %v34_v7, %v34_v7  ;;  %v10367_v35 = vrot.slane %v34_v7, %v7776_v10  ;;  %v913_v7 = vld [vmem:[%s11892_s1 + $0x1b38] sm:$0xff] }
 0x18e   :  { %7019 = vmatprep.subr.bf16.mxu0 %v7018_v18  ;;  %v7066_v18 = vpack.c.bf16 %v873_v5, %v872_v4  ;;  %v7068_v25 = vpack.c.bf16 %v857_v19, %v856_v16  ;;  %v880_v5 = vld [vmem:[%s11892_s1 + $0x1a30] sm:$0xff]  ;;  %v883_v19 = vld [vmem:[%s11892_s1 + $0x1a48] sm:$0xff] }
 0x18f   :  { %7049 = vmatpush3.bf16.msra.mxu1 %v7048_v17  ;;  %v10376_v37 = vrot.slane %v1587_v22, %v7776_v10  ;;  %v1602_v50 = vcombine.high %v10367_v35, %v10367_v35  ;;  %v901_v22 = vld [vmem:[%s11892_s1 + $0x1ad8] sm:$0xff] }
 0x190   :  { %7051 = vmatprep.subr.bf16.mxu1 %v7050_v21  ;;  %v922_v21 = vld [vmem:[%s11892_s1 + $0x1b80] sm:$0xff] }
 0x191   :  { %7021 = vmatpush3.bf16.msra.mxu0 %v7020_v29  ;;  %v874_v29 = vld [vmem:[%s11892_s1 + $0x1a00] sm:$0xff] }
 0x192   :  { %7023 = vmatprep.subr.bf16.mxu0 %v7022_v30  ;;  %v906_v30 = vld [vmem:[%s11892_s1 + $0x1b00] sm:$0xff] }
 0x193   :  { %7053 = vmatpush3.bf16.msra.mxu1 %v7052_v31  ;;  %v875_v31 = vld [vmem:[%s11892_s1 + $0x1a08] sm:$0xff] }
 0x194   :  { %7055 = vmatprep.subr.bf16.mxu1 %v7054_v34  ;;  %v893_v34 = vld [vmem:[%s11892_s1 + $0x1a98] sm:$0xff]  ;;  %v7072_v38 = vpack.c.bf16 %v875_v31, %v874_v29 }
 0x195   :  { %7025 = vmatpush3.bf16.msra.mxu0 %v7024_v40  ;;  %v7104_v40 = vpack.c.bf16 %v907_v43, %v906_v30  ;;  %v884_v30 = vld [vmem:[%s11892_s1 + $0x1a50] sm:$0xff] }
 0x196   :  { %7027 = vmatprep.subr.bf16.mxu0 %v7026_v44  ;;  %v876_v44 = vld [vmem:[%s11892_s1 + $0x1a10] sm:$0xff] }
 0x197   :  { %7057 = vmatpush3.bf16.msra.mxu1 %v7056_v42  ;;  %v5152_v60 = vpop.f32.mrb[10].mxu0  ;;  %v7074_v42 = vpack.c.bf16 %v893_v34, %v892_v23  ;;  %v916_v43 = vld [vmem:[%s11892_s1 + $0x1b50] sm:$0xff]  ;;  %v917_v34 = vld [vmem:[%s11892_s1 + $0x1b58] sm:$0xff] }
 0x198   :  { %7059 = vmatprep.subr.bf16.mxu1 %v7058_v52  ;;  %v5153_v2 = vpop.f32.mrb[11].mxu0  ;;  %v909_v52 = vld [vmem:[%s11892_s1 + $0x1b18] sm:$0xff] }
 0x199   :  { %v5187_v3 = vpop.f32.mrb[10].mxu1  ;;  %v5154_v61 = vadd.f32 %v5153_v2, %v5152_v60  ;;  %7029 = vmatpush3.bf16.msra.mxu0 %v7028_v56  ;;  %v1603_v56 = vcombine.high %v10376_v37, %v10376_v37  ;;  %v7110_v60 = vpack.c.bf16 %v927_v55, %v926_v54  ;;  %v904_v54 = vld [vmem:[%s11892_s1 + $0x1af0] sm:$0xff]  ;;  %v905_v55 = vld [vmem:[%s11892_s1 + $0x1af8] sm:$0xff] }
 0x19a   :  { %v5188_v6 = vpop.f32.mrb[11].mxu1  ;;  %7031 = vmatprep.subr.bf16.mxu0 %v7030_v41  ;;  %v7108_v41 = vpack.c.bf16 %v909_v52, %v908_v46  ;;  %v886_v46 = vld [vmem:[%s11892_s1 + $0x1a60] sm:$0xff] }
 0x19b   :  { %v5189_v63 = vadd.f32 %v5188_v6, %v5187_v3  ;;  %7061 = vmatpush3.bf16.msra.mxu1 %v7060_v57  ;;  %v2561_v17 = vadd.f32 %v5154_v61, %v10136_v27  ;;  %v923_v27 = vld [vmem:[%s11892_s1 + $0x1b88] sm:$0xff]  ;;  %v7076_v57 = vpack.c.bf16 %v877_v45, %v876_v44  ;;  %v881_v61 = vld [vmem:[%s11892_s1 + $0x1a38] sm:$0xff]  ;;  %v912_v6 = vld [vmem:[%s11892_s1 + $0x1b30] sm:$0xff]  ;;  %v7124_v44 = vpack.c.bf16 %v917_v34, %v916_v43 }
 0x19c   :  { %7063 = vmatprep.subr.bf16.mxu1 %v7062_v11  ;;  %v7102_v33 = vpack.c.bf16 %v923_v27, %v922_v21  ;;  %v896_v11 = vld [vmem:[%s11892_s1 + $0x1ab0] sm:$0xff]  ;;  %v7084_v15 = vpack.c.bf16 %v881_v61, %v880_v5  ;;  %v7116_v16 = vpack.c.bf16 %v913_v7, %v912_v6  ;;  %v915_v21 = vld [vmem:[%s11892_s1 + $0x1b48] sm:$0xff]  ;;  %v7094_v45 = vpack.c.bf16 %v903_v36, %v902_v39  ;;  %v918_v52 = vld [vmem:[%s11892_s1 + $0x1b60] sm:$0xff] }
 0x19d   :  { %v10346_v13 = vadd.f32 %v5189_v63, %v2561_v17  ;;  %7033 = vmatpush3.bf16.msra.mxu0 %v7032_v8  ;;  %v7082_v4 = vpack.c.bf16 %v897_v62, %v896_v11  ;;  %v7114_v8 = vpack.c.bf16 %v929_v1, %v928_v0  ;;  %v898_v63 = vld [vmem:[%s11892_s1 + $0x1ac0] sm:$0xff]  ;;  %v900_v27 = vld [vmem:[%s11892_s1 + $0x1ad0] sm:$0xff]  ;;  %v7120_v29 = vpack.c.bf16 %v915_v21, %v914_v9  ;;  %v889_v1 = vld [vmem:[%s11892_s1 + $0x1a78] sm:$0xff] }
 0x19e   :  { %7035 = vmatprep.subr.bf16.mxu0 %v7034_v12  ;;  %v930_v12 = vld [vmem:[%s11892_s1 + $0x1bc0] sm:$0xff]  ;;  %v7090_v31 = vpack.c.bf16 %v901_v22, %v900_v27  ;;  %v7098_v62 = vpack.c.bf16 %v905_v55, %v904_v54  ;;  %v888_v0 = vld [vmem:[%s11892_s1 + $0x1a70] sm:$0xff]  ;;  %v921_v5 = vld [vmem:[%s11892_s1 + $0x1b78] sm:$0xff] }
 0x19f   :  { %7065 = vmatpush3.bf16.msra.mxu1 %v7064_v26  ;;  %v899_v26 = vld [vmem:[%s11892_s1 + $0x1ac8] sm:$0xff]  ;;  %v7118_v20 = vpack.c.bf16 %v931_v14, %v930_v12  ;;  %v954_v61 = vld [vmem:[%s11892_s1 + $0x1c80] sm:$0xff]  ;;  %v956_v9 = vld [vmem:[%s11892_s1 + $0x1c90] sm:$0xff] }
 0x1a0   :  { %7067 = vmatprep.subr.bf16.mxu1 %v7066_v18  ;;  %v7086_v17 = vpack.c.bf16 %v899_v26, %v898_v63  ;;  %v882_v18 = vld [vmem:[%s11892_s1 + $0x1a40] sm:$0xff]  ;;  %v955_v6 = vld [vmem:[%s11892_s1 + $0x1c88] sm:$0xff]  ;;  %v7100_v26 = vpack.c.bf16 %v889_v1, %v888_v0  ;;  %v988_v27 = vld [vmem:[%s11892_s1 + $0x1d90] sm:$0xff] }
 0x1a1   :  { %7037 = vmatpush3.bf16.msra.mxu0 %v7036_v24  ;;  %v932_v24 = vld [vmem:[%s11892_s1 + $0x1bd0] sm:$0xff]  ;;  %v7134_v14 = vpack.c.bf16 %v955_v6, %v954_v61  ;;  %v989_v22 = vld [vmem:[%s11892_s1 + $0x1d98] sm:$0xff]  ;;  %v958_v34 = vld [vmem:[%s11892_s1 + $0x1ca0] sm:$0xff] }
 0x1a2   :  { %7071 = vmatprep.subr.bf16.mxu0 %v7070_v28  ;;  %v7088_v28 = vpack.c.bf16 %v883_v19, %v882_v18  ;;  %v971_v19 = vld [vmem:[%s11892_s1 + $0x1d08] sm:$0xff]  ;;  %v7170_v43 = vpack.c.bf16 %v989_v22, %v988_v27  ;;  %v992_v54 = vld [vmem:[%s11892_s1 + $0x1db0] sm:$0xff]  ;;  %v993_v55 = vld [vmem:[%s11892_s1 + $0x1db8] sm:$0xff] }
 0x1a3   :  { %7069 = vmatpush3.bf16.msra.mxu1 %v7068_v25  ;;  %v933_v25 = vld [vmem:[%s11892_s1 + $0x1bd8] sm:$0xff]  ;;  %v959_v39 = vld [vmem:[%s11892_s1 + $0x1ca8] sm:$0xff]  ;;  %v978_v61 = vld [vmem:[%s11892_s1 + $0x1d40] sm:$0xff] }
 0x1a4   :  { %7103 = vmatprep.subr.bf16.mxu1 %v7102_v33  ;;  %3539 = vmatmul.mubr.f32.vlgmr.msra.gmra.mrb[24].mxu0 %v10157_v49  ;;  %v878_v49 = vld [vmem:[%s11892_s1 + $0x1a20] sm:$0xff]  ;;  %v885_v33 = vld [vmem:[%s11892_s1 + $0x1a58] sm:$0xff]  ;;  %v7122_v23 = vpack.c.bf16 %v933_v25, %v932_v24  ;;  %v995_v0 = vld [vmem:[%s11892_s1 + $0x1dc8] sm:$0xff] }
 0x1a5   :  { %7073 = vmatpush3.bf16.msra.mxu0 %v7072_v38  ;;  %3678 = vmatprep.mubr.f32.mxu0 %v1602_v50  ;;  %v7080_v2 = vpack.c.bf16 %v879_v59, %v878_v49  ;;  %v934_v38 = vld [vmem:[%s11892_s1 + $0x1be0] sm:$0xff]  ;;  %v919_v50 = vld [vmem:[%s11892_s1 + $0x1b68] sm:$0xff] }
 0x1a6   :  { %3609 = vmatmul.mubr.f32.vlgmr.msra.gmra.mrb[24].mxu1 %v10166_v53  ;;  %7075 = vmatprep.subr.bf16.mxu0 %v7074_v42  ;;  %v911_v53 = vld [vmem:[%s11892_s1 + $0x1b28] sm:$0xff]  ;;  %v7092_v42 = vpack.c.bf16 %v885_v33, %v884_v30  ;;  %v7128_v11 = vpack.c.bf16 %v919_v50, %v918_v52  ;;  %v941_v30 = vld [vmem:[%s11892_s1 + $0x1c18] sm:$0xff]  ;;  %v972_v33 = vld [vmem:[%s11892_s1 + $0x1d10] sm:$0xff] }
 0x1a7   :  { %7105 = vmatpush3.bf16.msra.mxu1 %v7104_v40  ;;  %3748 = vmatprep.mubr.f32.mxu1 %v1603_v56  ;;  %v7112_v3 = vpack.c.bf16 %v911_v53, %v910_v51  ;;  %v935_v40 = vld [vmem:[%s11892_s1 + $0x1be8] sm:$0xff]  ;;  %v974_v52 = vld [vmem:[%s11892_s1 + $0x1d20] sm:$0xff]  ;;  %v961_v50 = vld [vmem:[%s11892_s1 + $0x1cb8] sm:$0xff] }
 0x1a8   :  { %7107 = vmatprep.subr.bf16.mxu1 %v7106_v47  ;;  %v887_v47 = vld [vmem:[%s11892_s1 + $0x1a68] sm:$0xff]  ;;  %v7126_v32 = vpack.c.bf16 %v935_v40, %v934_v38  ;;  %v990_v38 = vld [vmem:[%s11892_s1 + $0x1da0] sm:$0xff] }
 0x1a9   :  { %7077 = vmatpush3.bf16.msra.mxu0 %v7076_v57  ;;  %v7096_v51 = vpack.c.bf16 %v887_v47, %v886_v46  ;;  %v991_v40 = vld [vmem:[%s11892_s1 + $0x1da8] sm:$0xff]  ;;  %v7142_v46 = vpack.c.bf16 %v959_v39, %v958_v34  ;;  %v966_v27 = vld [vmem:[%s11892_s1 + $0x1ce0] sm:$0xff] }
 0x1aa   :  { %7079 = vmatprep.subr.bf16.mxu0 %v7078_v58  ;;  %v937_v58 = vld [vmem:[%s11892_s1 + $0x1bf8] sm:$0xff]  ;;  %v943_v47 = vld [vmem:[%s11892_s1 + $0x1c28] sm:$0xff] }
 0x1ab   :  { %7109 = vmatpush3.bf16.msra.mxu1 %v7108_v41  ;;  %v936_v41 = vld [vmem:[%s11892_s1 + $0x1bf0] sm:$0xff]  ;;  %v967_v22 = vld [vmem:[%s11892_s1 + $0x1ce8] sm:$0xff] }
 0x1ac   :  { %7111 = vmatprep.subr.bf16.mxu1 %v7110_v60  ;;  %v35_v60 = vld [vmem:[%s11891_s0 + $0x70] sm:$0xff] }
 0x1ad   :  { %7081 = vmatpush3.bf16.msra.mxu0 %v7080_v2  ;;  %v920_v2 = vld [vmem:[%s11892_s1 + $0x1b70] sm:$0xff]  ;;  %v1604_v7 = vcombine.high %v35_v60, %v35_v60  ;;  %v10577_v21 = vrot.slane %v35_v60, %v7776_v10  ;;  %v977_v60 = vld [vmem:[%s11892_s1 + $0x1d38] sm:$0xff] }
 0x1ae   :  { %7083 = vmatprep.subr.bf16.mxu0 %v7082_v4  ;;  %v7130_v4 = vpack.c.bf16 %v937_v58, %v936_v41  ;;  %v7132_v12 = vpack.c.bf16 %v921_v5, %v920_v2  ;;  %v944_v58 = vld [vmem:[%s11892_s1 + $0x1c30] sm:$0xff]  ;;  %v947_v5 = vld [vmem:[%s11892_s1 + $0x1c48] sm:$0xff] }
 0x1af   :  { %7113 = vmatpush3.bf16.msra.mxu1 %v7112_v3  ;;  %v10586_v24 = vrot.slane %v1604_v7, %v7776_v10  ;;  %v1619_v36 = vcombine.high %v10577_v21, %v10577_v21  ;;  %v965_v7 = vld [vmem:[%s11892_s1 + $0x1cd8] sm:$0xff] }
 0x1b0   :  { %7115 = vmatprep.subr.bf16.mxu1 %v7114_v8  ;;  %v986_v8 = vld [vmem:[%s11892_s1 + $0x1d80] sm:$0xff] }
 0x1b1   :  { %7085 = vmatpush3.bf16.msra.mxu0 %v7084_v15  ;;  %v938_v15 = vld [vmem:[%s11892_s1 + $0x1c00] sm:$0xff] }
 0x1b2   :  { %7087 = vmatprep.subr.bf16.mxu0 %v7086_v17  ;;  %v970_v17 = vld [vmem:[%s11892_s1 + $0x1d00] sm:$0xff] }
 0x1b3   :  { %7117 = vmatpush3.bf16.msra.mxu1 %v7116_v16  ;;  %v939_v16 = vld [vmem:[%s11892_s1 + $0x1c08] sm:$0xff] }
 0x1b4   :  { %7119 = vmatprep.subr.bf16.mxu1 %v7118_v20  ;;  %v957_v20 = vld [vmem:[%s11892_s1 + $0x1c98] sm:$0xff]  ;;  %v7136_v25 = vpack.c.bf16 %v939_v16, %v938_v15 }
 0x1b5   :  { %7089 = vmatpush3.bf16.msra.mxu0 %v7088_v28  ;;  %v7168_v28 = vpack.c.bf16 %v971_v19, %v970_v17  ;;  %v948_v17 = vld [vmem:[%s11892_s1 + $0x1c50] sm:$0xff] }
 0x1b6   :  { %7091 = vmatprep.subr.bf16.mxu0 %v7090_v31  ;;  %v940_v31 = vld [vmem:[%s11892_s1 + $0x1c10] sm:$0xff] }
 0x1b7   :  { %7121 = vmatpush3.bf16.msra.mxu1 %v7120_v29  ;;  %v5222_v48 = vpop.f32.mrb[12].mxu0  ;;  %v7138_v29 = vpack.c.bf16 %v957_v20, %v956_v9  ;;  %v980_v19 = vld [vmem:[%s11892_s1 + $0x1d50] sm:$0xff]  ;;  %v981_v20 = vld [vmem:[%s11892_s1 + $0x1d58] sm:$0xff] }
 0x1b8   :  { %7123 = vmatprep.subr.bf16.mxu1 %v7122_v23  ;;  %v5223_v56 = vpop.f32.mrb[13].mxu0  ;;  %v973_v23 = vld [vmem:[%s11892_s1 + $0x1d18] sm:$0xff] }
 0x1b9   :  { %v5257_v57 = vpop.f32.mrb[12].mxu1  ;;  %v5224_v49 = vadd.f32 %v5223_v56, %v5222_v48  ;;  %7093 = vmatpush3.bf16.msra.mxu0 %v7092_v42  ;;  %v1620_v42 = vcombine.high %v10586_v24, %v10586_v24  ;;  %v7174_v48 = vpack.c.bf16 %v991_v40, %v990_v38  ;;  %v968_v38 = vld [vmem:[%s11892_s1 + $0x1cf0] sm:$0xff]  ;;  %v969_v40 = vld [vmem:[%s11892_s1 + $0x1cf8] sm:$0xff] }
 0x1ba   :  { %v5258_v59 = vpop.f32.mrb[13].mxu1  ;;  %7095 = vmatprep.subr.bf16.mxu0 %v7094_v45  ;;  %v7172_v45 = vpack.c.bf16 %v973_v23, %v972_v33  ;;  %v950_v33 = vld [vmem:[%s11892_s1 + $0x1c60] sm:$0xff] }
 0x1bb   :  { %v5259_v53 = vadd.f32 %v5258_v59, %v5257_v57  ;;  %7125 = vmatpush3.bf16.msra.mxu1 %v7124_v44  ;;  %v2701_v3 = vadd.f32 %v5224_v49, %v10346_v13  ;;  %v987_v13 = vld [vmem:[%s11892_s1 + $0x1d88] sm:$0xff]  ;;  %v7140_v44 = vpack.c.bf16 %v941_v30, %v940_v31  ;;  %v945_v49 = vld [vmem:[%s11892_s1 + $0x1c38] sm:$0xff]  ;;  %v976_v59 = vld [vmem:[%s11892_s1 + $0x1d30] sm:$0xff]  ;;  %v7188_v31 = vpack.c.bf16 %v981_v20, %v980_v19 }
 0x1bc   :  { %7127 = vmatprep.subr.bf16.mxu1 %v7126_v32  ;;  %v7166_v18 = vpack.c.bf16 %v987_v13, %v986_v8  ;;  %v960_v32 = vld [vmem:[%s11892_s1 + $0x1cb0] sm:$0xff]  ;;  %v7148_v1 = vpack.c.bf16 %v945_v49, %v944_v58  ;;  %v7180_v2 = vpack.c.bf16 %v977_v60, %v976_v59  ;;  %v979_v8 = vld [vmem:[%s11892_s1 + $0x1d48] sm:$0xff]  ;;  %v7158_v30 = vpack.c.bf16 %v967_v22, %v966_v27  ;;  %v982_v23 = vld [vmem:[%s11892_s1 + $0x1d60] sm:$0xff] }
 0x1bd   :  { %v10556_v63 = vadd.f32 %v5259_v53, %v2701_v3  ;;  %7097 = vmatpush3.bf16.msra.mxu0 %v7096_v51  ;;  %v7146_v41 = vpack.c.bf16 %v961_v50, %v960_v32  ;;  %v7178_v51 = vpack.c.bf16 %v993_v55, %v992_v54  ;;  %v962_v53 = vld [vmem:[%s11892_s1 + $0x1cc0] sm:$0xff]  ;;  %v964_v13 = vld [vmem:[%s11892_s1 + $0x1cd0] sm:$0xff]  ;;  %v7184_v15 = vpack.c.bf16 %v979_v8, %v978_v61  ;;  %v953_v55 = vld [vmem:[%s11892_s1 + $0x1c78] sm:$0xff] }
 0x1be   :  { %7099 = vmatprep.subr.bf16.mxu0 %v7098_v62  ;;  %v994_v62 = vld [vmem:[%s11892_s1 + $0x1dc0] sm:$0xff]  ;;  %v7154_v16 = vpack.c.bf16 %v965_v7, %v964_v13  ;;  %v7162_v50 = vpack.c.bf16 %v969_v40, %v968_v38  ;;  %v952_v54 = vld [vmem:[%s11892_s1 + $0x1c70] sm:$0xff]  ;;  %v985_v58 = vld [vmem:[%s11892_s1 + $0x1d78] sm:$0xff] }
 0x1bf   :  { %7129 = vmatpush3.bf16.msra.mxu1 %v7128_v11  ;;  %v963_v11 = vld [vmem:[%s11892_s1 + $0x1cc8] sm:$0xff]  ;;  %v7182_v6 = vpack.c.bf16 %v995_v0, %v994_v62  ;;  %v1018_v49 = vld [vmem:[%s11892_s1 + $0x1e80] sm:$0xff]  ;;  %v1020_v61 = vld [vmem:[%s11892_s1 + $0x1e90] sm:$0xff] }
 0x1c0   :  { %7131 = vmatprep.subr.bf16.mxu1 %v7130_v4  ;;  %v7150_v3 = vpack.c.bf16 %v963_v11, %v962_v53  ;;  %v946_v4 = vld [vmem:[%s11892_s1 + $0x1c40] sm:$0xff]  ;;  %v1019_v59 = vld [vmem:[%s11892_s1 + $0x1e88] sm:$0xff]  ;;  %v7164_v11 = vpack.c.bf16 %v953_v55, %v952_v54  ;;  %v1052_v13 = vld [vmem:[%s11892_s1 + $0x1f90] sm:$0xff] }
 0x1c1   :  { %7101 = vmatpush3.bf16.msra.mxu0 %v7100_v26  ;;  %v996_v26 = vld [vmem:[%s11892_s1 + $0x1dd0] sm:$0xff]  ;;  %v7198_v0 = vpack.c.bf16 %v1019_v59, %v1018_v49  ;;  %v1053_v7 = vld [vmem:[%s11892_s1 + $0x1f98] sm:$0xff]  ;;  %v1022_v20 = vld [vmem:[%s11892_s1 + $0x1ea0] sm:$0xff] }
 0x1c2   :  { %7135 = vmatprep.subr.bf16.mxu0 %v7134_v14  ;;  %v7152_v14 = vpack.c.bf16 %v947_v5, %v946_v4  ;;  %v1035_v5 = vld [vmem:[%s11892_s1 + $0x1f08] sm:$0xff]  ;;  %v7234_v19 = vpack.c.bf16 %v1053_v7, %v1052_v13  ;;  %v1056_v38 = vld [vmem:[%s11892_s1 + $0x1fb0] sm:$0xff]  ;;  %v1057_v40 = vld [vmem:[%s11892_s1 + $0x1fb8] sm:$0xff] }
 0x1c3   :  { %7133 = vmatpush3.bf16.msra.mxu1 %v7132_v12  ;;  %v997_v12 = vld [vmem:[%s11892_s1 + $0x1dd8] sm:$0xff]  ;;  %v1023_v27 = vld [vmem:[%s11892_s1 + $0x1ea8] sm:$0xff]  ;;  %v1042_v49 = vld [vmem:[%s11892_s1 + $0x1f40] sm:$0xff] }
 0x1c4   :  { %7167 = vmatprep.subr.bf16.mxu1 %v7166_v18  ;;  %3679 = vmatmul.mubr.f32.vlgmr.msra.gmra.mrb[26].mxu0 %v10367_v35  ;;  %v942_v35 = vld [vmem:[%s11892_s1 + $0x1c20] sm:$0xff]  ;;  %v949_v18 = vld [vmem:[%s11892_s1 + $0x1c58] sm:$0xff]  ;;  %v7186_v9 = vpack.c.bf16 %v997_v12, %v996_v26  ;;  %v1059_v54 = vld [vmem:[%s11892_s1 + $0x1fc8] sm:$0xff] }
 0x1c5   :  { %7137 = vmatpush3.bf16.msra.mxu0 %v7136_v25  ;;  %3818 = vmatprep.mubr.f32.mxu0 %v1619_v36  ;;  %v7144_v56 = vpack.c.bf16 %v943_v47, %v942_v35  ;;  %v998_v25 = vld [vmem:[%s11892_s1 + $0x1de0] sm:$0xff]  ;;  %v983_v36 = vld [vmem:[%s11892_s1 + $0x1d68] sm:$0xff] }
 0x1c6   :  { %3749 = vmatmul.mubr.f32.vlgmr.msra.gmra.mrb[26].mxu1 %v10376_v37  ;;  %7139 = vmatprep.subr.bf16.mxu0 %v7138_v29  ;;  %v975_v37 = vld [vmem:[%s11892_s1 + $0x1d28] sm:$0xff]  ;;  %v7156_v29 = vpack.c.bf16 %v949_v18, %v948_v17  ;;  %v7192_v32 = vpack.c.bf16 %v983_v36, %v982_v23  ;;  %v1005_v17 = vld [vmem:[%s11892_s1 + $0x1e18] sm:$0xff]  ;;  %v1036_v18 = vld [vmem:[%s11892_s1 + $0x1f10] sm:$0xff] }
 0x1c7   :  { %7169 = vmatpush3.bf16.msra.mxu1 %v7168_v28  ;;  %3888 = vmatprep.mubr.f32.mxu1 %v1620_v42  ;;  %v7176_v57 = vpack.c.bf16 %v975_v37, %v974_v52  ;;  %v999_v28 = vld [vmem:[%s11892_s1 + $0x1de8] sm:$0xff]  ;;  %v1038_v23 = vld [vmem:[%s11892_s1 + $0x1f20] sm:$0xff]  ;;  %v1025_v36 = vld [vmem:[%s11892_s1 + $0x1eb8] sm:$0xff] }
 0x1c8   :  { %7171 = vmatprep.subr.bf16.mxu1 %v7170_v43  ;;  %v951_v43 = vld [vmem:[%s11892_s1 + $0x1c68] sm:$0xff]  ;;  %v7190_v39 = vpack.c.bf16 %v999_v28, %v998_v25  ;;  %v1054_v25 = vld [vmem:[%s11892_s1 + $0x1fa0] sm:$0xff] }
 0x1c9   :  { %7141 = vmatpush3.bf16.msra.mxu0 %v7140_v44  ;;  %v7160_v52 = vpack.c.bf16 %v951_v43, %v950_v33  ;;  %v1055_v28 = vld [vmem:[%s11892_s1 + $0x1fa8] sm:$0xff]  ;;  %v7206_v33 = vpack.c.bf16 %v1023_v27, %v1022_v20  ;;  %v1030_v13 = vld [vmem:[%s11892_s1 + $0x1ee0] sm:$0xff] }
 0x1ca   :  { %7143 = vmatprep.subr.bf16.mxu0 %v7142_v46  ;;  %v1001_v46 = vld [vmem:[%s11892_s1 + $0x1df8] sm:$0xff]  ;;  %v1007_v43 = vld [vmem:[%s11892_s1 + $0x1e28] sm:$0xff] }
 0x1cb   :  { %7173 = vmatpush3.bf16.msra.mxu1 %v7172_v45  ;;  %v1000_v45 = vld [vmem:[%s11892_s1 + $0x1df0] sm:$0xff]  ;;  %v1031_v7 = vld [vmem:[%s11892_s1 + $0x1ee8] sm:$0xff] }
 0x1cc   :  { %7175 = vmatprep.subr.bf16.mxu1 %v7174_v48  ;;  %v36_v48 = vld [vmem:[%s11891_s0 + $0x78] sm:$0xff] }
 0x1cd   :  { %7145 = vmatpush3.bf16.msra.mxu0 %v7144_v56  ;;  %v984_v56 = vld [vmem:[%s11892_s1 + $0x1d70] sm:$0xff]  ;;  %v1621_v60 = vcombine.high %v36_v48, %v36_v48  ;;  %v10787_v8 = vrot.slane %v36_v48, %v7776_v10  ;;  %v1041_v48 = vld [vmem:[%s11892_s1 + $0x1f38] sm:$0xff] }
 0x1ce   :  { %7147 = vmatprep.subr.bf16.mxu0 %v7146_v41  ;;  %v7194_v41 = vpack.c.bf16 %v1001_v46, %v1000_v45  ;;  %v7196_v62 = vpack.c.bf16 %v985_v58, %v984_v56  ;;  %v1008_v46 = vld [vmem:[%s11892_s1 + $0x1e30] sm:$0xff]  ;;  %v1011_v58 = vld [vmem:[%s11892_s1 + $0x1e48] sm:$0xff] }
 0x1cf   :  { %7177 = vmatpush3.bf16.msra.mxu1 %v7176_v57  ;;  %v10796_v26 = vrot.slane %v1621_v60, %v7776_v10  ;;  %v1636_v22 = vcombine.high %v10787_v8, %v10787_v8  ;;  %v1029_v60 = vld [vmem:[%s11892_s1 + $0x1ed8] sm:$0xff] }
 0x1d0   :  { %7179 = vmatprep.subr.bf16.mxu1 %v7178_v51  ;;  %v1050_v51 = vld [vmem:[%s11892_s1 + $0x1f80] sm:$0xff] }
 0x1d1   :  { %7149 = vmatpush3.bf16.msra.mxu0 %v7148_v1  ;;  %v1002_v1 = vld [vmem:[%s11892_s1 + $0x1e00] sm:$0xff] }
 0x1d2   :  { %7151 = vmatprep.subr.bf16.mxu0 %v7150_v3  ;;  %v1034_v3 = vld [vmem:[%s11892_s1 + $0x1f00] sm:$0xff] }
 0x1d3   :  { %7181 = vmatpush3.bf16.msra.mxu1 %v7180_v2  ;;  %v1003_v2 = vld [vmem:[%s11892_s1 + $0x1e08] sm:$0xff] }
 0x1d4   :  { %7183 = vmatprep.subr.bf16.mxu1 %v7182_v6  ;;  %v1021_v6 = vld [vmem:[%s11892_s1 + $0x1e98] sm:$0xff]  ;;  %v7200_v12 = vpack.c.bf16 %v1003_v2, %v1002_v1 }
 0x1d5   :  { %7153 = vmatpush3.bf16.msra.mxu0 %v7152_v14  ;;  %v7232_v14 = vpack.c.bf16 %v1035_v5, %v1034_v3  ;;  %v1012_v3 = vld [vmem:[%s11892_s1 + $0x1e50] sm:$0xff] }
 0x1d6   :  { %7155 = vmatprep.subr.bf16.mxu0 %v7154_v16  ;;  %v1004_v16 = vld [vmem:[%s11892_s1 + $0x1e10] sm:$0xff] }
 0x1d7   :  { %7185 = vmatpush3.bf16.msra.mxu1 %v7184_v15  ;;  %v5292_v34 = vpop.f32.mrb[14].mxu0  ;;  %v7202_v15 = vpack.c.bf16 %v1021_v6, %v1020_v61  ;;  %v1044_v5 = vld [vmem:[%s11892_s1 + $0x1f50] sm:$0xff]  ;;  %v1045_v6 = vld [vmem:[%s11892_s1 + $0x1f58] sm:$0xff] }
 0x1d8   :  { %7187 = vmatprep.subr.bf16.mxu1 %v7186_v9  ;;  %v5293_v42 = vpop.f32.mrb[15].mxu0  ;;  %v1037_v9 = vld [vmem:[%s11892_s1 + $0x1f18] sm:$0xff] }
 0x1d9   :  { %v5327_v44 = vpop.f32.mrb[14].mxu1  ;;  %v5294_v35 = vadd.f32 %v5293_v42, %v5292_v34  ;;  %7157 = vmatpush3.bf16.msra.mxu0 %v7156_v29  ;;  %v1637_v29 = vcombine.high %v10796_v26, %v10796_v26  ;;  %v7238_v34 = vpack.c.bf16 %v1055_v28, %v1054_v25  ;;  %v1032_v25 = vld [vmem:[%s11892_s1 + $0x1ef0] sm:$0xff]  ;;  %v1033_v28 = vld [vmem:[%s11892_s1 + $0x1ef8] sm:$0xff] }
 0x1da   :  { %v5328_v47 = vpop.f32.mrb[15].mxu1  ;;  %7159 = vmatprep.subr.bf16.mxu0 %v7158_v30  ;;  %v7236_v30 = vpack.c.bf16 %v1037_v9, %v1036_v18  ;;  %v1014_v18 = vld [vmem:[%s11892_s1 + $0x1e60] sm:$0xff] }
 0x1db   :  { %v5329_v37 = vadd.f32 %v5328_v47, %v5327_v44  ;;  %7189 = vmatpush3.bf16.msra.mxu1 %v7188_v31  ;;  %v2841_v57 = vadd.f32 %v5294_v35, %v10556_v63  ;;  %v1051_v63 = vld [vmem:[%s11892_s1 + $0x1f88] sm:$0xff]  ;;  %v7204_v31 = vpack.c.bf16 %v1005_v17, %v1004_v16  ;;  %v1009_v35 = vld [vmem:[%s11892_s1 + $0x1e38] sm:$0xff]  ;;  %v1040_v47 = vld [vmem:[%s11892_s1 + $0x1f30] sm:$0xff]  ;;  %v7252_v16 = vpack.c.bf16 %v1045_v6, %v1044_v5 }
 0x1dc   :  { %7191 = vmatprep.subr.bf16.mxu1 %v7190_v39  ;;  %v7230_v4 = vpack.c.bf16 %v1051_v63, %v1050_v51  ;;  %v1024_v39 = vld [vmem:[%s11892_s1 + $0x1eb0] sm:$0xff]  ;;  %v7212_v55 = vpack.c.bf16 %v1009_v35, %v1008_v46  ;;  %v7244_v56 = vpack.c.bf16 %v1041_v48, %v1040_v47  ;;  %v1043_v51 = vld [vmem:[%s11892_s1 + $0x1f48] sm:$0xff]  ;;  %v7222_v17 = vpack.c.bf16 %v1031_v7, %v1030_v13  ;;  %v1046_v9 = vld [vmem:[%s11892_s1 + $0x1f60] sm:$0xff] }
 0x1dd   :  { %v10766_v53 = vadd.f32 %v5329_v37, %v2841_v57  ;;  %7161 = vmatpush3.bf16.msra.mxu0 %v7160_v52  ;;  %v7210_v45 = vpack.c.bf16 %v1025_v36, %v1024_v39  ;;  %v7242_v52 = vpack.c.bf16 %v1057_v40, %v1056_v38  ;;  %v1026_v37 = vld [vmem:[%s11892_s1 + $0x1ec0] sm:$0xff]  ;;  %v1028_v63 = vld [vmem:[%s11892_s1 + $0x1ed0] sm:$0xff]  ;;  %v7248_v1 = vpack.c.bf16 %v1043_v51, %v1042_v49  ;;  %v1017_v40 = vld [vmem:[%s11892_s1 + $0x1e78] sm:$0xff] }
 0x1de   :  { %7163 = vmatprep.subr.bf16.mxu0 %v7162_v50  ;;  %v1058_v50 = vld [vmem:[%s11892_s1 + $0x1fc0] sm:$0xff]  ;;  %v7218_v2 = vpack.c.bf16 %v1029_v60, %v1028_v63  ;;  %v7226_v36 = vpack.c.bf16 %v1033_v28, %v1032_v25  ;;  %v1016_v38 = vld [vmem:[%s11892_s1 + $0x1e70] sm:$0xff]  ;;  %v1049_v46 = vld [vmem:[%s11892_s1 + $0x1f78] sm:$0xff] }
 0x1df   :  { %7193 = vmatpush3.bf16.msra.mxu1 %v7192_v32  ;;  %v1027_v32 = vld [vmem:[%s11892_s1 + $0x1ec8] sm:$0xff]  ;;  %v7246_v59 = vpack.c.bf16 %v1059_v54, %v1058_v50  ;;  %v1082_v35 = vld [vmem:[%s11892_s1 + $0x2080] sm:$0xff]  ;;  %v1084_v49 = vld [vmem:[%s11892_s1 + $0x2090] sm:$0xff] }
 0x1e0   :  { %7195 = vmatprep.subr.bf16.mxu1 %v7194_v41  ;;  %v7214_v57 = vpack.c.bf16 %v1027_v32, %v1026_v37  ;;  %v1010_v41 = vld [vmem:[%s11892_s1 + $0x1e40] sm:$0xff]  ;;  %v1083_v47 = vld [vmem:[%s11892_s1 + $0x2088] sm:$0xff]  ;;  %v7228_v32 = vpack.c.bf16 %v1017_v40, %v1016_v38  ;;  %v1116_v63 = vld [vmem:[%s11892_s1 + $0x2190] sm:$0xff] }
 0x1e1   :  { %7165 = vmatpush3.bf16.msra.mxu0 %v7164_v11  ;;  %v1060_v11 = vld [vmem:[%s11892_s1 + $0x1fd0] sm:$0xff]  ;;  %v7262_v54 = vpack.c.bf16 %v1083_v47, %v1082_v35  ;;  %v1117_v60 = vld [vmem:[%s11892_s1 + $0x2198] sm:$0xff]  ;;  %v1086_v6 = vld [vmem:[%s11892_s1 + $0x20a0] sm:$0xff] }
 0x1e2   :  { %7199 = vmatprep.subr.bf16.mxu0 %v7198_v0  ;;  %v7216_v0 = vpack.c.bf16 %v1011_v58, %v1010_v41  ;;  %v1099_v58 = vld [vmem:[%s11892_s1 + $0x2108] sm:$0xff]  ;;  %v7298_v5 = vpack.c.bf16 %v1117_v60, %v1116_v63  ;;  %v1120_v25 = vld [vmem:[%s11892_s1 + $0x21b0] sm:$0xff]  ;;  %v1121_v28 = vld [vmem:[%s11892_s1 + $0x21b8] sm:$0xff] }
 0x1e3   :  { %7197 = vmatpush3.bf16.msra.mxu1 %v7196_v62  ;;  %v1061_v62 = vld [vmem:[%s11892_s1 + $0x1fd8] sm:$0xff]  ;;  %v1087_v13 = vld [vmem:[%s11892_s1 + $0x20a8] sm:$0xff]  ;;  %v1106_v35 = vld [vmem:[%s11892_s1 + $0x2140] sm:$0xff] }
 0x1e4   :  { %7231 = vmatprep.subr.bf16.mxu1 %v7230_v4  ;;  %3819 = vmatmul.mubr.f32.vlgmr.msra.gmra.mrb[28].mxu0 %v10577_v21  ;;  %v1006_v21 = vld [vmem:[%s11892_s1 + $0x1e20] sm:$0xff]  ;;  %v1013_v4 = vld [vmem:[%s11892_s1 + $0x1e58] sm:$0xff]  ;;  %v7250_v61 = vpack.c.bf16 %v1061_v62, %v1060_v11  ;;  %v1123_v38 = vld [vmem:[%s11892_s1 + $0x21c8] sm:$0xff] }
 0x1e5   :  { %7201 = vmatpush3.bf16.msra.mxu0 %v7200_v12  ;;  %3958 = vmatprep.mubr.f32.mxu0 %v1636_v22  ;;  %v7208_v42 = vpack.c.bf16 %v1007_v43, %v1006_v21  ;;  %v1062_v12 = vld [vmem:[%s11892_s1 + $0x1fe0] sm:$0xff]  ;;  %v1047_v22 = vld [vmem:[%s11892_s1 + $0x1f68] sm:$0xff] }
 0x1e6   :  { %3889 = vmatmul.mubr.f32.vlgmr.msra.gmra.mrb[28].mxu1 %v10586_v24  ;;  %7203 = vmatprep.subr.bf16.mxu0 %v7202_v15  ;;  %v1039_v24 = vld [vmem:[%s11892_s1 + $0x1f28] sm:$0xff]  ;;  %v7220_v15 = vpack.c.bf16 %v1013_v4, %v1012_v3  ;;  %v7256_v39 = vpack.c.bf16 %v1047_v22, %v1046_v9  ;;  %v1069_v3 = vld [vmem:[%s11892_s1 + $0x2018] sm:$0xff]  ;;  %v1100_v4 = vld [vmem:[%s11892_s1 + $0x2110] sm:$0xff] }
 0x1e7   :  { %7233 = vmatpush3.bf16.msra.mxu1 %v7232_v14  ;;  %4028 = vmatprep.mubr.f32.mxu1 %v1637_v29  ;;  %v7240_v44 = vpack.c.bf16 %v1039_v24, %v1038_v23  ;;  %v1063_v14 = vld [vmem:[%s11892_s1 + $0x1fe8] sm:$0xff]  ;;  %v1102_v9 = vld [vmem:[%s11892_s1 + $0x2120] sm:$0xff]  ;;  %v1089_v22 = vld [vmem:[%s11892_s1 + $0x20b8] sm:$0xff] }
 0x1e8   :  { %7235 = vmatprep.subr.bf16.mxu1 %v7234_v19  ;;  %v1015_v19 = vld [vmem:[%s11892_s1 + $0x1e68] sm:$0xff]  ;;  %v7254_v27 = vpack.c.bf16 %v1063_v14, %v1062_v12  ;;  %v1118_v12 = vld [vmem:[%s11892_s1 + $0x21a0] sm:$0xff] }
 0x1e9   :  { %7205 = vmatpush3.bf16.msra.mxu0 %v7204_v31  ;;  %v7224_v23 = vpack.c.bf16 %v1015_v19, %v1014_v18  ;;  %v1119_v14 = vld [vmem:[%s11892_s1 + $0x21a8] sm:$0xff]  ;;  %v7270_v18 = vpack.c.bf16 %v1087_v13, %v1086_v6  ;;  %v1094_v63 = vld [vmem:[%s11892_s1 + $0x20e0] sm:$0xff] }
 0x1ea   :  { %7207 = vmatprep.subr.bf16.mxu0 %v7206_v33  ;;  %v1065_v33 = vld [vmem:[%s11892_s1 + $0x1ff8] sm:$0xff]  ;;  %v1071_v19 = vld [vmem:[%s11892_s1 + $0x2028] sm:$0xff] }
 0x1eb   :  { %7237 = vmatpush3.bf16.msra.mxu1 %v7236_v30  ;;  %v1064_v30 = vld [vmem:[%s11892_s1 + $0x1ff0] sm:$0xff]  ;;  %v1095_v60 = vld [vmem:[%s11892_s1 + $0x20e8] sm:$0xff] }
 0x1ec   :  { %7239 = vmatprep.subr.bf16.mxu1 %v7238_v34  ;;  %v37_v34 = vld [vmem:[%s11891_s0 + $0x80] sm:$0xff] }
 0x1ed   :  { %7209 = vmatpush3.bf16.msra.mxu0 %v7208_v42  ;;  %v1048_v42 = vld [vmem:[%s11892_s1 + $0x1f70] sm:$0xff]  ;;  %v1638_v48 = vcombine.high %v37_v34, %v37_v34  ;;  %v10997_v51 = vrot.slane %v37_v34, %v7776_v10  ;;  %v1105_v34 = vld [vmem:[%s11892_s1 + $0x2138] sm:$0xff] }
 0x1ee   :  { %7211 = vmatprep.subr.bf16.mxu0 %v7210_v45  ;;  %v7258_v45 = vpack.c.bf16 %v1065_v33, %v1064_v30  ;;  %v7260_v50 = vpack.c.bf16 %v1049_v46, %v1048_v42  ;;  %v1072_v33 = vld [vmem:[%s11892_s1 + $0x2030] sm:$0xff]  ;;  %v1075_v46 = vld [vmem:[%s11892_s1 + $0x2048] sm:$0xff] }
 0x1ef   :  { %7241 = vmatpush3.bf16.msra.mxu1 %v7240_v44  ;;  %v11006_v11 = vrot.slane %v1638_v48, %v7776_v10  ;;  %v1653_v7 = vcombine.high %v10997_v51, %v10997_v51  ;;  %v1093_v48 = vld [vmem:[%s11892_s1 + $0x20d8] sm:$0xff] }
 0x1f0   :  { %7243 = vmatprep.subr.bf16.mxu1 %v7242_v52  ;;  %v1114_v52 = vld [vmem:[%s11892_s1 + $0x2180] sm:$0xff] }
 0x1f1   :  { %7213 = vmatpush3.bf16.msra.mxu0 %v7212_v55  ;;  %v1066_v55 = vld [vmem:[%s11892_s1 + $0x2000] sm:$0xff] }
 0x1f2   :  { %7215 = vmatprep.subr.bf16.mxu0 %v7214_v57  ;;  %v1098_v57 = vld [vmem:[%s11892_s1 + $0x2100] sm:$0xff] }
 0x1f3   :  { %7245 = vmatpush3.bf16.msra.mxu1 %v7244_v56  ;;  %v1067_v56 = vld [vmem:[%s11892_s1 + $0x2008] sm:$0xff] }
 0x1f4   :  { %7247 = vmatprep.subr.bf16.mxu1 %v7246_v59  ;;  %v1085_v59 = vld [vmem:[%s11892_s1 + $0x2098] sm:$0xff]  ;;  %v7264_v62 = vpack.c.bf16 %v1067_v56, %v1066_v55 }
 0x1f5   :  { %7217 = vmatpush3.bf16.msra.mxu0 %v7216_v0  ;;  %v7296_v0 = vpack.c.bf16 %v1099_v58, %v1098_v57  ;;  %v1076_v57 = vld [vmem:[%s11892_s1 + $0x2050] sm:$0xff] }
 0x1f6   :  { %7219 = vmatprep.subr.bf16.mxu0 %v7218_v2  ;;  %v1068_v2 = vld [vmem:[%s11892_s1 + $0x2010] sm:$0xff] }
 0x1f7   :  { %7249 = vmatpush3.bf16.msra.mxu1 %v7248_v1  ;;  %v5362_v20 = vpop.f32.mrb[16].mxu0  ;;  %v7266_v1 = vpack.c.bf16 %v1085_v59, %v1084_v49  ;;  %v1108_v58 = vld [vmem:[%s11892_s1 + $0x2150] sm:$0xff]  ;;  %v1109_v59 = vld [vmem:[%s11892_s1 + $0x2158] sm:$0xff] }
 0x1f8   :  { %7251 = vmatprep.subr.bf16.mxu1 %v7250_v61  ;;  %v5363_v29 = vpop.f32.mrb[17].mxu0  ;;  %v1101_v61 = vld [vmem:[%s11892_s1 + $0x2118] sm:$0xff] }
 0x1f9   :  { %v5397_v31 = vpop.f32.mrb[16].mxu1  ;;  %v5364_v21 = vadd.f32 %v5363_v29, %v5362_v20  ;;  %7221 = vmatpush3.bf16.msra.mxu0 %v7220_v15  ;;  %v1654_v15 = vcombine.high %v11006_v11, %v11006_v11  ;;  %v7302_v20 = vpack.c.bf16 %v1119_v14, %v1118_v12  ;;  %v1096_v12 = vld [vmem:[%s11892_s1 + $0x20f0] sm:$0xff]  ;;  %v1097_v14 = vld [vmem:[%s11892_s1 + $0x20f8] sm:$0xff] }
 0x1fa   :  { %v5398_v43 = vpop.f32.mrb[17].mxu1  ;;  %7223 = vmatprep.subr.bf16.mxu0 %v7222_v17  ;;  %v7300_v17 = vpack.c.bf16 %v1101_v61, %v1100_v4  ;;  %v1078_v4 = vld [vmem:[%s11892_s1 + $0x2060] sm:$0xff] }
 0x1fb   :  { %v5399_v24 = vadd.f32 %v5398_v43, %v5397_v31  ;;  %7253 = vmatpush3.bf16.msra.mxu1 %v7252_v16  ;;  %v2981_v44 = vadd.f32 %v5364_v21, %v10766_v53  ;;  %v1115_v53 = vld [vmem:[%s11892_s1 + $0x2188] sm:$0xff]  ;;  %v7268_v16 = vpack.c.bf16 %v1069_v3, %v1068_v2  ;;  %v1073_v21 = vld [vmem:[%s11892_s1 + $0x2038] sm:$0xff]  ;;  %v1104_v43 = vld [vmem:[%s11892_s1 + $0x2130] sm:$0xff]  ;;  %v7316_v2 = vpack.c.bf16 %v1109_v59, %v1108_v58 }
 0x1fc   :  { %7255 = vmatprep.subr.bf16.mxu1 %v7254_v27  ;;  %v7294_v41 = vpack.c.bf16 %v1115_v53, %v1114_v52  ;;  %v1088_v27 = vld [vmem:[%s11892_s1 + $0x20b0] sm:$0xff]  ;;  %v7276_v40 = vpack.c.bf16 %v1073_v21, %v1072_v33  ;;  %v7308_v42 = vpack.c.bf16 %v1105_v34, %v1104_v43  ;;  %v1107_v52 = vld [vmem:[%s11892_s1 + $0x2148] sm:$0xff]  ;;  %v7286_v3 = vpack.c.bf16 %v1095_v60, %v1094_v63  ;;  %v1110_v61 = vld [vmem:[%s11892_s1 + $0x2160] sm:$0xff] }
 0x1fd   :  { %v10976_v37 = vadd.f32 %v5399_v24, %v2981_v44  ;;  %7225 = vmatpush3.bf16.msra.mxu0 %v7224_v23  ;;  %v7274_v30 = vpack.c.bf16 %v1089_v22, %v1088_v27  ;;  %v7306_v23 = vpack.c.bf16 %v1121_v28, %v1120_v25  ;;  %v1090_v24 = vld [vmem:[%s11892_s1 + $0x20c0] sm:$0xff]  ;;  %v1092_v53 = vld [vmem:[%s11892_s1 + $0x20d0] sm:$0xff]  ;;  %v7312_v55 = vpack.c.bf16 %v1107_v52, %v1106_v35  ;;  %v1081_v28 = vld [vmem:[%s11892_s1 + $0x2078] sm:$0xff] }
 0x1fe   :  { %7227 = vmatprep.subr.bf16.mxu0 %v7226_v36  ;;  %v1122_v36 = vld [vmem:[%s11892_s1 + $0x21c0] sm:$0xff]  ;;  %v7282_v56 = vpack.c.bf16 %v1093_v48, %v1092_v53  ;;  %v7290_v22 = vpack.c.bf16 %v1097_v14, %v1096_v12  ;;  %v1080_v25 = vld [vmem:[%s11892_s1 + $0x2070] sm:$0xff]  ;;  %v1113_v33 = vld [vmem:[%s11892_s1 + $0x2178] sm:$0xff] }
 0x1ff   :  { %7257 = vmatpush3.bf16.msra.mxu1 %v7256_v39  ;;  %v1091_v39 = vld [vmem:[%s11892_s1 + $0x20c8] sm:$0xff]  ;;  %v7310_v47 = vpack.c.bf16 %v1123_v38, %v1122_v36  ;;  %v1146_v21 = vld [vmem:[%s11892_s1 + $0x2280] sm:$0xff]  ;;  %v1148_v35 = vld [vmem:[%s11892_s1 + $0x2290] sm:$0xff] }
 0x200   :  { %7259 = vmatprep.subr.bf16.mxu1 %v7258_v45  ;;  %v7278_v44 = vpack.c.bf16 %v1091_v39, %v1090_v24  ;;  %v1074_v45 = vld [vmem:[%s11892_s1 + $0x2040] sm:$0xff]  ;;  %v1147_v43 = vld [vmem:[%s11892_s1 + $0x2288] sm:$0xff]  ;;  %v7292_v39 = vpack.c.bf16 %v1081_v28, %v1080_v25  ;;  %v1180_v53 = vld [vmem:[%s11892_s1 + $0x2390] sm:$0xff] }
 0x201   :  { %7229 = vmatpush3.bf16.msra.mxu0 %v7228_v32  ;;  %v1124_v32 = vld [vmem:[%s11892_s1 + $0x21d0] sm:$0xff]  ;;  %v7326_v38 = vpack.c.bf16 %v1147_v43, %v1146_v21  ;;  %v1181_v48 = vld [vmem:[%s11892_s1 + $0x2398] sm:$0xff]  ;;  %v1150_v59 = vld [vmem:[%s11892_s1 + $0x22a0] sm:$0xff] }
 0x202   :  { %7263 = vmatprep.subr.bf16.mxu0 %v7262_v54  ;;  %v7280_v54 = vpack.c.bf16 %v1075_v46, %v1074_v45  ;;  %v1163_v46 = vld [vmem:[%s11892_s1 + $0x2308] sm:$0xff]  ;;  %v7362_v58 = vpack.c.bf16 %v1181_v48, %v1180_v53  ;;  %v1184_v12 = vld [vmem:[%s11892_s1 + $0x23b0] sm:$0xff]  ;;  %v1185_v14 = vld [vmem:[%s11892_s1 + $0x23b8] sm:$0xff] }
 0x203   :  { %7261 = vmatpush3.bf16.msra.mxu1 %v7260_v50  ;;  %v1125_v50 = vld [vmem:[%s11892_s1 + $0x21d8] sm:$0xff]  ;;  %v1151_v63 = vld [vmem:[%s11892_s1 + $0x22a8] sm:$0xff]  ;;  %v1170_v21 = vld [vmem:[%s11892_s1 + $0x2340] sm:$0xff] }
 0x204   :  { %7295 = vmatprep.subr.bf16.mxu1 %v7294_v41  ;;  %3959 = vmatmul.mubr.f32.vlgmr.msra.gmra.mrb[30].mxu0 %v10787_v8  ;;  %v1070_v8 = vld [vmem:[%s11892_s1 + $0x2020] sm:$0xff]  ;;  %v1077_v41 = vld [vmem:[%s11892_s1 + $0x2058] sm:$0xff]  ;;  %v7314_v49 = vpack.c.bf16 %v1125_v50, %v1124_v32  ;;  %v1187_v25 = vld [vmem:[%s11892_s1 + $0x23c8] sm:$0xff] }
 0x205   :  { %7265 = vmatpush3.bf16.msra.mxu0 %v7264_v62  ;;  %4098 = vmatprep.mubr.f32.mxu0 %v1653_v7  ;;  %v7272_v29 = vpack.c.bf16 %v1071_v19, %v1070_v8  ;;  %v1126_v62 = vld [vmem:[%s11892_s1 + $0x21e0] sm:$0xff]  ;;  %v1111_v7 = vld [vmem:[%s11892_s1 + $0x2168] sm:$0xff] }
 0x206   :  { %4029 = vmatmul.mubr.f32.vlgmr.msra.gmra.mrb[30].mxu1 %v10796_v26  ;;  %7267 = vmatprep.subr.bf16.mxu0 %v7266_v1  ;;  %v1103_v26 = vld [vmem:[%s11892_s1 + $0x2128] sm:$0xff]  ;;  %v7284_v1 = vpack.c.bf16 %v1077_v41, %v1076_v57  ;;  %v7320_v27 = vpack.c.bf16 %v1111_v7, %v1110_v61  ;;  %v1133_v57 = vld [vmem:[%s11892_s1 + $0x2218] sm:$0xff]  ;;  %v1164_v41 = vld [vmem:[%s11892_s1 + $0x2310] sm:$0xff] }
 0x207   :  { %7297 = vmatpush3.bf16.msra.mxu1 %v7296_v0  ;;  %4168 = vmatprep.mubr.f32.mxu1 %v1654_v15  ;;  %v7304_v31 = vpack.c.bf16 %v1103_v26, %v1102_v9  ;;  %v1127_v0 = vld [vmem:[%s11892_s1 + $0x21e8] sm:$0xff]  ;;  %v1166_v61 = vld [vmem:[%s11892_s1 + $0x2320] sm:$0xff]  ;;  %v1153_v7 = vld [vmem:[%s11892_s1 + $0x22b8] sm:$0xff] }
 0x208   :  { %7299 = vmatprep.subr.bf16.mxu1 %v7298_v5  ;;  %v1079_v5 = vld [vmem:[%s11892_s1 + $0x2068] sm:$0xff]  ;;  %v7318_v13 = vpack.c.bf16 %v1127_v0, %v1126_v62  ;;  %v1182_v62 = vld [vmem:[%s11892_s1 + $0x23a0] sm:$0xff] }
 0x209   :  { %7269 = vmatpush3.bf16.msra.mxu0 %v7268_v16  ;;  %v7288_v9 = vpack.c.bf16 %v1079_v5, %v1078_v4  ;;  %v1183_v0 = vld [vmem:[%s11892_s1 + $0x23a8] sm:$0xff]  ;;  %v7334_v4 = vpack.c.bf16 %v1151_v63, %v1150_v59  ;;  %v1158_v53 = vld [vmem:[%s11892_s1 + $0x22e0] sm:$0xff] }
 0x20a   :  { %7271 = vmatprep.subr.bf16.mxu0 %v7270_v18  ;;  %v1129_v18 = vld [vmem:[%s11892_s1 + $0x21f8] sm:$0xff]  ;;  %v1135_v5 = vld [vmem:[%s11892_s1 + $0x2228] sm:$0xff] }
 0x20b   :  { %7301 = vmatpush3.bf16.msra.mxu1 %v7300_v17  ;;  %v1128_v17 = vld [vmem:[%s11892_s1 + $0x21f0] sm:$0xff]  ;;  %v1159_v48 = vld [vmem:[%s11892_s1 + $0x22e8] sm:$0xff] }
 0x20c   :  { %7303 = vmatprep.subr.bf16.mxu1 %v7302_v20  ;;  %v38_v20 = vld [vmem:[%s11891_s0 + $0x88] sm:$0xff] }
 0x20d   :  { %7273 = vmatpush3.bf16.msra.mxu0 %v7272_v29  ;;  %v1112_v29 = vld [vmem:[%s11892_s1 + $0x2170] sm:$0xff]  ;;  %v1655_v34 = vcombine.high %v38_v20, %v38_v20  ;;  %v11207_v52 = vrot.slane %v38_v20, %v7776_v10  ;;  %v1169_v20 = vld [vmem:[%s11892_s1 + $0x2338] sm:$0xff] }
 0x20e   :  { %7275 = vmatprep.subr.bf16.mxu0 %v7274_v30  ;;  %v7322_v30 = vpack.c.bf16 %v1129_v18, %v1128_v17  ;;  %v7324_v36 = vpack.c.bf16 %v1113_v33, %v1112_v29  ;;  %v1136_v18 = vld [vmem:[%s11892_s1 + $0x2230] sm:$0xff]  ;;  %v1139_v33 = vld [vmem:[%s11892_s1 + $0x2248] sm:$0xff] }
 0x20f   :  { %7305 = vmatpush3.bf16.msra.mxu1 %v7304_v31  ;;  %v11216_v32 = vrot.slane %v1655_v34, %v7776_v10  ;;  %v1670_v60 = vcombine.high %v11207_v52, %v11207_v52  ;;  %v1157_v34 = vld [vmem:[%s11892_s1 + $0x22d8] sm:$0xff] }
 0x210   :  { %7307 = vmatprep.subr.bf16.mxu1 %v7306_v23  ;;  %v1178_v23 = vld [vmem:[%s11892_s1 + $0x2380] sm:$0xff] }
 0x211   :  { %7277 = vmatpush3.bf16.msra.mxu0 %v7276_v40  ;;  %v1130_v40 = vld [vmem:[%s11892_s1 + $0x2200] sm:$0xff] }
 0x212   :  { %7279 = vmatprep.subr.bf16.mxu0 %v7278_v44  ;;  %v1162_v44 = vld [vmem:[%s11892_s1 + $0x2300] sm:$0xff] }
 0x213   :  { %7309 = vmatpush3.bf16.msra.mxu1 %v7308_v42  ;;  %v1131_v42 = vld [vmem:[%s11892_s1 + $0x2208] sm:$0xff] }
 0x214   :  { %7311 = vmatprep.subr.bf16.mxu1 %v7310_v47  ;;  %v1149_v47 = vld [vmem:[%s11892_s1 + $0x2298] sm:$0xff]  ;;  %v7328_v50 = vpack.c.bf16 %v1131_v42, %v1130_v40 }
 0x215   :  { %7281 = vmatpush3.bf16.msra.mxu0 %v7280_v54  ;;  %v7360_v54 = vpack.c.bf16 %v1163_v46, %v1162_v44  ;;  %v1140_v44 = vld [vmem:[%s11892_s1 + $0x2250] sm:$0xff] }
 0x216   :  { %7283 = vmatprep.subr.bf16.mxu0 %v7282_v56  ;;  %v1132_v56 = vld [vmem:[%s11892_s1 + $0x2210] sm:$0xff] }
 0x217   :  { %7313 = vmatpush3.bf16.msra.mxu1 %v7312_v55  ;;  %v5432_v6 = vpop.f32.mrb[18].mxu0  ;;  %v7330_v55 = vpack.c.bf16 %v1149_v47, %v1148_v35  ;;  %v1172_v46 = vld [vmem:[%s11892_s1 + $0x2350] sm:$0xff]  ;;  %v1173_v47 = vld [vmem:[%s11892_s1 + $0x2358] sm:$0xff] }
 0x218   :  { %7315 = vmatprep.subr.bf16.mxu1 %v7314_v49  ;;  %v5433_v15 = vpop.f32.mrb[19].mxu0  ;;  %v1165_v49 = vld [vmem:[%s11892_s1 + $0x2318] sm:$0xff] }
 0x219   :  { %v5467_v16 = vpop.f32.mrb[18].mxu1  ;;  %v5434_v8 = vadd.f32 %v5433_v15, %v5432_v6  ;;  %7285 = vmatpush3.bf16.msra.mxu0 %v7284_v1  ;;  %v1671_v1 = vcombine.high %v11216_v32, %v11216_v32  ;;  %v7366_v6 = vpack.c.bf16 %v1183_v0, %v1182_v62  ;;  %v1160_v62 = vld [vmem:[%s11892_s1 + $0x22f0] sm:$0xff]  ;;  %v1161_v0 = vld [vmem:[%s11892_s1 + $0x22f8] sm:$0xff] }
 0x21a   :  { %v5468_v19 = vpop.f32.mrb[19].mxu1  ;;  %7287 = vmatprep.subr.bf16.mxu0 %v7286_v3  ;;  %v7364_v3 = vpack.c.bf16 %v1165_v49, %v1164_v41  ;;  %v1142_v41 = vld [vmem:[%s11892_s1 + $0x2260] sm:$0xff] }
 0x21b   :  { %v5469_v26 = vadd.f32 %v5468_v19, %v5467_v16  ;;  %7317 = vmatpush3.bf16.msra.mxu1 %v7316_v2  ;;  %v3121_v31 = vadd.f32 %v5434_v8, %v10976_v37  ;;  %v1179_v37 = vld [vmem:[%s11892_s1 + $0x2388] sm:$0xff]  ;;  %v7332_v2 = vpack.c.bf16 %v1133_v57, %v1132_v56  ;;  %v1137_v8 = vld [vmem:[%s11892_s1 + $0x2238] sm:$0xff]  ;;  %v1168_v19 = vld [vmem:[%s11892_s1 + $0x2330] sm:$0xff]  ;;  %v7380_v56 = vpack.c.bf16 %v1173_v47, %v1172_v46 }
 0x21c   :  { %7319 = vmatprep.subr.bf16.mxu1 %v7318_v13  ;;  %v7358_v45 = vpack.c.bf16 %v1179_v37, %v1178_v23  ;;  %v1152_v13 = vld [vmem:[%s11892_s1 + $0x22b0] sm:$0xff]  ;;  %v7340_v28 = vpack.c.bf16 %v1137_v8, %v1136_v18  ;;  %v7372_v29 = vpack.c.bf16 %v1169_v20, %v1168_v19  ;;  %v1171_v23 = vld [vmem:[%s11892_s1 + $0x2348] sm:$0xff]  ;;  %v7350_v57 = vpack.c.bf16 %v1159_v48, %v1158_v53  ;;  %v1174_v49 = vld [vmem:[%s11892_s1 + $0x2360] sm:$0xff] }
 0x21d   :  { %v11186_v24 = vadd.f32 %v5469_v26, %v3121_v31  ;;  %7289 = vmatpush3.bf16.msra.mxu0 %v7288_v9  ;;  %v7338_v17 = vpack.c.bf16 %v1153_v7, %v1152_v13  ;;  %v7370_v9 = vpack.c.bf16 %v1185_v14, %v1184_v12  ;;  %v1154_v26 = vld [vmem:[%s11892_s1 + $0x22c0] sm:$0xff]  ;;  %v1156_v37 = vld [vmem:[%s11892_s1 + $0x22d0] sm:$0xff]  ;;  %v7376_v40 = vpack.c.bf16 %v1171_v23, %v1170_v21  ;;  %v1145_v14 = vld [vmem:[%s11892_s1 + $0x2278] sm:$0xff] }
 0x21e   :  { %7291 = vmatprep.subr.bf16.mxu0 %v7290_v22  ;;  %v1186_v22 = vld [vmem:[%s11892_s1 + $0x23c0] sm:$0xff]  ;;  %v7346_v42 = vpack.c.bf16 %v1157_v34, %v1156_v37  ;;  %v7354_v7 = vpack.c.bf16 %v1161_v0, %v1160_v62  ;;  %v1144_v12 = vld [vmem:[%s11892_s1 + $0x2270] sm:$0xff]  ;;  %v1177_v18 = vld [vmem:[%s11892_s1 + $0x2378] sm:$0xff] }
 0x21f   :  { %7321 = vmatpush3.bf16.msra.mxu1 %v7320_v27  ;;  %v1155_v27 = vld [vmem:[%s11892_s1 + $0x22c8] sm:$0xff]  ;;  %v7374_v43 = vpack.c.bf16 %v1187_v25, %v1186_v22  ;;  %v1210_v8 = vld [vmem:[%s11892_s1 + $0x2480] sm:$0xff]  ;;  %v1212_v21 = vld [vmem:[%s11892_s1 + $0x2490] sm:$0xff] }
 0x220   :  { %7323 = vmatprep.subr.bf16.mxu1 %v7322_v30  ;;  %v7342_v31 = vpack.c.bf16 %v1155_v27, %v1154_v26  ;;  %v1138_v30 = vld [vmem:[%s11892_s1 + $0x2240] sm:$0xff]  ;;  %v1211_v19 = vld [vmem:[%s11892_s1 + $0x2488] sm:$0xff]  ;;  %v7356_v27 = vpack.c.bf16 %v1145_v14, %v1144_v12  ;;  %v1244_v37 = vld [vmem:[%s11892_s1 + $0x2590] sm:$0xff] }
 0x221   :  { %7293 = vmatpush3.bf16.msra.mxu0 %v7292_v39  ;;  %v1188_v39 = vld [vmem:[%s11892_s1 + $0x23d0] sm:$0xff]  ;;  %v7390_v25 = vpack.c.bf16 %v1211_v19, %v1210_v8  ;;  %v1245_v34 = vld [vmem:[%s11892_s1 + $0x2598] sm:$0xff]  ;;  %v1214_v47 = vld [vmem:[%s11892_s1 + $0x24a0] sm:$0xff] }
 0x222   :  { %7327 = vmatprep.subr.bf16.mxu0 %v7326_v38  ;;  %v7344_v38 = vpack.c.bf16 %v1139_v33, %v1138_v30  ;;  %v1227_v33 = vld [vmem:[%s11892_s1 + $0x2508] sm:$0xff]  ;;  %v7426_v46 = vpack.c.bf16 %v1245_v34, %v1244_v37  ;;  %v1248_v62 = vld [vmem:[%s11892_s1 + $0x25b0] sm:$0xff]  ;;  %v1249_v0 = vld [vmem:[%s11892_s1 + $0x25b8] sm:$0xff] }
 0x223   :  { %7325 = vmatpush3.bf16.msra.mxu1 %v7324_v36  ;;  %v1189_v36 = vld [vmem:[%s11892_s1 + $0x23d8] sm:$0xff]  ;;  %v1215_v53 = vld [vmem:[%s11892_s1 + $0x24a8] sm:$0xff]  ;;  %v1234_v8 = vld [vmem:[%s11892_s1 + $0x2540] sm:$0xff] }
 0x224   :  { %7359 = vmatprep.subr.bf16.mxu1 %v7358_v45  ;;  %4099 = vmatmul.mubr.f32.vlgmr.msra.gmra.mrb[32].mxu0 %v10997_v51  ;;  %v1134_v51 = vld [vmem:[%s11892_s1 + $0x2220] sm:$0xff]  ;;  %v1141_v45 = vld [vmem:[%s11892_s1 + $0x2258] sm:$0xff]  ;;  %v7378_v35 = vpack.c.bf16 %v1189_v36, %v1188_v39  ;;  %v1251_v12 = vld [vmem:[%s11892_s1 + $0x25c8] sm:$0xff] }
 0x225   :  { %7329 = vmatpush3.bf16.msra.mxu0 %v7328_v50  ;;  %4238 = vmatprep.mubr.f32.mxu0 %v1670_v60  ;;  %v7336_v15 = vpack.c.bf16 %v1135_v5, %v1134_v51  ;;  %v1190_v50 = vld [vmem:[%s11892_s1 + $0x23e0] sm:$0xff]  ;;  %v1175_v60 = vld [vmem:[%s11892_s1 + $0x2368] sm:$0xff] }
 0x226   :  { %4169 = vmatmul.mubr.f32.vlgmr.msra.gmra.mrb[32].mxu1 %v11006_v11  ;;  %7331 = vmatprep.subr.bf16.mxu0 %v7330_v55  ;;  %v1167_v11 = vld [vmem:[%s11892_s1 + $0x2328] sm:$0xff]  ;;  %v7348_v55 = vpack.c.bf16 %v1141_v45, %v1140_v44  ;;  %v7384_v13 = vpack.c.bf16 %v1175_v60, %v1174_v49  ;;  %v1197_v44 = vld [vmem:[%s11892_s1 + $0x2418] sm:$0xff]  ;;  %v1228_v45 = vld [vmem:[%s11892_s1 + $0x2510] sm:$0xff] }
 0x227   :  { %7361 = vmatpush3.bf16.msra.mxu1 %v7360_v54  ;;  %4308 = vmatprep.mubr.f32.mxu1 %v1671_v1  ;;  %v7368_v16 = vpack.c.bf16 %v1167_v11, %v1166_v61  ;;  %v1191_v54 = vld [vmem:[%s11892_s1 + $0x23e8] sm:$0xff]  ;;  %v1230_v49 = vld [vmem:[%s11892_s1 + $0x2520] sm:$0xff]  ;;  %v1217_v60 = vld [vmem:[%s11892_s1 + $0x24b8] sm:$0xff] }
 0x228   :  { %7363 = vmatprep.subr.bf16.mxu1 %v7362_v58  ;;  %v1143_v58 = vld [vmem:[%s11892_s1 + $0x2268] sm:$0xff]  ;;  %v7382_v63 = vpack.c.bf16 %v1191_v54, %v1190_v50  ;;  %v1246_v50 = vld [vmem:[%s11892_s1 + $0x25a0] sm:$0xff] }
 0x229   :  { %7333 = vmatpush3.bf16.msra.mxu0 %v7332_v2  ;;  %v7352_v61 = vpack.c.bf16 %v1143_v58, %v1142_v41  ;;  %v1247_v54 = vld [vmem:[%s11892_s1 + $0x25a8] sm:$0xff]  ;;  %v7398_v41 = vpack.c.bf16 %v1215_v53, %v1214_v47  ;;  %v1222_v37 = vld [vmem:[%s11892_s1 + $0x24e0] sm:$0xff] }
 0x22a   :  { %7335 = vmatprep.subr.bf16.mxu0 %v7334_v4  ;;  %v1193_v4 = vld [vmem:[%s11892_s1 + $0x23f8] sm:$0xff]  ;;  %v1199_v58 = vld [vmem:[%s11892_s1 + $0x2428] sm:$0xff] }
 0x22b   :  { %7365 = vmatpush3.bf16.msra.mxu1 %v7364_v3  ;;  %v1192_v3 = vld [vmem:[%s11892_s1 + $0x23f0] sm:$0xff]  ;;  %v1223_v34 = vld [vmem:[%s11892_s1 + $0x24e8] sm:$0xff] }
 0x22c   :  { %7367 = vmatprep.subr.bf16.mxu1 %v7366_v6  ;;  %v39_v6 = vld [vmem:[%s11891_s0 + $0x90] sm:$0xff] }
 0x22d   :  { %7337 = vmatpush3.bf16.msra.mxu0 %v7336_v15  ;;  %v1176_v15 = vld [vmem:[%s11892_s1 + $0x2370] sm:$0xff]  ;;  %v1672_v20 = vcombine.high %v39_v6, %v39_v6  ;;  %v11417_v23 = vrot.slane %v39_v6, %v7776_v10  ;;  %v1233_v6 = vld [vmem:[%s11892_s1 + $0x2538] sm:$0xff] }
 0x22e   :  { %7339 = vmatprep.subr.bf16.mxu0 %v7338_v17  ;;  %v7386_v17 = vpack.c.bf16 %v1193_v4, %v1192_v3  ;;  %v7388_v22 = vpack.c.bf16 %v1177_v18, %v1176_v15  ;;  %v1200_v4 = vld [vmem:[%s11892_s1 + $0x2430] sm:$0xff]  ;;  %v1203_v18 = vld [vmem:[%s11892_s1 + $0x2448] sm:$0xff] }
 0x22f   :  { %7369 = vmatpush3.bf16.msra.mxu1 %v7368_v16  ;;  %v11426_v39 = vrot.slane %v1672_v20, %v7776_v10  ;;  %v1687_v48 = vcombine.high %v11417_v23, %v11417_v23  ;;  %v1221_v20 = vld [vmem:[%s11892_s1 + $0x24d8] sm:$0xff] }
 0x230   :  { %7371 = vmatprep.subr.bf16.mxu1 %v7370_v9  ;;  %v1242_v9 = vld [vmem:[%s11892_s1 + $0x2580] sm:$0xff] }
 0x231   :  { %7341 = vmatpush3.bf16.msra.mxu0 %v7340_v28  ;;  %v1194_v28 = vld [vmem:[%s11892_s1 + $0x2400] sm:$0xff] }
 0x232   :  { %7343 = vmatprep.subr.bf16.mxu0 %v7342_v31  ;;  %v1226_v31 = vld [vmem:[%s11892_s1 + $0x2500] sm:$0xff] }
 0x233   :  { %7373 = vmatpush3.bf16.msra.mxu1 %v7372_v29  ;;  %v1195_v29 = vld [vmem:[%s11892_s1 + $0x2408] sm:$0xff] }
 0x234   :  { %7375 = vmatprep.subr.bf16.mxu1 %v7374_v43  ;;  %v1213_v43 = vld [vmem:[%s11892_s1 + $0x2498] sm:$0xff]  ;;  %v7392_v36 = vpack.c.bf16 %v1195_v29, %v1194_v28 }
 0x235   :  { %7345 = vmatpush3.bf16.msra.mxu0 %v7344_v38  ;;  %v7424_v38 = vpack.c.bf16 %v1227_v33, %v1226_v31  ;;  %v1204_v31 = vld [vmem:[%s11892_s1 + $0x2450] sm:$0xff] }
 0x236   :  { %7347 = vmatprep.subr.bf16.mxu0 %v7346_v42  ;;  %v1196_v42 = vld [vmem:[%s11892_s1 + $0x2410] sm:$0xff] }
 0x237   :  { %7377 = vmatpush3.bf16.msra.mxu1 %v7376_v40  ;;  %v5502_v59 = vpop.f32.mrb[20].mxu0  ;;  %v7394_v40 = vpack.c.bf16 %v1213_v43, %v1212_v21  ;;  %v1236_v33 = vld [vmem:[%s11892_s1 + $0x2550] sm:$0xff]  ;;  %v1237_v43 = vld [vmem:[%s11892_s1 + $0x2558] sm:$0xff] }
 0x238   :  { %7379 = vmatprep.subr.bf16.mxu1 %v7378_v35  ;;  %v5503_v1 = vpop.f32.mrb[21].mxu0  ;;  %v1229_v35 = vld [vmem:[%s11892_s1 + $0x2518] sm:$0xff] }
 0x239   :  { %v5537_v2 = vpop.f32.mrb[20].mxu1  ;;  %v5504_v51 = vadd.f32 %v5503_v1, %v5502_v59  ;;  %7349 = vmatpush3.bf16.msra.mxu0 %v7348_v55  ;;  %v1688_v55 = vcombine.high %v11426_v39, %v11426_v39  ;;  %v7430_v59 = vpack.c.bf16 %v1247_v54, %v1246_v50  ;;  %v1224_v50 = vld [vmem:[%s11892_s1 + $0x24f0] sm:$0xff]  ;;  %v1225_v54 = vld [vmem:[%s11892_s1 + $0x24f8] sm:$0xff] }
 0x23a   :  { %v5538_v5 = vpop.f32.mrb[21].mxu1  ;;  %7351 = vmatprep.subr.bf16.mxu0 %v7350_v57  ;;  %v7428_v57 = vpack.c.bf16 %v1229_v35, %v1228_v45  ;;  %v1206_v45 = vld [vmem:[%s11892_s1 + $0x2460] sm:$0xff] }
 0x23b   :  { %v5539_v11 = vadd.f32 %v5538_v5, %v5537_v2  ;;  %7381 = vmatpush3.bf16.msra.mxu1 %v7380_v56  ;;  %v3261_v16 = vadd.f32 %v5504_v51, %v11186_v24  ;;  %v1243_v24 = vld [vmem:[%s11892_s1 + $0x2588] sm:$0xff]  ;;  %v7396_v56 = vpack.c.bf16 %v1197_v44, %v1196_v42  ;;  %v1201_v51 = vld [vmem:[%s11892_s1 + $0x2438] sm:$0xff]  ;;  %v1232_v5 = vld [vmem:[%s11892_s1 + $0x2530] sm:$0xff]  ;;  %v7444_v42 = vpack.c.bf16 %v1237_v43, %v1236_v33 }
 0x23c   :  { %7383 = vmatprep.subr.bf16.mxu1 %v7382_v63  ;;  %v7422_v30 = vpack.c.bf16 %v1243_v24, %v1242_v9  ;;  %v1216_v63 = vld [vmem:[%s11892_s1 + $0x24b0] sm:$0xff]  ;;  %v7404_v14 = vpack.c.bf16 %v1201_v51, %v1200_v4  ;;  %v7436_v15 = vpack.c.bf16 %v1233_v6, %v1232_v5  ;;  %v1235_v9 = vld [vmem:[%s11892_s1 + $0x2548] sm:$0xff]  ;;  %v7414_v44 = vpack.c.bf16 %v1223_v34, %v1222_v37  ;;  %v1238_v35 = vld [vmem:[%s11892_s1 + $0x2560] sm:$0xff] }
 0x23d   :  { %v11396_v26 = vadd.f32 %v5539_v11, %v3261_v16  ;;  %7353 = vmatpush3.bf16.msra.mxu0 %v7352_v61  ;;  %v7402_v3 = vpack.c.bf16 %v1217_v60, %v1216_v63  ;;  %v7434_v61 = vpack.c.bf16 %v1249_v0, %v1248_v62  ;;  %v1218_v11 = vld [vmem:[%s11892_s1 + $0x24c0] sm:$0xff]  ;;  %v1220_v24 = vld [vmem:[%s11892_s1 + $0x24d0] sm:$0xff]  ;;  %v7440_v28 = vpack.c.bf16 %v1235_v9, %v1234_v8  ;;  %v1209_v0 = vld [vmem:[%s11892_s1 + $0x2478] sm:$0xff] }
 0x23e   :  { %7355 = vmatprep.subr.bf16.mxu0 %v7354_v7  ;;  %v1250_v7 = vld [vmem:[%s11892_s1 + $0x25c0] sm:$0xff]  ;;  %v7410_v29 = vpack.c.bf16 %v1221_v20, %v1220_v24  ;;  %v7418_v60 = vpack.c.bf16 %v1225_v54, %v1224_v50  ;;  %v1208_v62 = vld [vmem:[%s11892_s1 + $0x2470] sm:$0xff]  ;;  %v1241_v4 = vld [vmem:[%s11892_s1 + $0x2578] sm:$0xff] }
 0x23f   :  { %7385 = vmatpush3.bf16.msra.mxu1 %v7384_v13  ;;  %v1219_v13 = vld [vmem:[%s11892_s1 + $0x24c8] sm:$0xff]  ;;  %v7438_v19 = vpack.c.bf16 %v1251_v12, %v1250_v7  ;;  %v1274_v51 = vld [vmem:[%s11892_s1 + $0x2680] sm:$0xff]  ;;  %v1276_v8 = vld [vmem:[%s11892_s1 + $0x2690] sm:$0xff] }
 0x240   :  { %7387 = vmatprep.subr.bf16.mxu1 %v7386_v17  ;;  %v7406_v16 = vpack.c.bf16 %v1219_v13, %v1218_v11  ;;  %v1202_v17 = vld [vmem:[%s11892_s1 + $0x2440] sm:$0xff]  ;;  %v1275_v5 = vld [vmem:[%s11892_s1 + $0x2688] sm:$0xff]  ;;  %v7420_v13 = vpack.c.bf16 %v1209_v0, %v1208_v62  ;;  %v1308_v24 = vld [vmem:[%s11892_s1 + $0x2790] sm:$0xff] }
 0x241   :  { %7357 = vmatpush3.bf16.msra.mxu0 %v7356_v27  ;;  %v1252_v27 = vld [vmem:[%s11892_s1 + $0x25d0] sm:$0xff]  ;;  %v7454_v12 = vpack.c.bf16 %v1275_v5, %v1274_v51  ;;  %v1309_v20 = vld [vmem:[%s11892_s1 + $0x2798] sm:$0xff]  ;;  %v1279_v43 = vld [vmem:[%s11892_s1 + $0x26a8] sm:$0xff] }
 0x242   :  { %7391 = vmatprep.subr.bf16.mxu0 %v7390_v25  ;;  %v7408_v25 = vpack.c.bf16 %v1203_v18, %v1202_v17  ;;  %v1291_v18 = vld [vmem:[%s11892_s1 + $0x2708] sm:$0xff]  ;;  %v1293_v33 = vld [vmem:[%s11892_s1 + $0x2718] sm:$0xff]  ;;  %v1310_v34 = vld [vmem:[%s11892_s1 + $0x27a0] sm:$0xff] }
 0x243   :  { %7389 = vmatpush3.bf16.msra.mxu1 %v7388_v22  ;;  %v1253_v22 = vld [vmem:[%s11892_s1 + $0x25d8] sm:$0xff]  ;;  %v1299_v5 = vld [vmem:[%s11892_s1 + $0x2748] sm:$0xff] }
 0x244   :  { %7423 = vmatprep.subr.bf16.mxu1 %v7422_v30  ;;  %4239 = vmatmul.mubr.f32.vlgmr.msra.gmra.mrb[34].mxu0 %v11207_v52  ;;  %v1198_v52 = vld [vmem:[%s11892_s1 + $0x2420] sm:$0xff]  ;;  %v1205_v30 = vld [vmem:[%s11892_s1 + $0x2458] sm:$0xff]  ;;  %v7442_v21 = vpack.c.bf16 %v1253_v22, %v1252_v27 }
 0x245   :  { %7393 = vmatpush3.bf16.msra.mxu0 %v7392_v36  ;;  %4378 = vmatprep.mubr.f32.mxu0 %v1687_v48  ;;  %v7400_v1 = vpack.c.bf16 %v1199_v58, %v1198_v52  ;;  %v1254_v36 = vld [vmem:[%s11892_s1 + $0x25e0] sm:$0xff]  ;;  %v1239_v48 = vld [vmem:[%s11892_s1 + $0x2568] sm:$0xff]  ;;  %v1313_v50 = vld [vmem:[%s11892_s1 + $0x27b8] sm:$0xff] }
 0x246   :  { %4309 = vmatmul.mubr.f32.vlgmr.msra.gmra.mrb[34].mxu1 %v11216_v32  ;;  %7395 = vmatprep.subr.bf16.mxu0 %v7394_v40  ;;  %v1231_v32 = vld [vmem:[%s11892_s1 + $0x2528] sm:$0xff]  ;;  %v7412_v40 = vpack.c.bf16 %v1205_v30, %v1204_v31  ;;  %v7448_v63 = vpack.c.bf16 %v1239_v48, %v1238_v35  ;;  %v1261_v31 = vld [vmem:[%s11892_s1 + $0x2618] sm:$0xff]  ;;  %v1292_v30 = vld [vmem:[%s11892_s1 + $0x2710] sm:$0xff] }
 0x247   :  { %7425 = vmatpush3.bf16.msra.mxu1 %v7424_v38  ;;  %4448 = vmatprep.mubr.f32.mxu1 %v1688_v55  ;;  %v7432_v2 = vpack.c.bf16 %v1231_v32, %v1230_v49  ;;  %v1255_v38 = vld [vmem:[%s11892_s1 + $0x25e8] sm:$0xff]  ;;  %v1312_v48 = vld [vmem:[%s11892_s1 + $0x27b0] sm:$0xff] }
 0x248   :  { %7427 = vmatprep.subr.bf16.mxu1 %v7426_v46  ;;  %v1207_v46 = vld [vmem:[%s11892_s1 + $0x2468] sm:$0xff]  ;;  %v7446_v53 = vpack.c.bf16 %v1255_v38, %v1254_v36 }
 0x249   :  { %7397 = vmatpush3.bf16.msra.mxu0 %v7396_v56  ;;  %v7416_v49 = vpack.c.bf16 %v1207_v46, %v1206_v45  ;;  %v1311_v36 = vld [vmem:[%s11892_s1 + $0x27a8] sm:$0xff]  ;;  %v1294_v46 = vld [vmem:[%s11892_s1 + $0x2720] sm:$0xff] }
 0x24a   :  { %7399 = vmatprep.subr.bf16.mxu0 %v7398_v41  ;;  %v1257_v41 = vld [vmem:[%s11892_s1 + $0x25f8] sm:$0xff]  ;;  %v1263_v45 = vld [vmem:[%s11892_s1 + $0x2628] sm:$0xff]  ;;  %v7494_v35 = vpack.c.bf16 %v1311_v36, %v1310_v34 }
 0x24b   :  { %7429 = vmatpush3.bf16.msra.mxu1 %v7428_v57  ;;  %v1256_v57 = vld [vmem:[%s11892_s1 + $0x25f0] sm:$0xff]  ;;  %v1289_v34 = vld [vmem:[%s11892_s1 + $0x26f8] sm:$0xff] }
 0x24c   :  { %7431 = vmatprep.subr.bf16.mxu1 %v7430_v59  ;;  %v40_v59 = vld [vmem:[%s11891_s0 + $0x98] sm:$0xff] }
 0x24d   :  { %7401 = vmatpush3.bf16.msra.mxu0 %v7400_v1  ;;  %v1240_v1 = vld [vmem:[%s11892_s1 + $0x2570] sm:$0xff]  ;;  %v1689_v6 = vcombine.high %v40_v59, %v40_v59  ;;  %v11627_v9 = vrot.slane %v40_v59, %v7776_v10  ;;  %v1282_v59 = vld [vmem:[%s11892_s1 + $0x26c0] sm:$0xff] }
 0x24e   :  { %7403 = vmatprep.subr.bf16.mxu0 %v7402_v3  ;;  %v7450_v3 = vpack.c.bf16 %v1257_v41, %v1256_v57  ;;  %v7452_v7 = vpack.c.bf16 %v1241_v4, %v1240_v1  ;;  %v1264_v57 = vld [vmem:[%s11892_s1 + $0x2630] sm:$0xff]  ;;  %v1265_v41 = vld [vmem:[%s11892_s1 + $0x2638] sm:$0xff]  ;;  %v1298_v4 = vld [vmem:[%s11892_s1 + $0x2740] sm:$0xff] }
 0x24f   :  { %7433 = vmatpush3.bf16.msra.mxu1 %v7432_v2  ;;  %v11636_v27 = vrot.slane %v1689_v6, %v7776_v10  ;;  %v7490_v10 = vpack.c.bf16 %v1309_v20, %v1308_v24  ;;  %v1704_v37 = vcombine.high %v11627_v9, %v11627_v9  ;;  %v7468_v62 = vpack.c.bf16 %v1265_v41, %v1264_v57  ;;  %v1316_v6 = vld [vmem:[%s11892_s1 + $0x27d0] sm:$0xff]  ;;  %v1287_v24 = vld [vmem:[%s11892_s1 + $0x26e8] sm:$0xff]  ;;  %v1318_v20 = vld [vmem:[%s11892_s1 + $0x27e0] sm:$0xff] }
 0x250   :  { %7435 = vmatprep.subr.bf16.mxu1 %v7434_v61  ;;  %v1306_v61 = vld [vmem:[%s11892_s1 + $0x2780] sm:$0xff] }
 0x251   :  { %7405 = vmatpush3.bf16.msra.mxu0 %v7404_v14  ;;  %v1258_v14 = vld [vmem:[%s11892_s1 + $0x2600] sm:$0xff]  ;;  %v1705_v38 = vcombine.high %v11636_v27, %v11636_v27 }
 0x252   :  { %7407 = vmatprep.subr.bf16.mxu0 %v7406_v16  ;;  %v1290_v16 = vld [vmem:[%s11892_s1 + $0x2700] sm:$0xff] }
 0x253   :  { %7437 = vmatpush3.bf16.msra.mxu1 %v7436_v15  ;;  %v1259_v15 = vld [vmem:[%s11892_s1 + $0x2608] sm:$0xff] }
 0x254   :  { %7439 = vmatprep.subr.bf16.mxu1 %v7438_v19  ;;  %v1277_v19 = vld [vmem:[%s11892_s1 + $0x2698] sm:$0xff]  ;;  %v7456_v22 = vpack.c.bf16 %v1259_v15, %v1258_v14  ;;  %v1268_v15 = vld [vmem:[%s11892_s1 + $0x2650] sm:$0xff] }
 0x255   :  { %7409 = vmatpush3.bf16.msra.mxu0 %v7408_v25  ;;  %v7488_v25 = vpack.c.bf16 %v1291_v18, %v1290_v16  ;;  %v1269_v16 = vld [vmem:[%s11892_s1 + $0x2658] sm:$0xff] }
 0x256   :  { %7411 = vmatprep.subr.bf16.mxu0 %v7410_v29  ;;  %v1260_v29 = vld [vmem:[%s11892_s1 + $0x2610] sm:$0xff] }
 0x257   :  { %7441 = vmatpush3.bf16.msra.mxu1 %v7440_v28  ;;  %v5572_v47 = vpop.f32.mrb[22].mxu0  ;;  %v7458_v28 = vpack.c.bf16 %v1277_v19, %v1276_v8  ;;  %v1301_v8 = vld [vmem:[%s11892_s1 + $0x2758] sm:$0xff]  ;;  %v1286_v19 = vld [vmem:[%s11892_s1 + $0x26e0] sm:$0xff] }
 0x258   :  { %7443 = vmatprep.subr.bf16.mxu1 %v7442_v21  ;;  %v5573_v55 = vpop.f32.mrb[23].mxu0  ;;  %v1278_v21 = vld [vmem:[%s11892_s1 + $0x26a0] sm:$0xff] }
 0x259   :  { %v5607_v56 = vpop.f32.mrb[22].mxu1  ;;  %v5574_v52 = vadd.f32 %v5573_v55, %v5572_v47  ;;  %7413 = vmatpush3.bf16.msra.mxu0 %v7412_v40  ;;  %v7460_v40 = vpack.c.bf16 %v1261_v31, %v1260_v29  ;;  %v1280_v47 = vld [vmem:[%s11892_s1 + $0x26b0] sm:$0xff]  ;;  %v7478_v29 = vpack.c.bf16 %v1287_v24, %v1286_v19  ;;  %v1270_v31 = vld [vmem:[%s11892_s1 + $0x2660] sm:$0xff]  ;;  %v1337_v19 = vld [vmem:[%s11892_s1 + $0x2878] sm:$0xff] }
 0x25a   :  { %v5608_v58 = vpop.f32.mrb[23].mxu1  ;;  %7415 = vmatprep.subr.bf16.mxu0 %v7414_v44  ;;  %v7462_v44 = vpack.c.bf16 %v1279_v43, %v1278_v21  ;;  %v1303_v43 = vld [vmem:[%s11892_s1 + $0x2768] sm:$0xff] }
 0x25b   :  { %v5609_v32 = vadd.f32 %v5608_v58, %v5607_v56  ;;  %7445 = vmatpush3.bf16.msra.mxu1 %v7444_v42  ;;  %v3401_v2 = vadd.f32 %v5574_v52, %v11396_v26  ;;  %v1307_v26 = vld [vmem:[%s11892_s1 + $0x2788] sm:$0xff]  ;;  %v7492_v42 = vpack.c.bf16 %v1293_v33, %v1292_v30  ;;  %v1296_v52 = vld [vmem:[%s11892_s1 + $0x2730] sm:$0xff]  ;;  %v7498_v58 = vpack.c.bf16 %v1313_v50, %v1312_v48 }
 0x25c   :  { %7447 = vmatprep.subr.bf16.mxu1 %v7446_v53  ;;  %v7486_v17 = vpack.c.bf16 %v1307_v26, %v1306_v61  ;;  %v1281_v53 = vld [vmem:[%s11892_s1 + $0x26b8] sm:$0xff]  ;;  %v1284_v61 = vld [vmem:[%s11892_s1 + $0x26d0] sm:$0xff]  ;;  %v1271_v30 = vld [vmem:[%s11892_s1 + $0x2668] sm:$0xff] }
 0x25d   :  { %v11606_v11 = vadd.f32 %v5609_v32, %v3401_v2  ;;  %7417 = vmatpush3.bf16.msra.mxu0 %v7416_v49  ;;  %v7466_v56 = vpack.c.bf16 %v1281_v53, %v1280_v47  ;;  %v1297_v49 = vld [vmem:[%s11892_s1 + $0x2738] sm:$0xff]  ;;  %v1283_v32 = vld [vmem:[%s11892_s1 + $0x26c8] sm:$0xff]  ;;  %v1266_v2 = vld [vmem:[%s11892_s1 + $0x2640] sm:$0xff] }
 0x25e   :  { %7419 = vmatprep.subr.bf16.mxu0 %v7418_v60  ;;  %v1315_v60 = vld [vmem:[%s11892_s1 + $0x27c8] sm:$0xff]  ;;  %v7500_v0 = vpack.c.bf16 %v1297_v49, %v1296_v52  ;;  %v7470_v1 = vpack.c.bf16 %v1283_v32, %v1282_v59  ;;  %v1285_v26 = vld [vmem:[%s11892_s1 + $0x26d8] sm:$0xff]  ;;  %v1272_v47 = vld [vmem:[%s11892_s1 + $0x2670] sm:$0xff]  ;;  %v7598_v49 = vmov 0.0|0.0  }
 0x25f   :  { %7449 = vmatpush3.bf16.msra.mxu1 %v7448_v63  ;;  %v1314_v63 = vld [vmem:[%s11892_s1 + $0x27c0] sm:$0xff]  ;;  %v7474_v14 = vpack.c.bf16 %v1285_v26, %v1284_v61  ;;  %v1273_v53 = vld [vmem:[%s11892_s1 + $0x2678] sm:$0xff]  ;;  %v1323_v52 = vld [vmem:[%s11892_s1 + $0x2808] sm:$0xff] }
 0x260   :  { %7451 = vmatprep.subr.bf16.mxu1 %v7450_v3  ;;  %v1267_v3 = vld [vmem:[%s11892_s1 + $0x2648] sm:$0xff]  ;;  %v7502_v51 = vpack.c.bf16 %v1315_v60, %v1314_v63  ;;  %v7484_v57 = vpack.c.bf16 %v1273_v53, %v1272_v47  ;;  %v1324_v59 = vld [vmem:[%s11892_s1 + $0x2810] sm:$0xff]  ;;  %v1325_v32 = vld [vmem:[%s11892_s1 + $0x2818] sm:$0xff] }
 0x261   :  { %7421 = vmatpush3.bf16.msra.mxu0 %v7420_v13  ;;  %v1317_v13 = vld [vmem:[%s11892_s1 + $0x27d8] sm:$0xff]  ;;  %v7522_v63 = vpack.c.bf16 %v1325_v32, %v1324_v59  ;;  %v1326_v60 = vld [vmem:[%s11892_s1 + $0x2820] sm:$0xff] }
 0x262   :  { %7455 = vmatprep.subr.bf16.mxu0 %v7454_v12  ;;  %v7504_v12 = vpack.c.bf16 %v1299_v5, %v1298_v4  ;;  %v7506_v18 = vpack.c.bf16 %v1317_v13, %v1316_v6  ;;  %v1331_v4 = vld [vmem:[%s11892_s1 + $0x2848] sm:$0xff]  ;;  %v1332_v5 = vld [vmem:[%s11892_s1 + $0x2850] sm:$0xff]  ;;  %v1333_v61 = vld [vmem:[%s11892_s1 + $0x2858] sm:$0xff] }
 0x263   :  { %7453 = vmatpush3.bf16.msra.mxu1 %v7452_v7  ;;  %v7472_v7 = vpack.c.bf16 %v1267_v3, %v1266_v2  ;;  %v1330_v3 = vld [vmem:[%s11892_s1 + $0x2840] sm:$0xff]  ;;  %v7534_v26 = vpack.c.bf16 %v1333_v61, %v1332_v5  ;;  %v1335_v13 = vld [vmem:[%s11892_s1 + $0x2868] sm:$0xff]  ;;  %v4668_v47 = vld [vmem:[%s11894_s3 + $0x18] sm:$0xff] }
 0x264   :  { %7487 = vmatprep.subr.bf16.mxu1 %v7486_v17  ;;  %4379 = vmatmul.mubr.f32.vlgmr.msra.gmra.mrb[36].mxu0 %v11417_v23  ;;  %v1262_v23 = vld [vmem:[%s11892_s1 + $0x2620] sm:$0xff]  ;;  %v1300_v17 = vld [vmem:[%s11892_s1 + $0x2750] sm:$0xff] }
 0x265   :  { %7457 = vmatpush3.bf16.msra.mxu0 %v7456_v22  ;;  %4518 = vmatprep.mubr.f32.mxu0 %v1704_v37  ;;  %v7464_v54 = vpack.c.bf16 %v1263_v45, %v1262_v23  ;;  %v1319_v22 = vld [vmem:[%s11892_s1 + $0x27e8] sm:$0xff]  ;;  %v1288_v37 = vld [vmem:[%s11892_s1 + $0x26f0] sm:$0xff]  ;;  %v7480_v45 = vpack.c.bf16 %v1271_v30, %v1270_v31  ;;  %v1334_v6 = vld [vmem:[%s11892_s1 + $0x2860] sm:$0xff] }
 0x266   :  { %4449 = vmatmul.mubr.f32.vlgmr.msra.gmra.mrb[36].mxu1 %v11426_v39  ;;  %7459 = vmatprep.subr.bf16.mxu0 %v7458_v28  ;;  %v1295_v39 = vld [vmem:[%s11892_s1 + $0x2728] sm:$0xff]  ;;  %v7508_v28 = vpack.c.bf16 %v1301_v8, %v1300_v17  ;;  %v7510_v21 = vpack.c.bf16 %v1319_v22, %v1318_v20  ;;  %v7537_v17 = vpack.c.bf16 %v1335_v13, %v1334_v6  ;;  %v1336_v8 = vld [vmem:[%s11892_s1 + $0x2870] sm:$0xff] }
 0x267   :  { %7489 = vmatpush3.bf16.msra.mxu1 %v7488_v25  ;;  %4588 = vmatprep.mubr.f32.mxu1 %v1705_v38  ;;  %v7496_v55 = vpack.c.bf16 %v1295_v39, %v1294_v46  ;;  %v7476_v25 = vpack.c.bf16 %v1269_v16, %v1268_v15  ;;  %v7482_v39 = vpack.c.bf16 %v1289_v34, %v1288_v37 }
 0x268   :  { %7491 = vmatprep.subr.bf16.mxu1 %v7490_v10  ;;  %v1302_v10 = vld [vmem:[%s11892_s1 + $0x2760] sm:$0xff]  ;;  %v7540_v22 = vpack.c.bf16 %v1337_v19, %v1336_v8 }
 0x269   :  { %7461 = vmatpush3.bf16.msra.mxu0 %v7460_v40  ;;  %v1320_v40 = vld [vmem:[%s11892_s1 + $0x27f0] sm:$0xff]  ;;  %v4768_v8 = vld [vmem:[%s11895_s4] ss:$0 sm:$0xff] }
 0x26a   :  { %7463 = vmatprep.subr.bf16.mxu0 %v7462_v44 }
 0x26b   :  { %7493 = vmatpush3.bf16.msra.mxu1 %v7492_v42  ;;  %v1321_v42 = vld [vmem:[%s11892_s1 + $0x27f8] sm:$0xff] }
 0x26c   :  { %7495 = vmatprep.subr.bf16.mxu1 %v7494_v35  ;;  %v7512_v35 = vpack.c.bf16 %v1303_v43, %v1302_v10  ;;  %v7514_v50 = vpack.c.bf16 %v1321_v42, %v1320_v40 }
 0x26d   :  { %7465 = vmatpush3.bf16.msra.mxu0 %v7464_v54  ;;  %v1304_v54 = vld [vmem:[%s11892_s1 + $0x2770] sm:$0xff] }
 0x26e   :  { %7467 = vmatprep.subr.bf16.mxu0 %v7466_v56 }
 0x26f   :  { %7497 = vmatpush3.bf16.msra.mxu1 %v7496_v55  ;;  %v1305_v55 = vld [vmem:[%s11892_s1 + $0x2778] sm:$0xff] }
 0x270   :  { %7499 = vmatprep.subr.bf16.mxu1 %v7498_v58  ;;  %v7516_v41 = vpack.c.bf16 %v1305_v55, %v1304_v54 }
 0x271   :  { %7469 = vmatpush3.bf16.msra.mxu0 %v7468_v62  ;;  %v1327_v62 = vld [vmem:[%s11892_s1 + $0x2828] sm:$0xff] }
 0x272   :  { %7471 = vmatprep.subr.bf16.mxu0 %v7470_v1  ;;  %v1329_v1 = vld [vmem:[%s11892_s1 + $0x2838] sm:$0xff] }
 0x273   :  { %7501 = vmatpush3.bf16.msra.mxu1 %v7500_v0  ;;  %v7600_v0 = vmov 0.0  }
 0x274   :  { %7503 = vmatprep.subr.bf16.mxu1 %v7502_v51  ;;  %v7531_v51 = vpack.c.bf16 %v1331_v4, %v1330_v3 }
 0x275   :  { %7473 = vmatpush3.bf16.msra.mxu0 %v7472_v7 }
 0x276   :  { %7475 = vmatprep.subr.bf16.mxu0 %v7474_v14 }
 0x277   :  { %7505 = vmatpush3.bf16.msra.mxu1 %v7504_v12  ;;  %v5642_v33 = vpop.f32.mrb[24].mxu0 }
 0x278   :  { %7507 = vmatprep.subr.bf16.mxu1 %v7506_v18  ;;  %v5643_v36 = vpop.f32.mrb[25].mxu0 }
 0x279   :  { %v5677_v38 = vpop.f32.mrb[24].mxu1  ;;  %v5644_v44 = vadd.f32 %v5643_v36, %v5642_v33  ;;  %7477 = vmatpush3.bf16.msra.mxu0 %v7476_v25  ;;  %v4767_v25 = vld.sshfl [vmem:[%s11891_s0 + $0xa0] sm:$0x3 pattern:$0x76325410] }
 0x27a   :  { %v5678_v23 = vpop.f32.mrb[25].mxu1  ;;  %7479 = vmatprep.subr.bf16.mxu0 %v7478_v29 }
 0x27b   :  { %v5679_v46 = vadd.f32 %v5678_v23, %v5677_v38  ;;  %7509 = vmatpush3.bf16.msra.mxu1 %v7508_v28  ;;  %v3541_v48 = vadd.f32 %v5644_v44, %v11606_v11  ;;  %v1322_v11 = vld [vmem:[%s11892_s1 + $0x2800] sm:$0xff] }
 0x27c   :  { %7511 = vmatprep.subr.bf16.mxu1 %v7510_v21  ;;  %v7519_v58 = vpack.c.bf16 %v1323_v52, %v1322_v11  ;;  %v4665_v23 = vld [vmem:[%s11894_s3] sm:$0xff] }
 0x27d   :  { %v3611_v56 = vadd.f32 %v5679_v46, %v3541_v48  ;;  %7481 = vmatpush3.bf16.msra.mxu0 %v7480_v45  ;;  %v4666_v45 = vld [vmem:[%s11894_s3 + $0x8] sm:$0xff] }
 0x27e   :  { %7483 = vmatprep.subr.bf16.mxu0 %v7482_v39  ;;  %v7543_v46 = vpack.c.bf16 %v4666_v45, %v4665_v23  ;;  %v4667_v39 = vld [vmem:[%s11894_s3 + $0x10] sm:$0xff] }
 0x27f   :  { %7513 = vmatpush3.bf16.msra.mxu1 %v7512_v35  ;;  %v7546_v48 = vpack.c.bf16 %v4668_v47, %v4667_v39 }
 0x280   :  { %7515 = vmatprep.subr.bf16.mxu1 %v7514_v50 }
 0x281   :  { %7485 = vmatpush3.bf16.msra.mxu0 %v7484_v57 }
 0x282   :  { %7518 = vmatprep.subr.bf16.mxu0 %v7598_v49 }
 0x283   :  { %7517 = vmatpush3.bf16.msra.mxu1 %v7516_v41 }
 0x284   :  { %7542 = vmatprep.subr.bf16.mxu1 %v7598_v49  ;;  %4519 = vmatmul.mubr.f32.vlgmr.msra.gmra.mrb[38].mxu0 %v11627_v9  ;;  %v7525_v9 = vpack.c.bf16 %v1327_v62, %v1326_v60 }
 0x285   :  { %7520 = vmatpush3.bf16.msra.mxu0 %v7519_v58  ;;  %6224 = vmatprep.mubr.msk.f32.mxu0 %vm7599_vm0, %v7600_v0 }
 0x286   :  { %4589 = vmatmul.mubr.f32.vlgmr.msra.gmra.mrb[38].mxu1 %v11636_v27  ;;  %7521 = vmatprep.subr.bf16.mxu0 %v7598_v49  ;;  %v1328_v27 = vld [vmem:[%s11892_s1 + $0x2830] sm:$0xff] }
 0x287   :  { %6235 = vmatprep.mubr.msk.f32.mxu1 %vm7599_vm0, %v7600_v0  ;;  %v7528_v2 = vpack.c.bf16 %v1329_v1, %v1328_v27  ;;  %7544 = vmatpush3.bf16.msra.mxu1 %v7543_v46 }
 0x288   :  { %7545 = vmatprep.subr.bf16.mxu1 %v7598_v49 }
 0x289   :  { %7523 = vmatpush3.bf16.msra.mxu0 %v7522_v63 }
 0x28a   :  { %7524 = vmatprep.subr.bf16.mxu0 %v7598_v49 }
 0x28b   :  { %7547 = vmatpush3.bf16.msra.mxu1 %v7546_v48 }
 0x28d   :  { %7526 = vmatpush3.bf16.msra.mxu0 %v7525_v9 }
 0x28e   :  { %7527 = vmatprep.subr.bf16.mxu0 %v7598_v49 }
 0x291   :  { %7529 = vmatpush3.bf16.msra.mxu0 %v7528_v2 }
 0x292   :  { %7530 = vmatprep.subr.bf16.mxu0 %v7598_v49 }
 0x295   :  { %7532 = vmatpush3.bf16.msra.mxu0 %v7531_v51 }
 0x296   :  { %7533 = vmatprep.subr.bf16.mxu0 %v7598_v49 }
 0x297   :  { %v5712_v7 = vpop.f32.mrb[26].mxu0 }
 0x298   :  { %v5713_v12 = vpop.f32.mrb[27].mxu0 }
 0x299   :  { %v5747_v14 = vpop.f32.mrb[26].mxu1  ;;  %v5714_v15 = vadd.f32 %v5713_v12, %v5712_v7  ;;  %7535 = vmatpush3.bf16.msra.mxu0 %v7534_v26 }
 0x29a   :  { %v5748_v16 = vpop.f32.mrb[27].mxu1  ;;  %7536 = vmatprep.subr.bf16.mxu0 %v7598_v49 }
 0x29b   :  { %v5749_v18 = vadd.f32 %v5748_v16, %v5747_v14  ;;  %v3681_v24 = vadd.f32 %v5714_v15, %v3611_v56 }
 0x29d   :  { %v3751_v20 = vadd.f32 %v5749_v18, %v3681_v24  ;;  %7538 = vmatpush3.bf16.msra.mxu0 %v7537_v17 }
 0x29e   :  { %7539 = vmatprep.subr.bf16.mxu0 %v7598_v49 }
 0x2a1   :  { %7541 = vmatpush3.bf16.msra.mxu0 %v7540_v22 }
 0x2a4   :  { %6225 = vmatmul.mubr.f32.vlgmr.msra.gmra.mrb[40].mxu0 %v4767_v25 }
 0x2b7   :  { %v5782_v28 = vpop.f32.mrb[28].mxu0 }
 0x2b8   :  { %v5783_v29 = vpop.f32.mrb[29].mxu0 }
 0x2b9   :  { %v5817_v31 = vpop.f32.mrb[28].mxu1  ;;  %v5784_v30 = vadd.f32 %v5783_v29, %v5782_v28 }
 0x2ba   :  { %v5818_v10 = vpop.f32.mrb[29].mxu1 }
 0x2bb   :  { %v5819_v33 = vadd.f32 %v5818_v10, %v5817_v31  ;;  %v3821_v21 = vadd.f32 %v5784_v30, %v3751_v20 }
 0x2bd   :  { %v3891_v43 = vadd.f32 %v5819_v33, %v3821_v21 }
 0x2d7   :  { %v5852_v37 = vpop.f32.mrb[30].mxu0 }
 0x2d8   :  { %v5853_v34 = vpop.f32.mrb[31].mxu0 }
 0x2d9   :  { %v5887_v36 = vpop.f32.mrb[30].mxu1  ;;  %v5854_v38 = vadd.f32 %v5853_v34, %v5852_v37 }
 0x2da   :  { %v5888_v40 = vpop.f32.mrb[31].mxu1 }
 0x2db   :  { %v5889_v42 = vadd.f32 %v5888_v40, %v5887_v36  ;;  %v3961_v44 = vadd.f32 %v5854_v38, %v3891_v43 }
 0x2dd   :  { %v4031_v35 = vadd.f32 %v5889_v42, %v3961_v44 }
 0x2f7   :  { %v5922_v53 = vpop.f32.mrb[32].mxu0 }
 0x2f8   :  { %v5923_v50 = vpop.f32.mrb[33].mxu0 }
 0x2f9   :  { %v5957_v54 = vpop.f32.mrb[32].mxu1  ;;  %v5924_v55 = vadd.f32 %v5923_v50, %v5922_v53 }
 0x2fa   :  { %v5958_v56 = vpop.f32.mrb[33].mxu1 }
 0x2fb   :  { %v5959_v57 = vadd.f32 %v5958_v56, %v5957_v54  ;;  %v4101_v41 = vadd.f32 %v5924_v55, %v4031_v35 }
 0x2fd   :  { %v4171_v11 = vadd.f32 %v5959_v57, %v4101_v41 }
 0x317   :  { %v5992_v52 = vpop.f32.mrb[34].mxu0 }
 0x318   :  { %v5993_v58 = vpop.f32.mrb[35].mxu0 }
 0x319   :  { %v6027_v49 = vpop.f32.mrb[34].mxu1  ;;  %v5994_v59 = vadd.f32 %v5993_v58, %v5992_v52 }
 0x31a   :  { %v6028_v32 = vpop.f32.mrb[35].mxu1 }
 0x31b   :  { %v6029_v63 = vadd.f32 %v6028_v32, %v6027_v49  ;;  %v4241_v60 = vadd.f32 %v5994_v59, %v4171_v11 }
 0x31d   :  { %v4311_v62 = vadd.f32 %v6029_v63, %v4241_v60 }
 0x337   :  { %v6062_v0 = vpop.f32.mrb[36].mxu0 }
 0x338   :  { %v6063_v9 = vpop.f32.mrb[37].mxu0 }
 0x339   :  { %v6097_v27 = vpop.f32.mrb[36].mxu1  ;;  %v6064_v1 = vadd.f32 %v6063_v9, %v6062_v0 }
 0x33a   :  { %v6098_v2 = vpop.f32.mrb[37].mxu1 }
 0x33b   :  { %v6099_v3 = vadd.f32 %v6098_v2, %v6097_v27  ;;  %v4381_v4 = vadd.f32 %v6064_v1, %v4311_v62 }
 0x33d   :  { %v4451_v51 = vadd.f32 %v6099_v3, %v4381_v4 }
 0x357   :  { %v6132_v5 = vpop.f32.mrb[38].mxu0 }
 0x358   :  { %v6133_v61 = vpop.f32.mrb[39].mxu0 }
 0x359   :  { %v6167_v26 = vpop.f32.mrb[38].mxu1  ;;  %v6134_v6 = vadd.f32 %v6133_v61, %v6132_v5 }
 0x35a   :  { %v6168_v13 = vpop.f32.mrb[39].mxu1 }
 0x35b   :  { %v6169_v7 = vadd.f32 %v6168_v13, %v6167_v26  ;;  %v4521_v12 = vadd.f32 %v6134_v6, %v4451_v51 }
 0x35d   :  { %v4591_v14 = vadd.f32 %v6169_v7, %v4521_v12 }
 0x377   :  { %v4660_v15 = vpop.f32.mrb[40].mxu0 }
 0x378   :  { %v4661_v16 = vadd.f32 %v4660_v15, %v4591_v14  ;;  %v6226_v17 = vpop.f32.mrb[41].mxu0 }
 0x37a   :  { %v4664_v18 = vmax.f32 %v4661_v16, 0.0 }
 0x37c   :  { %6236 = vmatmul.mubr.msk.f32.vlgmr.msra.gmra.mrb[40].mxu1 %vm4676_vm1, %v4664_v18 }
 0x44f   :  { %v4746_v19 = vpop.f32.mrb[40].mxu1 }
 0x450   :  { %v4747_v24 = vadd.f32 %v4768_v8, %v4746_v19  ;;  %v6237_v20 = vpop.f32.mrb[41].mxu1 }
 0x452   :  { %4751 = vst.msk [vmem:[#allocation2] sm:$0x3] %vm4750_vm2, %v4747_v24 }
 0x453   :  { %7584 = shalt.err (!%p7581_p4)
}
 0x454   :  { %s7585_s2 = scalar_lea.hbm %s11896_s5, 32 }
 0x455   :  { %p7586_p5 = scmp.ne.s32.totalorder %s11896_s5, %s7585_s2  ;;  %p7589_p6 = scmp.lt.u32.totalorder %s7585_s2, %s11896_s5 }
 0x457   :  { %p7591_p7 = pnand %p7589_p6, %p7586_p5 }
 0x459   :  { %7594 = shalt.err (!%p7591_p7)
}
 0x45a   :  { %4761 = dma.vmem_to_hbm [thread:$0]  %s4759_s25, 32, %s11896_s5, [#allocation3]  }
 0x45b   :  { %7595 = dma.done.wait [#allocation3], 32  }
 0x45c   :  { %7596 = vsyncadd [#allocation3], 4294967264 }
 0x45d   :  { %4765 = vsyncpa [#allocation3], 1 }

</bundles_post_ra>
